<compile_context>
chip_gen: v7x
topology: tpu7x:2x2x1
jax: 0.10.0
libtpu: 0.0.40
codegen_flags: <defaults>
</compile_context>

<pallas_src>
import functools

import jax
import jax.numpy as jnp
from jax import lax
from jax.experimental import pallas as pl
from jax.experimental.pallas import tpu as pltpu


def _round_up(x, m):
    return ((x + m - 1) // m) * m


def _device_kind():
    try:
        return jax.devices()[0].device_kind.lower()
    except Exception:
        return ""


def _usable_vmem_bytes():
    """Generation-aware physical VMEM capacity (conservative fallback)."""
    try:
        info = pltpu.get_tpu_info()
        cap = int(getattr(info, "vmem_capacity_bytes", 0) or 0)
        if cap > 0:
            return cap
    except Exception:
        pass
    kind = _device_kind()
    if "v7" in kind:
        return 64 << 20
    if ("v5" in kind) or ("v6" in kind):
        return 128 << 20
    return 64 << 20  # unknown chip -> conservative


def _gate_dtype():
    # bf16 VALU/EUP exist on v6e/v7x; keep f32 gate math on v5e and older.
    kind = _device_kind()
    if ("v6" in kind) or ("v7" in kind):
        return jnp.bfloat16
    return jnp.float32


def _make_lstm_fc_kernel(n_layers, h_pad, t_chunk, b_pad, has_tail, tail_valid,
                         gate_dtype):
    """Kernel closure. Shapes inside the kernel (all padded):
      embeds chunk : (1, T_CHUNK*B_pad, E_pad)  bf16
      h0 / c0      : (L, B_pad, H_pad)          f32
      per layer    : w_ih (in_pad, 4H_pad) bf16, w_hh (H_pad, 4H_pad) bf16,
                     b (1, 4H_pad) f32           [gate order i, f, o, g]
      fc           : fc_w (H_pad, O_pad) bf16, fc_b (1, O_pad) f32
      outputs      : logits (B_pad, O_pad), h_n / c_n (L, B_pad, H_pad)  f32
      scratch      : h_state/c_state (L,B_pad,H_pad) f32,
                     seq_buf (TB, H_pad) bf16, proj_buf (TB, 4H_pad) f32
    """
    HP = h_pad
    use_bf16_gates = (gate_dtype == jnp.bfloat16)

    def kernel(*refs):
        idx = 0
        embeds_ref = refs[idx]; idx += 1
        h0_ref = refs[idx]; idx += 1
        c0_ref = refs[idx]; idx += 1
        layer_refs = []
        for _ in range(n_layers):
            layer_refs.append((refs[idx], refs[idx + 1], refs[idx + 2]))
            idx += 3
        fc_w_ref = refs[idx]; idx += 1
        fc_b_ref = refs[idx]; idx += 1
        out_ref = refs[idx]; idx += 1
        hn_ref = refs[idx]; idx += 1
        cn_ref = refs[idx]; idx += 1
        h_state = refs[idx]; idx += 1
        c_state = refs[idx]; idx += 1
        seq_buf = refs[idx]; idx += 1
        proj_buf = refs[idx]; idx += 1

        chunk = pl.program_id(0)

        @pl.when(chunk == 0)
        def _():
            h_state[...] = h0_ref[...]
            c_state[...] = c0_ref[...]

        if has_tail:
            # Only the last chunk has fewer than t_chunk valid steps.
            n_valid = jnp.where(chunk == pl.num_programs(0) - 1,
                                tail_valid, t_chunk)

        for l in range(n_layers):
            w_ih_ref, w_hh_ref, b_ref = layer_refs[l]

            # Batched (chunk-wide) input projection: one big MXU matmul per
            # layer — M = T_CHUNK*B_pad instead of B_pad per step.
            if l == 0:
                x_seq = embeds_ref[0]            # (TB, E_pad) bf16
            else:
                x_seq = seq_buf[...]             # (TB, H_pad) bf16, prev layer
            proj_buf[...] = (
                jnp.dot(x_seq, w_ih_ref[...],
                        preferred_element_type=jnp.float32)
                + b_ref[...])                    # bias folded in once per chunk

            last_layer = (l == n_layers - 1)

            def step(t, carry, _last=last_layer):
                h, c = carry                     # (B_pad, HP) f32
                row = pl.multiple_of(t * b_pad, b_pad)
                # Recurrent projection read from refs at the use site.
                z = (proj_buf[pl.ds(row, b_pad), :]
                     + jnp.dot(h.astype(jnp.bfloat16), w_hh_ref[...],
                               preferred_element_type=jnp.float32))
                # Gate order (i, f, o, g): one sigmoid slab + one tanh.
                if use_bf16_gates:
                    zg = z.astype(jnp.bfloat16)
                    sig = jax.nn.sigmoid(zg[:, :3 * HP]).astype(jnp.float32)
                    g_g = jnp.tanh(zg[:, 3 * HP:]).astype(jnp.float32)
                else:
                    sig = jax.nn.sigmoid(z[:, :3 * HP])
                    g_g = jnp.tanh(z[:, 3 * HP:])
                i_g = sig[:, 0 * HP:1 * HP]
                f_g = sig[:, 1 * HP:2 * HP]
                o_g = sig[:, 2 * HP:3 * HP]
                c_new = f_g * c + i_g * g_g      # cell state kept in f32
                if use_bf16_gates:
                    tanh_c = jnp.tanh(c_new.astype(jnp.bfloat16)).astype(jnp.float32)
                else:
                    tanh_c = jnp.tanh(c_new)
                h_new = o_g * tanh_c
                if has_tail:
                    keep = t < n_valid
                    h_new = jnp.where(keep, h_new, h)
                    c_new = jnp.where(keep, c_new, c)
                if not _last:
                    # Hidden sequence for the next layer only; last layer's
                    # per-step hidden is never consumed (dead store removed).
                    seq_buf[pl.ds(row, b_pad), :] = h_new.astype(jnp.bfloat16)
                return (h_new, c_new)

            # Partial unroll: amortize loop bookkeeping, keep vreg pressure sane.
            unroll = t_chunk if t_chunk <= 8 else 4
            h_fin, c_fin = lax.fori_loop(
                0, t_chunk, step, (h_state[l], c_state[l]), unroll=unroll)
            h_state[l] = h_fin
            c_state[l] = c_fin

            # TODO(synk): inter-layer LSTM dropout is a no-op in eval mode.

        @pl.when(chunk == pl.num_programs(0) - 1)
        def _():
            hn_ref[...] = h_state[...]
            cn_ref[...] = c_state[...]
            # lstm_out[:, -1] == h_n of the last layer; dropout == identity.
            logits = (jnp.dot(h_state[n_layers - 1].astype(jnp.bfloat16),
                              fc_w_ref[...],
                              preferred_element_type=jnp.float32)
                      + fc_b_ref[...])
            out_ref[...] = logits

    return kernel


class RNNPallas:
    """Deterministically-initialized JAX/Pallas equivalent of the PyTorch RNN."""

    def __init__(self, vocab_size, output_size, embedding_dim, hidden_dim,
                 n_layers, dropout=0.3, seed=0):
        self.vocab_size = vocab_size
        self.output_size = output_size
        self.embedding_dim = embedding_dim
        self.hidden_dim = hidden_dim
        self.n_layers = n_layers
        self.dropout = dropout  # eval mode -> identity

        # Lane/sublane-friendly padded dims.
        # TODO(synk): for hidden_dim well below 128, pack the four gates
        # contiguously (pad 4H -> round_up(4H,128)) instead of padding each
        # gate to 128; needs in-kernel lane masks, so not done here.
        self.e_pad = _round_up(embedding_dim, 128)
        self.h_pad = _round_up(hidden_dim, 128)
        self.o_pad = _round_up(output_size, 128)

        self._vmem_cap = _usable_vmem_bytes()
        self._gate_dtype = _gate_dtype()

        key = jax.random.PRNGKey(seed)
        keys = jax.random.split(key, 2 + 4 * n_layers + 2)
        k_iter = iter(keys)

        H, HP = hidden_dim, self.h_pad

        # Embedding: N(0, 1) like nn.Embedding default; pad E -> E_pad (zeros),
        # store bf16 (matmul boundary dtype) to halve gather bytes.
        emb = jax.random.normal(next(k_iter), (vocab_size, embedding_dim),
                                jnp.float32)
        self.embedding = jnp.pad(
            emb, ((0, 0), (0, self.e_pad - embedding_dim))).astype(jnp.bfloat16)

        def reorder_pad_gates(w):
            # PyTorch gate-row order (i, f, g, o) -> kernel order (i, f, o, g),
            # each gate block zero-padded H -> H_pad along the gate axis.
            wi, wf, wg, wo = (w[0:H], w[H:2 * H], w[2 * H:3 * H], w[3 * H:4 * H])
            blocks = [wi, wf, wo, wg]
            if w.ndim == 1:
                blocks = [jnp.pad(b, (0, HP - H)) for b in blocks]
            else:
                blocks = [jnp.pad(b, ((0, HP - H), (0, 0))) for b in blocks]
            return jnp.concatenate(blocks, axis=0)

        # LSTM params: U(-1/sqrt(H), 1/sqrt(H)).
        bound = 1.0 / float(jnp.sqrt(jnp.float32(hidden_dim)))
        self.lstm_params = []
        for l in range(n_layers):
            in_dim = embedding_dim if l == 0 else hidden_dim
            in_pad = self.e_pad if l == 0 else HP
            w_ih = jax.random.uniform(next(k_iter), (4 * H, in_dim),
                                      jnp.float32, -bound, bound)
            w_hh = jax.random.uniform(next(k_iter), (4 * H, H),
                                      jnp.float32, -bound, bound)
            b_ih = jax.random.uniform(next(k_iter), (4 * H,),
                                      jnp.float32, -bound, bound)
            b_hh = jax.random.uniform(next(k_iter), (4 * H,),
                                      jnp.float32, -bound, bound)
            w_ih_p = reorder_pad_gates(w_ih)                       # (4HP, in)
            w_ih_p = jnp.pad(w_ih_p, ((0, 0), (0, in_pad - in_dim)))
            w_hh_p = reorder_pad_gates(w_hh)                       # (4HP, H)
            w_hh_p = jnp.pad(w_hh_p, ((0, 0), (0, HP - H)))
            b_p = reorder_pad_gates(b_ih + b_hh)                   # (4HP,)
            self.lstm_params.append((
                w_ih_p.T.astype(jnp.bfloat16),                     # (in_pad, 4HP)
                w_hh_p.T.astype(jnp.bfloat16),                     # (HP, 4HP)
                b_p[None, :].astype(jnp.float32),                  # (1, 4HP)
            ))

        # Linear: U(-1/sqrt(H), 1/sqrt(H)); padded to (H_pad, O_pad).
        fc_w = jax.random.uniform(next(k_iter), (output_size, hidden_dim),
                                  jnp.float32, -bound, bound)
        fc_b = jax.random.uniform(next(k_iter), (output_size,),
                                  jnp.float32, -bound, bound)
        fc_w_p = jnp.pad(fc_w, ((0, self.o_pad - output_size), (0, HP - H)))
        self.fc_w = fc_w_p.T.astype(jnp.bfloat16)                  # (HP, O_pad)
        self.fc_b = jnp.pad(fc_b, (0, self.o_pad - output_size))[None, :]

    def init_hidden(self, batch_size):
        shape = (self.n_layers, batch_size, self.hidden_dim)
        return (jnp.zeros(shape, jnp.float32), jnp.zeros(shape, jnp.float32))

    # --- VMEM accounting (double-buffered streamed/weight/output tiles) ------
    def _vmem_estimate(self, t_chunk, b_pad):
        HP, EP, OP, L = self.h_pad, self.e_pad, self.o_pad, self.n_layers
        TB = t_chunk * b_pad
        est = 2 * TB * EP * 2                          # embeds chunk (bf16) x2
        est += 2 * 2 * L * b_pad * HP * 4              # h0 + c0 (f32) x2
        for l in range(L):
            in_pad = EP if l == 0 else HP
            est += 2 * (in_pad * 4 * HP * 2 + HP * 4 * HP * 2 + 4 * HP * 4)
        est += 2 * (HP * OP * 2 + OP * 4)              # fc weights/bias
        est += 2 * (b_pad * OP * 4 + 2 * L * b_pad * HP * 4)   # outputs
        est += 2 * L * b_pad * HP * 4                  # h/c state scratch
        est += TB * HP * 2 + TB * 4 * HP * 4           # seq_buf + proj_buf
        return est

    @functools.partial(jax.jit, static_argnums=0)
    def __call__(self, x, hidden):
        # x: (B, T) int token ids ;  hidden = (h0, c0) each (L, B, H)
        B, T = x.shape
        L, H, HP = self.n_layers, self.hidden_dim, self.h_pad
        E_pad, O_pad = self.e_pad, self.o_pad
        h0, c0 = hidden

        # bf16 (16,128) tile alignment for the per-step seq_buf stores.
        B_pad = max(16, _round_up(B, 16))

        # Budget-driven time chunk (fixed chunk + masked tail for awkward T).
        cap = self._vmem_cap
        budget = int(0.75 * cap)
        t_chunk = 1
        for cand in (256, 192, 128, 96, 64, 48, 32, 24, 16, 12, 8, 6, 4, 3, 2, 1):
            tc = min(cand, T)
            if self._vmem_estimate(tc, B_pad) <= budget:
                t_chunk = tc
                break
        num_chunks = -(-T // t_chunk)
        T_pad = num_chunks * t_chunk
        tail_valid = T - (num_chunks - 1) * t_chunk
        has_tail = (tail_valid != t_chunk)
        TB = t_chunk * B_pad

        # --- glue: embedding gather, layout + padding (outside the kernel) ---
        x_pad = jnp.pad(x.astype(jnp.int32), ((0, B_pad - B), (0, 0)))
        # NOTE: jnp.take clamps out-of-range ids (PyTorch nn.Embedding errors).
        # Time-major gather: result is already (T, B_pad, E_pad) in bf16.
        embeds = jnp.take(self.embedding, x_pad.T, axis=0)
        if T_pad != T:
            embeds = jnp.pad(embeds, ((0, T_pad - T), (0, 0), (0, 0)))
        embeds = embeds.reshape(num_chunks, TB, E_pad)

        h0_p = jnp.pad(h0.astype(jnp.float32),
                       ((0, 0), (0, B_pad - B), (0, HP - H)))
        c0_p = jnp.pad(c0.astype(jnp.float32),
                       ((0, 0), (0, B_pad - B), (0, HP - H)))

        # --- specs ---
        # TODO(synk): on v7x, single-buffer the constant-index weight specs
        # (pipeline_mode=pl.Buffered(1)) to halve their VMEM footprint.
        in_specs = [
            pl.BlockSpec((1, TB, E_pad), lambda c: (c, 0, 0)),   # streamed chunk
            pl.BlockSpec((L, B_pad, HP), lambda c: (0, 0, 0)),   # h0 (resident)
            pl.BlockSpec((L, B_pad, HP), lambda c: (0, 0, 0)),   # c0 (resident)
        ]
        inputs = [embeds, h0_p, c0_p]
        for l in range(L):
            in_pad = E_pad if l == 0 else HP
            w_ih_t, w_hh_t, b = self.lstm_params[l]
            inputs += [w_ih_t, w_hh_t, b]
            in_specs += [
                pl.BlockSpec((in_pad, 4 * HP), lambda c: (0, 0)),
                pl.BlockSpec((HP, 4 * HP), lambda c: (0, 0)),
                pl.BlockSpec((1, 4 * HP), lambda c: (0, 0)),
            ]
        inputs += [self.fc_w, self.fc_b]
        in_specs += [
            pl.BlockSpec((HP, O_pad), lambda c: (0, 0)),
            pl.BlockSpec((1, O_pad), lambda c: (0, 0)),
        ]

        out_specs = (
            pl.BlockSpec((B_pad, O_pad), lambda c: (0, 0)),
            pl.BlockSpec((L, B_pad, HP), lambda c: (0, 0, 0)),
            pl.BlockSpec((L, B_pad, HP), lambda c: (0, 0, 0)),
        )
        out_shape = (
            jax.ShapeDtypeStruct((B_pad, O_pad), jnp.float32),
            jax.ShapeDtypeStruct((L, B_pad, HP), jnp.float32),
            jax.ShapeDtypeStruct((L, B_pad, HP), jnp.float32),
        )
        scratch_shapes = [
            pltpu.VMEM((L, B_pad, HP), jnp.float32),      # h_state
            pltpu.VMEM((L, B_pad, HP), jnp.float32),      # c_state
            pltpu.VMEM((TB, HP), jnp.bfloat16),           # inter-layer hidden seq
            pltpu.VMEM((TB, 4 * HP), jnp.float32),        # batched projection
        ]

        est = self._vmem_estimate(t_chunk, B_pad)
        vmem_limit = int(min(max(int(1.25 * est) + (8 << 20), 16 << 20),
                             cap - (4 << 20)))

        kernel = _make_lstm_fc_kernel(L, HP, t_chunk, B_pad, has_tail,
                                      tail_valid, self._gate_dtype)

        # TODO(synk): v7x could additionally shard the batch over its 2 TCs
        # with a leading "parallel" grid axis; not done here (B is tiny).
        out_p, hn_p, cn_p = pl.pallas_call(
            kernel,
            out_shape=out_shape,
            grid_spec=pltpu.PrefetchScalarGridSpec(
                num_scalar_prefetch=0,
                grid=(num_chunks,),
                in_specs=in_specs,
                out_specs=out_specs,
                scratch_shapes=scratch_shapes),
            compiler_params=pltpu.CompilerParams(
                dimension_semantics=("arbitrary",),
                vmem_limit_bytes=vmem_limit),
        )(*inputs)

        out = out_p[:B, :self.output_size]
        h_n = hn_p[:, :B, :H]
        c_n = cn_p[:, :B, :H]
        return out, (h_n, c_n)


if __name__ == "__main__":
    # Small, module-consistent shapes.
    vocab_size = 50
    output_size = 4
    embedding_dim = 32
    hidden_dim = 32
    n_layers = 2
    batch = 2
    seq = 8

    model = RNNPallas(vocab_size, output_size, embedding_dim, hidden_dim,
                      n_layers, dropout=0.3, seed=0)

    key = jax.random.PRNGKey(0)
    x = jax.random.randint(key, (batch, seq), 0, vocab_size, dtype=jnp.int32)
    hidden = model.init_hidden(batch)

    out, (h_n, c_n) = model(x, hidden)
    jax.block_until_ready((out, h_n, c_n))

    assert out.shape == (batch, output_size)
    assert h_n.shape == (n_layers, batch, hidden_dim)
    assert c_n.shape == (n_layers, batch, hidden_dim)
    assert bool(jnp.all(jnp.isfinite(out)))
    assert bool(jnp.all(jnp.isfinite(h_n)))
    assert bool(jnp.all(jnp.isfinite(c_n)))
    print("KERNEL_OK")
</pallas_src>

<mosaic_0001>
module attributes {stable_mosaic.version = 11 : i64} {
  func.func @kernel(%arg0: i32, %arg1: memref<1x128x128xbf16, #tpu.memory_space<vmem>>, %arg2: memref<2x16x128xf32, #tpu.memory_space<vmem>>, %arg3: memref<2x16x128xf32, #tpu.memory_space<vmem>>, %arg4: memref<128x512xbf16, #tpu.memory_space<vmem>>, %arg5: memref<128x512xbf16, #tpu.memory_space<vmem>>, %arg6: memref<1x512xf32, #tpu.memory_space<vmem>>, %arg7: memref<128x512xbf16, #tpu.memory_space<vmem>>, %arg8: memref<128x512xbf16, #tpu.memory_space<vmem>>, %arg9: memref<1x512xf32, #tpu.memory_space<vmem>>, %arg10: memref<128x128xbf16, #tpu.memory_space<vmem>>, %arg11: memref<1x128xf32, #tpu.memory_space<vmem>>, %arg12: memref<16x128xf32, #tpu.memory_space<vmem>>, %arg13: memref<2x16x128xf32, #tpu.memory_space<vmem>>, %arg14: memref<2x16x128xf32, #tpu.memory_space<vmem>>, %arg15: memref<2x16x128xf32, #tpu.memory_space<vmem>>, %arg16: memref<2x16x128xf32, #tpu.memory_space<vmem>>, %arg17: memref<128x128xbf16, #tpu.memory_space<vmem>>, %arg18: memref<128x512xf32, #tpu.memory_space<vmem>>) attributes {dimension_semantics = [#tpu.dimension_semantics<arbitrary>], iteration_bounds = array<i64: 1>, scalar_prefetch = 0 : i64, scratch_operands = 4 : i64, tpu.core_type = #tpu.core_type<tc>, window_params = [{transform_indices = @transform_0, window_bounds = array<i64: 1, 128, 128>}, {pipeline_mode = #tpu.pipeline_mode<synchronous>, transform_indices = @transform_1, window_bounds = array<i64: 2, 16, 128>}, {pipeline_mode = #tpu.pipeline_mode<synchronous>, transform_indices = @transform_2, window_bounds = array<i64: 2, 16, 128>}, {pipeline_mode = #tpu.pipeline_mode<synchronous>, transform_indices = @transform_3, window_bounds = array<i64: 128, 512>}, {pipeline_mode = #tpu.pipeline_mode<synchronous>, transform_indices = @transform_4, window_bounds = array<i64: 128, 512>}, {pipeline_mode = #tpu.pipeline_mode<synchronous>, transform_indices = @transform_5, window_bounds = array<i64: 1, 512>}, {pipeline_mode = #tpu.pipeline_mode<synchronous>, transform_indices = @transform_6, window_bounds = array<i64: 128, 512>}, {pipeline_mode = #tpu.pipeline_mode<synchronous>, transform_indices = @transform_7, window_bounds = array<i64: 128, 512>}, {pipeline_mode = #tpu.pipeline_mode<synchronous>, transform_indices = @transform_8, window_bounds = array<i64: 1, 512>}, {pipeline_mode = #tpu.pipeline_mode<synchronous>, transform_indices = @transform_9, window_bounds = array<i64: 128, 128>}, {pipeline_mode = #tpu.pipeline_mode<synchronous>, transform_indices = @transform_10, window_bounds = array<i64: 1, 128>}, {pipeline_mode = #tpu.pipeline_mode<synchronous>, transform_indices = @transform_11, window_bounds = array<i64: 16, 128>}, {pipeline_mode = #tpu.pipeline_mode<synchronous>, transform_indices = @transform_12, window_bounds = array<i64: 2, 16, 128>}, {pipeline_mode = #tpu.pipeline_mode<synchronous>, transform_indices = @transform_13, window_bounds = array<i64: 2, 16, 128>}]} {
    %c0_i32 = arith.constant 0 : i32
    %0 = arith.cmpi eq, %arg0, %c0_i32 : i32
    %1 = arith.extui %0 : i1 to i32
    %c0_i32_0 = arith.constant 0 : i32
    %2 = arith.cmpi ne, %1, %c0_i32_0 : i32
    scf.if %2 {
      %c0_156 = arith.constant 0 : index
      %c0_157 = arith.constant 0 : index
      %c0_158 = arith.constant 0 : index
      %449 = vector.load %arg2[%c0_156, %c0_157, %c0_158] : memref<2x16x128xf32, #tpu.memory_space<vmem>>, vector<2x16x128xf32>
      %c0_159 = arith.constant 0 : index
      %c0_160 = arith.constant 0 : index
      %c0_161 = arith.constant 0 : index
      %450 = vector.load %arg15[%c0_159, %c0_160, %c0_161] : memref<2x16x128xf32, #tpu.memory_space<vmem>>, vector<2x16x128xf32>
      tpu.vector_store %arg15[%c0_159, %c0_160, %c0_161], %449 {strides = array<i32>} : memref<2x16x128xf32, #tpu.memory_space<vmem>>, vector<2x16x128xf32>,
      %c0_162 = arith.constant 0 : index
      %c0_163 = arith.constant 0 : index
      %c0_164 = arith.constant 0 : index
      %451 = vector.load %arg3[%c0_162, %c0_163, %c0_164] : memref<2x16x128xf32, #tpu.memory_space<vmem>>, vector<2x16x128xf32>
      %c0_165 = arith.constant 0 : index
      %c0_166 = arith.constant 0 : index
      %c0_167 = arith.constant 0 : index
      %452 = vector.load %arg16[%c0_165, %c0_166, %c0_167] : memref<2x16x128xf32, #tpu.memory_space<vmem>>, vector<2x16x128xf32>
      tpu.vector_store %arg16[%c0_165, %c0_166, %c0_167], %451 {strides = array<i32>} : memref<2x16x128xf32, #tpu.memory_space<vmem>>, vector<2x16x128xf32>,
    } else {
    }
    %c0 = arith.constant 0 : index
    %c0_1 = arith.constant 0 : index
    %c0_2 = arith.constant 0 : index
    %3 = vector.load %arg1[%c0, %c0_1, %c0_2] : memref<1x128x128xbf16, #tpu.memory_space<vmem>>, vector<1x128x128xbf16>
    %4 = vector.shape_cast %3 : vector<1x128x128xbf16> to vector<128x128xbf16>
    %c0_3 = arith.constant 0 : index
    %c0_4 = arith.constant 0 : index
    %5 = vector.load %arg4[%c0_3, %c0_4] : memref<128x512xbf16, #tpu.memory_space<vmem>>, vector<128x512xbf16>
    %cst = arith.constant dense<0.000000e+00> : vector<128x512xf32>
    %6 = tpu.matmul %4, %5, %cst {dimension_numbers = #tpu.dot_dimension_numbers<[1], [0], [0], [1], [0, 0, 1, 1], [], []>} : vector<128x128xbf16>, vector<128x512xbf16>, vector<128x512xf32> -> vector<128x512xf32>
    %c0_5 = arith.constant 0 : index
    %c0_6 = arith.constant 0 : index
    %7 = vector.load %arg6[%c0_5, %c0_6] : memref<1x512xf32, #tpu.memory_space<vmem>>, vector<1x512xf32>
    %8 = vector.broadcast %7 : vector<1x512xf32> to vector<128x512xf32>
    %9 = arith.addf %6, %8 : vector<128x512xf32>
    %c0_7 = arith.constant 0 : index
    %c0_8 = arith.constant 0 : index
    %10 = vector.load %arg18[%c0_7, %c0_8] : memref<128x512xf32, #tpu.memory_space<vmem>>, vector<128x512xf32>
    tpu.vector_store %arg18[%c0_7, %c0_8], %9 {strides = array<i32>} : memref<128x512xf32, #tpu.memory_space<vmem>>, vector<128x512xf32>,
    %c0_9 = arith.constant 0 : index
    %c0_10 = arith.constant 0 : index
    %c0_11 = arith.constant 0 : index
    %11 = vector.load %arg15[%c0_9, %c0_10, %c0_11] : memref<2x16x128xf32, #tpu.memory_space<vmem>>, vector<1x16x128xf32>
    %12 = vector.shape_cast %11 : vector<1x16x128xf32> to vector<16x128xf32>
    %c0_12 = arith.constant 0 : index
    %c0_13 = arith.constant 0 : index
    %c0_14 = arith.constant 0 : index
    %13 = vector.load %arg16[%c0_12, %c0_13, %c0_14] : memref<2x16x128xf32, #tpu.memory_space<vmem>>, vector<1x16x128xf32>
    %14 = vector.shape_cast %13 : vector<1x16x128xf32> to vector<16x128xf32>
    %c0_i32_15 = arith.constant 0 : i32
    %c16_i32 = arith.constant 16 : i32
    %15 = arith.muli %c0_i32_15, %c16_i32 : i32
    %16 = tpu.assume_multiple %15, 16 : i32
    %17 = arith.index_cast %16 : i32 to index
    %c0_16 = arith.constant 0 : index
    %18 = vector.load %arg18[%17, %c0_16] : memref<128x512xf32, #tpu.memory_space<vmem>>, vector<16x512xf32>
    %19 = arith.truncf %12 : vector<16x128xf32> to vector<16x128xbf16>
    %c0_17 = arith.constant 0 : index
    %c0_18 = arith.constant 0 : index
    %20 = vector.load %arg5[%c0_17, %c0_18] : memref<128x512xbf16, #tpu.memory_space<vmem>>, vector<128x512xbf16>
    %cst_19 = arith.constant dense<0.000000e+00> : vector<16x512xf32>
    %21 = tpu.matmul %19, %20, %cst_19 {dimension_numbers = #tpu.dot_dimension_numbers<[1], [0], [0], [1], [0, 0, 1, 1], [], []>} : vector<16x128xbf16>, vector<128x512xbf16>, vector<16x512xf32> -> vector<16x512xf32>
    %22 = arith.addf %18, %21 : vector<16x512xf32>
    %23 = vector.extract_strided_slice %22 {offsets = [0, 0], sizes = [16, 384], strides = [1, 1]} : vector<16x512xf32> to vector<16x384xf32>
    %24 = arith.negf %23 : vector<16x384xf32>
    %25 = math.exp %24 : vector<16x384xf32>
    %cst_20 = arith.constant 1.000000e+00 : f32
    %26 = vector.broadcast %cst_20 : f32 to vector<16x384xf32>
    %27 = arith.addf %26, %25 : vector<16x384xf32>
    %28 = arith.divf %26, %27 : vector<16x384xf32>
    %29 = vector.extract_strided_slice %22 {offsets = [0, 384], sizes = [16, 128], strides = [1, 1]} : vector<16x512xf32> to vector<16x128xf32>
    %30 = math.tanh %29 : vector<16x128xf32>
    %31 = vector.extract_strided_slice %28 {offsets = [0, 0], sizes = [16, 128], strides = [1, 1]} : vector<16x384xf32> to vector<16x128xf32>
    %32 = vector.extract_strided_slice %28 {offsets = [0, 128], sizes = [16, 128], strides = [1, 1]} : vector<16x384xf32> to vector<16x128xf32>
    %33 = vector.extract_strided_slice %28 {offsets = [0, 256], sizes = [16, 128], strides = [1, 1]} : vector<16x384xf32> to vector<16x128xf32>
    %34 = arith.mulf %32, %14 : vector<16x128xf32>
    %35 = arith.mulf %31, %30 : vector<16x128xf32>
    %36 = arith.addf %34, %35 : vector<16x128xf32>
    %37 = math.tanh %36 : vector<16x128xf32>
    %38 = arith.mulf %33, %37 : vector<16x128xf32>
    %39 = arith.truncf %38 : vector<16x128xf32> to vector<16x128xbf16>
    %40 = arith.index_cast %16 : i32 to index
    %c0_21 = arith.constant 0 : index
    %41 = vector.load %arg17[%40, %c0_21] : memref<128x128xbf16, #tpu.memory_space<vmem>>, vector<16x128xbf16>
    tpu.vector_store %arg17[%40, %c0_21], %39 {strides = array<i32>} : memref<128x128xbf16, #tpu.memory_space<vmem>>, vector<16x128xbf16>,
    %c1_i32 = arith.constant 1 : i32
    %c16_i32_22 = arith.constant 16 : i32
    %42 = arith.muli %c1_i32, %c16_i32_22 : i32
    %43 = tpu.assume_multiple %42, 16 : i32
    %44 = arith.index_cast %43 : i32 to index
    %c0_23 = arith.constant 0 : index
    %45 = vector.load %arg18[%44, %c0_23] : memref<128x512xf32, #tpu.memory_space<vmem>>, vector<16x512xf32>
    %46 = arith.truncf %38 : vector<16x128xf32> to vector<16x128xbf16>
    %c0_24 = arith.constant 0 : index
    %c0_25 = arith.constant 0 : index
    %47 = vector.load %arg5[%c0_24, %c0_25] : memref<128x512xbf16, #tpu.memory_space<vmem>>, vector<128x512xbf16>
    %cst_26 = arith.constant dense<0.000000e+00> : vector<16x512xf32>
    %48 = tpu.matmul %46, %47, %cst_26 {dimension_numbers = #tpu.dot_dimension_numbers<[1], [0], [0], [1], [0, 0, 1, 1], [], []>} : vector<16x128xbf16>, vector<128x512xbf16>, vector<16x512xf32> -> vector<16x512xf32>
    %49 = arith.addf %45, %48 : vector<16x512xf32>
    %50 = vector.extract_strided_slice %49 {offsets = [0, 0], sizes = [16, 384], strides = [1, 1]} : vector<16x512xf32> to vector<16x384xf32>
    %51 = arith.negf %50 : vector<16x384xf32>
    %52 = math.exp %51 : vector<16x384xf32>
    %cst_27 = arith.constant 1.000000e+00 : f32
    %53 = vector.broadcast %cst_27 : f32 to vector<16x384xf32>
    %54 = arith.addf %53, %52 : vector<16x384xf32>
    %55 = arith.divf %53, %54 : vector<16x384xf32>
    %56 = vector.extract_strided_slice %49 {offsets = [0, 384], sizes = [16, 128], strides = [1, 1]} : vector<16x512xf32> to vector<16x128xf32>
    %57 = math.tanh %56 : vector<16x128xf32>
    %58 = vector.extract_strided_slice %55 {offsets = [0, 0], sizes = [16, 128], strides = [1, 1]} : vector<16x384xf32> to vector<16x128xf32>
    %59 = vector.extract_strided_slice %55 {offsets = [0, 128], sizes = [16, 128], strides = [1, 1]} : vector<16x384xf32> to vector<16x128xf32>
    %60 = vector.extract_strided_slice %55 {offsets = [0, 256], sizes = [16, 128], strides = [1, 1]} : vector<16x384xf32> to vector<16x128xf32>
    %61 = arith.mulf %59, %36 : vector<16x128xf32>
    %62 = arith.mulf %58, %57 : vector<16x128xf32>
    %63 = arith.addf %61, %62 : vector<16x128xf32>
    %64 = math.tanh %63 : vector<16x128xf32>
    %65 = arith.mulf %60, %64 : vector<16x128xf32>
    %66 = arith.truncf %65 : vector<16x128xf32> to vector<16x128xbf16>
    %67 = arith.index_cast %43 : i32 to index
    %c0_28 = arith.constant 0 : index
    %68 = vector.load %arg17[%67, %c0_28] : memref<128x128xbf16, #tpu.memory_space<vmem>>, vector<16x128xbf16>
    tpu.vector_store %arg17[%67, %c0_28], %66 {strides = array<i32>} : memref<128x128xbf16, #tpu.memory_space<vmem>>, vector<16x128xbf16>,
    %c2_i32 = arith.constant 2 : i32
    %c16_i32_29 = arith.constant 16 : i32
    %69 = arith.muli %c2_i32, %c16_i32_29 : i32
    %70 = tpu.assume_multiple %69, 16 : i32
    %71 = arith.index_cast %70 : i32 to index
    %c0_30 = arith.constant 0 : index
    %72 = vector.load %arg18[%71, %c0_30] : memref<128x512xf32, #tpu.memory_space<vmem>>, vector<16x512xf32>
    %73 = arith.truncf %65 : vector<16x128xf32> to vector<16x128xbf16>
    %c0_31 = arith.constant 0 : index
    %c0_32 = arith.constant 0 : index
    %74 = vector.load %arg5[%c0_31, %c0_32] : memref<128x512xbf16, #tpu.memory_space<vmem>>, vector<128x512xbf16>
    %cst_33 = arith.constant dense<0.000000e+00> : vector<16x512xf32>
    %75 = tpu.matmul %73, %74, %cst_33 {dimension_numbers = #tpu.dot_dimension_numbers<[1], [0], [0], [1], [0, 0, 1, 1], [], []>} : vector<16x128xbf16>, vector<128x512xbf16>, vector<16x512xf32> -> vector<16x512xf32>
    %76 = arith.addf %72, %75 : vector<16x512xf32>
    %77 = vector.extract_strided_slice %76 {offsets = [0, 0], sizes = [16, 384], strides = [1, 1]} : vector<16x512xf32> to vector<16x384xf32>
    %78 = arith.negf %77 : vector<16x384xf32>
    %79 = math.exp %78 : vector<16x384xf32>
    %cst_34 = arith.constant 1.000000e+00 : f32
    %80 = vector.broadcast %cst_34 : f32 to vector<16x384xf32>
    %81 = arith.addf %80, %79 : vector<16x384xf32>
    %82 = arith.divf %80, %81 : vector<16x384xf32>
    %83 = vector.extract_strided_slice %76 {offsets = [0, 384], sizes = [16, 128], strides = [1, 1]} : vector<16x512xf32> to vector<16x128xf32>
    %84 = math.tanh %83 : vector<16x128xf32>
    %85 = vector.extract_strided_slice %82 {offsets = [0, 0], sizes = [16, 128], strides = [1, 1]} : vector<16x384xf32> to vector<16x128xf32>
    %86 = vector.extract_strided_slice %82 {offsets = [0, 128], sizes = [16, 128], strides = [1, 1]} : vector<16x384xf32> to vector<16x128xf32>
    %87 = vector.extract_strided_slice %82 {offsets = [0, 256], sizes = [16, 128], strides = [1, 1]} : vector<16x384xf32> to vector<16x128xf32>
    %88 = arith.mulf %86, %63 : vector<16x128xf32>
    %89 = arith.mulf %85, %84 : vector<16x128xf32>
    %90 = arith.addf %88, %89 : vector<16x128xf32>
    %91 = math.tanh %90 : vector<16x128xf32>
    %92 = arith.mulf %87, %91 : vector<16x128xf32>
    %93 = arith.truncf %92 : vector<16x128xf32> to vector<16x128xbf16>
    %94 = arith.index_cast %70 : i32 to index
    %c0_35 = arith.constant 0 : index
    %95 = vector.load %arg17[%94, %c0_35] : memref<128x128xbf16, #tpu.memory_space<vmem>>, vector<16x128xbf16>
    tpu.vector_store %arg17[%94, %c0_35], %93 {strides = array<i32>} : memref<128x128xbf16, #tpu.memory_space<vmem>>, vector<16x128xbf16>,
    %c3_i32 = arith.constant 3 : i32
    %c16_i32_36 = arith.constant 16 : i32
    %96 = arith.muli %c3_i32, %c16_i32_36 : i32
    %97 = tpu.assume_multiple %96, 16 : i32
    %98 = arith.index_cast %97 : i32 to index
    %c0_37 = arith.constant 0 : index
    %99 = vector.load %arg18[%98, %c0_37] : memref<128x512xf32, #tpu.memory_space<vmem>>, vector<16x512xf32>
    %100 = arith.truncf %92 : vector<16x128xf32> to vector<16x128xbf16>
    %c0_38 = arith.constant 0 : index
    %c0_39 = arith.constant 0 : index
    %101 = vector.load %arg5[%c0_38, %c0_39] : memref<128x512xbf16, #tpu.memory_space<vmem>>, vector<128x512xbf16>
    %cst_40 = arith.constant dense<0.000000e+00> : vector<16x512xf32>
    %102 = tpu.matmul %100, %101, %cst_40 {dimension_numbers = #tpu.dot_dimension_numbers<[1], [0], [0], [1], [0, 0, 1, 1], [], []>} : vector<16x128xbf16>, vector<128x512xbf16>, vector<16x512xf32> -> vector<16x512xf32>
    %103 = arith.addf %99, %102 : vector<16x512xf32>
    %104 = vector.extract_strided_slice %103 {offsets = [0, 0], sizes = [16, 384], strides = [1, 1]} : vector<16x512xf32> to vector<16x384xf32>
    %105 = arith.negf %104 : vector<16x384xf32>
    %106 = math.exp %105 : vector<16x384xf32>
    %cst_41 = arith.constant 1.000000e+00 : f32
    %107 = vector.broadcast %cst_41 : f32 to vector<16x384xf32>
    %108 = arith.addf %107, %106 : vector<16x384xf32>
    %109 = arith.divf %107, %108 : vector<16x384xf32>
    %110 = vector.extract_strided_slice %103 {offsets = [0, 384], sizes = [16, 128], strides = [1, 1]} : vector<16x512xf32> to vector<16x128xf32>
    %111 = math.tanh %110 : vector<16x128xf32>
    %112 = vector.extract_strided_slice %109 {offsets = [0, 0], sizes = [16, 128], strides = [1, 1]} : vector<16x384xf32> to vector<16x128xf32>
    %113 = vector.extract_strided_slice %109 {offsets = [0, 128], sizes = [16, 128], strides = [1, 1]} : vector<16x384xf32> to vector<16x128xf32>
    %114 = vector.extract_strided_slice %109 {offsets = [0, 256], sizes = [16, 128], strides = [1, 1]} : vector<16x384xf32> to vector<16x128xf32>
    %115 = arith.mulf %113, %90 : vector<16x128xf32>
    %116 = arith.mulf %112, %111 : vector<16x128xf32>
    %117 = arith.addf %115, %116 : vector<16x128xf32>
    %118 = math.tanh %117 : vector<16x128xf32>
    %119 = arith.mulf %114, %118 : vector<16x128xf32>
    %120 = arith.truncf %119 : vector<16x128xf32> to vector<16x128xbf16>
    %121 = arith.index_cast %97 : i32 to index
    %c0_42 = arith.constant 0 : index
    %122 = vector.load %arg17[%121, %c0_42] : memref<128x128xbf16, #tpu.memory_space<vmem>>, vector<16x128xbf16>
    tpu.vector_store %arg17[%121, %c0_42], %120 {strides = array<i32>} : memref<128x128xbf16, #tpu.memory_space<vmem>>, vector<16x128xbf16>,
    %c4_i32 = arith.constant 4 : i32
    %c16_i32_43 = arith.constant 16 : i32
    %123 = arith.muli %c4_i32, %c16_i32_43 : i32
    %124 = tpu.assume_multiple %123, 16 : i32
    %125 = arith.index_cast %124 : i32 to index
    %c0_44 = arith.constant 0 : index
    %126 = vector.load %arg18[%125, %c0_44] : memref<128x512xf32, #tpu.memory_space<vmem>>, vector<16x512xf32>
    %127 = arith.truncf %119 : vector<16x128xf32> to vector<16x128xbf16>
    %c0_45 = arith.constant 0 : index
    %c0_46 = arith.constant 0 : index
    %128 = vector.load %arg5[%c0_45, %c0_46] : memref<128x512xbf16, #tpu.memory_space<vmem>>, vector<128x512xbf16>
    %cst_47 = arith.constant dense<0.000000e+00> : vector<16x512xf32>
    %129 = tpu.matmul %127, %128, %cst_47 {dimension_numbers = #tpu.dot_dimension_numbers<[1], [0], [0], [1], [0, 0, 1, 1], [], []>} : vector<16x128xbf16>, vector<128x512xbf16>, vector<16x512xf32> -> vector<16x512xf32>
    %130 = arith.addf %126, %129 : vector<16x512xf32>
    %131 = vector.extract_strided_slice %130 {offsets = [0, 0], sizes = [16, 384], strides = [1, 1]} : vector<16x512xf32> to vector<16x384xf32>
    %132 = arith.negf %131 : vector<16x384xf32>
    %133 = math.exp %132 : vector<16x384xf32>
    %cst_48 = arith.constant 1.000000e+00 : f32
    %134 = vector.broadcast %cst_48 : f32 to vector<16x384xf32>
    %135 = arith.addf %134, %133 : vector<16x384xf32>
    %136 = arith.divf %134, %135 : vector<16x384xf32>
    %137 = vector.extract_strided_slice %130 {offsets = [0, 384], sizes = [16, 128], strides = [1, 1]} : vector<16x512xf32> to vector<16x128xf32>
    %138 = math.tanh %137 : vector<16x128xf32>
    %139 = vector.extract_strided_slice %136 {offsets = [0, 0], sizes = [16, 128], strides = [1, 1]} : vector<16x384xf32> to vector<16x128xf32>
    %140 = vector.extract_strided_slice %136 {offsets = [0, 128], sizes = [16, 128], strides = [1, 1]} : vector<16x384xf32> to vector<16x128xf32>
    %141 = vector.extract_strided_slice %136 {offsets = [0, 256], sizes = [16, 128], strides = [1, 1]} : vector<16x384xf32> to vector<16x128xf32>
    %142 = arith.mulf %140, %117 : vector<16x128xf32>
    %143 = arith.mulf %139, %138 : vector<16x128xf32>
    %144 = arith.addf %142, %143 : vector<16x128xf32>
    %145 = math.tanh %144 : vector<16x128xf32>
    %146 = arith.mulf %141, %145 : vector<16x128xf32>
    %147 = arith.truncf %146 : vector<16x128xf32> to vector<16x128xbf16>
    %148 = arith.index_cast %124 : i32 to index
    %c0_49 = arith.constant 0 : index
    %149 = vector.load %arg17[%148, %c0_49] : memref<128x128xbf16, #tpu.memory_space<vmem>>, vector<16x128xbf16>
    tpu.vector_store %arg17[%148, %c0_49], %147 {strides = array<i32>} : memref<128x128xbf16, #tpu.memory_space<vmem>>, vector<16x128xbf16>,
    %c5_i32 = arith.constant 5 : i32
    %c16_i32_50 = arith.constant 16 : i32
    %150 = arith.muli %c5_i32, %c16_i32_50 : i32
    %151 = tpu.assume_multiple %150, 16 : i32
    %152 = arith.index_cast %151 : i32 to index
    %c0_51 = arith.constant 0 : index
    %153 = vector.load %arg18[%152, %c0_51] : memref<128x512xf32, #tpu.memory_space<vmem>>, vector<16x512xf32>
    %154 = arith.truncf %146 : vector<16x128xf32> to vector<16x128xbf16>
    %c0_52 = arith.constant 0 : index
    %c0_53 = arith.constant 0 : index
    %155 = vector.load %arg5[%c0_52, %c0_53] : memref<128x512xbf16, #tpu.memory_space<vmem>>, vector<128x512xbf16>
    %cst_54 = arith.constant dense<0.000000e+00> : vector<16x512xf32>
    %156 = tpu.matmul %154, %155, %cst_54 {dimension_numbers = #tpu.dot_dimension_numbers<[1], [0], [0], [1], [0, 0, 1, 1], [], []>} : vector<16x128xbf16>, vector<128x512xbf16>, vector<16x512xf32> -> vector<16x512xf32>
    %157 = arith.addf %153, %156 : vector<16x512xf32>
    %158 = vector.extract_strided_slice %157 {offsets = [0, 0], sizes = [16, 384], strides = [1, 1]} : vector<16x512xf32> to vector<16x384xf32>
    %159 = arith.negf %158 : vector<16x384xf32>
    %160 = math.exp %159 : vector<16x384xf32>
    %cst_55 = arith.constant 1.000000e+00 : f32
    %161 = vector.broadcast %cst_55 : f32 to vector<16x384xf32>
    %162 = arith.addf %161, %160 : vector<16x384xf32>
    %163 = arith.divf %161, %162 : vector<16x384xf32>
    %164 = vector.extract_strided_slice %157 {offsets = [0, 384], sizes = [16, 128], strides = [1, 1]} : vector<16x512xf32> to vector<16x128xf32>
    %165 = math.tanh %164 : vector<16x128xf32>
    %166 = vector.extract_strided_slice %163 {offsets = [0, 0], sizes = [16, 128], strides = [1, 1]} : vector<16x384xf32> to vector<16x128xf32>
    %167 = vector.extract_strided_slice %163 {offsets = [0, 128], sizes = [16, 128], strides = [1, 1]} : vector<16x384xf32> to vector<16x128xf32>
    %168 = vector.extract_strided_slice %163 {offsets = [0, 256], sizes = [16, 128], strides = [1, 1]} : vector<16x384xf32> to vector<16x128xf32>
    %169 = arith.mulf %167, %144 : vector<16x128xf32>
    %170 = arith.mulf %166, %165 : vector<16x128xf32>
    %171 = arith.addf %169, %170 : vector<16x128xf32>
    %172 = math.tanh %171 : vector<16x128xf32>
    %173 = arith.mulf %168, %172 : vector<16x128xf32>
    %174 = arith.truncf %173 : vector<16x128xf32> to vector<16x128xbf16>
    %175 = arith.index_cast %151 : i32 to index
    %c0_56 = arith.constant 0 : index
    %176 = vector.load %arg17[%175, %c0_56] : memref<128x128xbf16, #tpu.memory_space<vmem>>, vector<16x128xbf16>
    tpu.vector_store %arg17[%175, %c0_56], %174 {strides = array<i32>} : memref<128x128xbf16, #tpu.memory_space<vmem>>, vector<16x128xbf16>,
    %c6_i32 = arith.constant 6 : i32
    %c16_i32_57 = arith.constant 16 : i32
    %177 = arith.muli %c6_i32, %c16_i32_57 : i32
    %178 = tpu.assume_multiple %177, 16 : i32
    %179 = arith.index_cast %178 : i32 to index
    %c0_58 = arith.constant 0 : index
    %180 = vector.load %arg18[%179, %c0_58] : memref<128x512xf32, #tpu.memory_space<vmem>>, vector<16x512xf32>
    %181 = arith.truncf %173 : vector<16x128xf32> to vector<16x128xbf16>
    %c0_59 = arith.constant 0 : index
    %c0_60 = arith.constant 0 : index
    %182 = vector.load %arg5[%c0_59, %c0_60] : memref<128x512xbf16, #tpu.memory_space<vmem>>, vector<128x512xbf16>
    %cst_61 = arith.constant dense<0.000000e+00> : vector<16x512xf32>
    %183 = tpu.matmul %181, %182, %cst_61 {dimension_numbers = #tpu.dot_dimension_numbers<[1], [0], [0], [1], [0, 0, 1, 1], [], []>} : vector<16x128xbf16>, vector<128x512xbf16>, vector<16x512xf32> -> vector<16x512xf32>
    %184 = arith.addf %180, %183 : vector<16x512xf32>
    %185 = vector.extract_strided_slice %184 {offsets = [0, 0], sizes = [16, 384], strides = [1, 1]} : vector<16x512xf32> to vector<16x384xf32>
    %186 = arith.negf %185 : vector<16x384xf32>
    %187 = math.exp %186 : vector<16x384xf32>
    %cst_62 = arith.constant 1.000000e+00 : f32
    %188 = vector.broadcast %cst_62 : f32 to vector<16x384xf32>
    %189 = arith.addf %188, %187 : vector<16x384xf32>
    %190 = arith.divf %188, %189 : vector<16x384xf32>
    %191 = vector.extract_strided_slice %184 {offsets = [0, 384], sizes = [16, 128], strides = [1, 1]} : vector<16x512xf32> to vector<16x128xf32>
    %192 = math.tanh %191 : vector<16x128xf32>
    %193 = vector.extract_strided_slice %190 {offsets = [0, 0], sizes = [16, 128], strides = [1, 1]} : vector<16x384xf32> to vector<16x128xf32>
    %194 = vector.extract_strided_slice %190 {offsets = [0, 128], sizes = [16, 128], strides = [1, 1]} : vector<16x384xf32> to vector<16x128xf32>
    %195 = vector.extract_strided_slice %190 {offsets = [0, 256], sizes = [16, 128], strides = [1, 1]} : vector<16x384xf32> to vector<16x128xf32>
    %196 = arith.mulf %194, %171 : vector<16x128xf32>
    %197 = arith.mulf %193, %192 : vector<16x128xf32>
    %198 = arith.addf %196, %197 : vector<16x128xf32>
    %199 = math.tanh %198 : vector<16x128xf32>
    %200 = arith.mulf %195, %199 : vector<16x128xf32>
    %201 = arith.truncf %200 : vector<16x128xf32> to vector<16x128xbf16>
    %202 = arith.index_cast %178 : i32 to index
    %c0_63 = arith.constant 0 : index
    %203 = vector.load %arg17[%202, %c0_63] : memref<128x128xbf16, #tpu.memory_space<vmem>>, vector<16x128xbf16>
    tpu.vector_store %arg17[%202, %c0_63], %201 {strides = array<i32>} : memref<128x128xbf16, #tpu.memory_space<vmem>>, vector<16x128xbf16>,
    %c7_i32 = arith.constant 7 : i32
    %c16_i32_64 = arith.constant 16 : i32
    %204 = arith.muli %c7_i32, %c16_i32_64 : i32
    %205 = tpu.assume_multiple %204, 16 : i32
    %206 = arith.index_cast %205 : i32 to index
    %c0_65 = arith.constant 0 : index
    %207 = vector.load %arg18[%206, %c0_65] : memref<128x512xf32, #tpu.memory_space<vmem>>, vector<16x512xf32>
    %208 = arith.truncf %200 : vector<16x128xf32> to vector<16x128xbf16>
    %c0_66 = arith.constant 0 : index
    %c0_67 = arith.constant 0 : index
    %209 = vector.load %arg5[%c0_66, %c0_67] : memref<128x512xbf16, #tpu.memory_space<vmem>>, vector<128x512xbf16>
    %cst_68 = arith.constant dense<0.000000e+00> : vector<16x512xf32>
    %210 = tpu.matmul %208, %209, %cst_68 {dimension_numbers = #tpu.dot_dimension_numbers<[1], [0], [0], [1], [0, 0, 1, 1], [], []>} : vector<16x128xbf16>, vector<128x512xbf16>, vector<16x512xf32> -> vector<16x512xf32>
    %211 = arith.addf %207, %210 : vector<16x512xf32>
    %212 = vector.extract_strided_slice %211 {offsets = [0, 0], sizes = [16, 384], strides = [1, 1]} : vector<16x512xf32> to vector<16x384xf32>
    %213 = arith.negf %212 : vector<16x384xf32>
    %214 = math.exp %213 : vector<16x384xf32>
    %cst_69 = arith.constant 1.000000e+00 : f32
    %215 = vector.broadcast %cst_69 : f32 to vector<16x384xf32>
    %216 = arith.addf %215, %214 : vector<16x384xf32>
    %217 = arith.divf %215, %216 : vector<16x384xf32>
    %218 = vector.extract_strided_slice %211 {offsets = [0, 384], sizes = [16, 128], strides = [1, 1]} : vector<16x512xf32> to vector<16x128xf32>
    %219 = math.tanh %218 : vector<16x128xf32>
    %220 = vector.extract_strided_slice %217 {offsets = [0, 0], sizes = [16, 128], strides = [1, 1]} : vector<16x384xf32> to vector<16x128xf32>
    %221 = vector.extract_strided_slice %217 {offsets = [0, 128], sizes = [16, 128], strides = [1, 1]} : vector<16x384xf32> to vector<16x128xf32>
    %222 = vector.extract_strided_slice %217 {offsets = [0, 256], sizes = [16, 128], strides = [1, 1]} : vector<16x384xf32> to vector<16x128xf32>
    %223 = arith.mulf %221, %198 : vector<16x128xf32>
    %224 = arith.mulf %220, %219 : vector<16x128xf32>
    %225 = arith.addf %223, %224 : vector<16x128xf32>
    %226 = math.tanh %225 : vector<16x128xf32>
    %227 = arith.mulf %222, %226 : vector<16x128xf32>
    %228 = arith.truncf %227 : vector<16x128xf32> to vector<16x128xbf16>
    %229 = arith.index_cast %205 : i32 to index
    %c0_70 = arith.constant 0 : index
    %230 = vector.load %arg17[%229, %c0_70] : memref<128x128xbf16, #tpu.memory_space<vmem>>, vector<16x128xbf16>
    tpu.vector_store %arg17[%229, %c0_70], %228 {strides = array<i32>} : memref<128x128xbf16, #tpu.memory_space<vmem>>, vector<16x128xbf16>,
    %c8_i32 = arith.constant 8 : i32
    %c0_71 = arith.constant 0 : index
    %c0_72 = arith.constant 0 : index
    %c0_73 = arith.constant 0 : index
    %231 = vector.load %arg15[%c0_71, %c0_72, %c0_73] : memref<2x16x128xf32, #tpu.memory_space<vmem>>, vector<1x16x128xf32>
    %232 = vector.shape_cast %231 : vector<1x16x128xf32> to vector<16x128xf32>
    %233 = vector.shape_cast %227 : vector<16x128xf32> to vector<1x16x128xf32>
    tpu.vector_store %arg15[%c0_71, %c0_72, %c0_73], %233 {strides = array<i32>} : memref<2x16x128xf32, #tpu.memory_space<vmem>>, vector<1x16x128xf32>,
    %c0_74 = arith.constant 0 : index
    %c0_75 = arith.constant 0 : index
    %c0_76 = arith.constant 0 : index
    %234 = vector.load %arg16[%c0_74, %c0_75, %c0_76] : memref<2x16x128xf32, #tpu.memory_space<vmem>>, vector<1x16x128xf32>
    %235 = vector.shape_cast %234 : vector<1x16x128xf32> to vector<16x128xf32>
    %236 = vector.shape_cast %225 : vector<16x128xf32> to vector<1x16x128xf32>
    tpu.vector_store %arg16[%c0_74, %c0_75, %c0_76], %236 {strides = array<i32>} : memref<2x16x128xf32, #tpu.memory_space<vmem>>, vector<1x16x128xf32>,
    %c0_77 = arith.constant 0 : index
    %c0_78 = arith.constant 0 : index
    %237 = vector.load %arg17[%c0_77, %c0_78] : memref<128x128xbf16, #tpu.memory_space<vmem>>, vector<128x128xbf16>
    %c0_79 = arith.constant 0 : index
    %c0_80 = arith.constant 0 : index
    %238 = vector.load %arg7[%c0_79, %c0_80] : memref<128x512xbf16, #tpu.memory_space<vmem>>, vector<128x512xbf16>
    %cst_81 = arith.constant dense<0.000000e+00> : vector<128x512xf32>
    %239 = tpu.matmul %237, %238, %cst_81 {dimension_numbers = #tpu.dot_dimension_numbers<[1], [0], [0], [1], [0, 0, 1, 1], [], []>} : vector<128x128xbf16>, vector<128x512xbf16>, vector<128x512xf32> -> vector<128x512xf32>
    %c0_82 = arith.constant 0 : index
    %c0_83 = arith.constant 0 : index
    %240 = vector.load %arg9[%c0_82, %c0_83] : memref<1x512xf32, #tpu.memory_space<vmem>>, vector<1x512xf32>
    %241 = vector.broadcast %240 : vector<1x512xf32> to vector<128x512xf32>
    %242 = arith.addf %239, %241 : vector<128x512xf32>
    %c0_84 = arith.constant 0 : index
    %c0_85 = arith.constant 0 : index
    %243 = vector.load %arg18[%c0_84, %c0_85] : memref<128x512xf32, #tpu.memory_space<vmem>>, vector<128x512xf32>
    tpu.vector_store %arg18[%c0_84, %c0_85], %242 {strides = array<i32>} : memref<128x512xf32, #tpu.memory_space<vmem>>, vector<128x512xf32>,
    %c1 = arith.constant 1 : index
    %c0_86 = arith.constant 0 : index
    %c0_87 = arith.constant 0 : index
    %244 = vector.load %arg15[%c1, %c0_86, %c0_87] : memref<2x16x128xf32, #tpu.memory_space<vmem>>, vector<1x16x128xf32>
    %245 = vector.shape_cast %244 : vector<1x16x128xf32> to vector<16x128xf32>
    %c1_88 = arith.constant 1 : index
    %c0_89 = arith.constant 0 : index
    %c0_90 = arith.constant 0 : index
    %246 = vector.load %arg16[%c1_88, %c0_89, %c0_90] : memref<2x16x128xf32, #tpu.memory_space<vmem>>, vector<1x16x128xf32>
    %247 = vector.shape_cast %246 : vector<1x16x128xf32> to vector<16x128xf32>
    %c0_i32_91 = arith.constant 0 : i32
    %c16_i32_92 = arith.constant 16 : i32
    %248 = arith.muli %c0_i32_91, %c16_i32_92 : i32
    %249 = tpu.assume_multiple %248, 16 : i32
    %250 = arith.index_cast %249 : i32 to index
    %c0_93 = arith.constant 0 : index
    %251 = vector.load %arg18[%250, %c0_93] : memref<128x512xf32, #tpu.memory_space<vmem>>, vector<16x512xf32>
    %252 = arith.truncf %245 : vector<16x128xf32> to vector<16x128xbf16>
    %c0_94 = arith.constant 0 : index
    %c0_95 = arith.constant 0 : index
    %253 = vector.load %arg8[%c0_94, %c0_95] : memref<128x512xbf16, #tpu.memory_space<vmem>>, vector<128x512xbf16>
    %cst_96 = arith.constant dense<0.000000e+00> : vector<16x512xf32>
    %254 = tpu.matmul %252, %253, %cst_96 {dimension_numbers = #tpu.dot_dimension_numbers<[1], [0], [0], [1], [0, 0, 1, 1], [], []>} : vector<16x128xbf16>, vector<128x512xbf16>, vector<16x512xf32> -> vector<16x512xf32>
    %255 = arith.addf %251, %254 : vector<16x512xf32>
    %256 = vector.extract_strided_slice %255 {offsets = [0, 0], sizes = [16, 384], strides = [1, 1]} : vector<16x512xf32> to vector<16x384xf32>
    %257 = arith.negf %256 : vector<16x384xf32>
    %258 = math.exp %257 : vector<16x384xf32>
    %cst_97 = arith.constant 1.000000e+00 : f32
    %259 = vector.broadcast %cst_97 : f32 to vector<16x384xf32>
    %260 = arith.addf %259, %258 : vector<16x384xf32>
    %261 = arith.divf %259, %260 : vector<16x384xf32>
    %262 = vector.extract_strided_slice %255 {offsets = [0, 384], sizes = [16, 128], strides = [1, 1]} : vector<16x512xf32> to vector<16x128xf32>
    %263 = math.tanh %262 : vector<16x128xf32>
    %264 = vector.extract_strided_slice %261 {offsets = [0, 0], sizes = [16, 128], strides = [1, 1]} : vector<16x384xf32> to vector<16x128xf32>
    %265 = vector.extract_strided_slice %261 {offsets = [0, 128], sizes = [16, 128], strides = [1, 1]} : vector<16x384xf32> to vector<16x128xf32>
    %266 = vector.extract_strided_slice %261 {offsets = [0, 256], sizes = [16, 128], strides = [1, 1]} : vector<16x384xf32> to vector<16x128xf32>
    %267 = arith.mulf %265, %247 : vector<16x128xf32>
    %268 = arith.mulf %264, %263 : vector<16x128xf32>
    %269 = arith.addf %267, %268 : vector<16x128xf32>
    %270 = math.tanh %269 : vector<16x128xf32>
    %271 = arith.mulf %266, %270 : vector<16x128xf32>
    %c1_i32_98 = arith.constant 1 : i32
    %c16_i32_99 = arith.constant 16 : i32
    %272 = arith.muli %c1_i32_98, %c16_i32_99 : i32
    %273 = tpu.assume_multiple %272, 16 : i32
    %274 = arith.index_cast %273 : i32 to index
    %c0_100 = arith.constant 0 : index
    %275 = vector.load %arg18[%274, %c0_100] : memref<128x512xf32, #tpu.memory_space<vmem>>, vector<16x512xf32>
    %276 = arith.truncf %271 : vector<16x128xf32> to vector<16x128xbf16>
    %c0_101 = arith.constant 0 : index
    %c0_102 = arith.constant 0 : index
    %277 = vector.load %arg8[%c0_101, %c0_102] : memref<128x512xbf16, #tpu.memory_space<vmem>>, vector<128x512xbf16>
    %cst_103 = arith.constant dense<0.000000e+00> : vector<16x512xf32>
    %278 = tpu.matmul %276, %277, %cst_103 {dimension_numbers = #tpu.dot_dimension_numbers<[1], [0], [0], [1], [0, 0, 1, 1], [], []>} : vector<16x128xbf16>, vector<128x512xbf16>, vector<16x512xf32> -> vector<16x512xf32>
    %279 = arith.addf %275, %278 : vector<16x512xf32>
    %280 = vector.extract_strided_slice %279 {offsets = [0, 0], sizes = [16, 384], strides = [1, 1]} : vector<16x512xf32> to vector<16x384xf32>
    %281 = arith.negf %280 : vector<16x384xf32>
    %282 = math.exp %281 : vector<16x384xf32>
    %cst_104 = arith.constant 1.000000e+00 : f32
    %283 = vector.broadcast %cst_104 : f32 to vector<16x384xf32>
    %284 = arith.addf %283, %282 : vector<16x384xf32>
    %285 = arith.divf %283, %284 : vector<16x384xf32>
    %286 = vector.extract_strided_slice %279 {offsets = [0, 384], sizes = [16, 128], strides = [1, 1]} : vector<16x512xf32> to vector<16x128xf32>
    %287 = math.tanh %286 : vector<16x128xf32>
    %288 = vector.extract_strided_slice %285 {offsets = [0, 0], sizes = [16, 128], strides = [1, 1]} : vector<16x384xf32> to vector<16x128xf32>
    %289 = vector.extract_strided_slice %285 {offsets = [0, 128], sizes = [16, 128], strides = [1, 1]} : vector<16x384xf32> to vector<16x128xf32>
    %290 = vector.extract_strided_slice %285 {offsets = [0, 256], sizes = [16, 128], strides = [1, 1]} : vector<16x384xf32> to vector<16x128xf32>
    %291 = arith.mulf %289, %269 : vector<16x128xf32>
    %292 = arith.mulf %288, %287 : vector<16x128xf32>
    %293 = arith.addf %291, %292 : vector<16x128xf32>
    %294 = math.tanh %293 : vector<16x128xf32>
    %295 = arith.mulf %290, %294 : vector<16x128xf32>
    %c2_i32_105 = arith.constant 2 : i32
    %c16_i32_106 = arith.constant 16 : i32
    %296 = arith.muli %c2_i32_105, %c16_i32_106 : i32
    %297 = tpu.assume_multiple %296, 16 : i32
    %298 = arith.index_cast %297 : i32 to index
    %c0_107 = arith.constant 0 : index
    %299 = vector.load %arg18[%298, %c0_107] : memref<128x512xf32, #tpu.memory_space<vmem>>, vector<16x512xf32>
    %300 = arith.truncf %295 : vector<16x128xf32> to vector<16x128xbf16>
    %c0_108 = arith.constant 0 : index
    %c0_109 = arith.constant 0 : index
    %301 = vector.load %arg8[%c0_108, %c0_109] : memref<128x512xbf16, #tpu.memory_space<vmem>>, vector<128x512xbf16>
    %cst_110 = arith.constant dense<0.000000e+00> : vector<16x512xf32>
    %302 = tpu.matmul %300, %301, %cst_110 {dimension_numbers = #tpu.dot_dimension_numbers<[1], [0], [0], [1], [0, 0, 1, 1], [], []>} : vector<16x128xbf16>, vector<128x512xbf16>, vector<16x512xf32> -> vector<16x512xf32>
    %303 = arith.addf %299, %302 : vector<16x512xf32>
    %304 = vector.extract_strided_slice %303 {offsets = [0, 0], sizes = [16, 384], strides = [1, 1]} : vector<16x512xf32> to vector<16x384xf32>
    %305 = arith.negf %304 : vector<16x384xf32>
    %306 = math.exp %305 : vector<16x384xf32>
    %cst_111 = arith.constant 1.000000e+00 : f32
    %307 = vector.broadcast %cst_111 : f32 to vector<16x384xf32>
    %308 = arith.addf %307, %306 : vector<16x384xf32>
    %309 = arith.divf %307, %308 : vector<16x384xf32>
    %310 = vector.extract_strided_slice %303 {offsets = [0, 384], sizes = [16, 128], strides = [1, 1]} : vector<16x512xf32> to vector<16x128xf32>
    %311 = math.tanh %310 : vector<16x128xf32>
    %312 = vector.extract_strided_slice %309 {offsets = [0, 0], sizes = [16, 128], strides = [1, 1]} : vector<16x384xf32> to vector<16x128xf32>
    %313 = vector.extract_strided_slice %309 {offsets = [0, 128], sizes = [16, 128], strides = [1, 1]} : vector<16x384xf32> to vector<16x128xf32>
    %314 = vector.extract_strided_slice %309 {offsets = [0, 256], sizes = [16, 128], strides = [1, 1]} : vector<16x384xf32> to vector<16x128xf32>
    %315 = arith.mulf %313, %293 : vector<16x128xf32>
    %316 = arith.mulf %312, %311 : vector<16x128xf32>
    %317 = arith.addf %315, %316 : vector<16x128xf32>
    %318 = math.tanh %317 : vector<16x128xf32>
    %319 = arith.mulf %314, %318 : vector<16x128xf32>
    %c3_i32_112 = arith.constant 3 : i32
    %c16_i32_113 = arith.constant 16 : i32
    %320 = arith.muli %c3_i32_112, %c16_i32_113 : i32
    %321 = tpu.assume_multiple %320, 16 : i32
    %322 = arith.index_cast %321 : i32 to index
    %c0_114 = arith.constant 0 : index
    %323 = vector.load %arg18[%322, %c0_114] : memref<128x512xf32, #tpu.memory_space<vmem>>, vector<16x512xf32>
    %324 = arith.truncf %319 : vector<16x128xf32> to vector<16x128xbf16>
    %c0_115 = arith.constant 0 : index
    %c0_116 = arith.constant 0 : index
    %325 = vector.load %arg8[%c0_115, %c0_116] : memref<128x512xbf16, #tpu.memory_space<vmem>>, vector<128x512xbf16>
    %cst_117 = arith.constant dense<0.000000e+00> : vector<16x512xf32>
    %326 = tpu.matmul %324, %325, %cst_117 {dimension_numbers = #tpu.dot_dimension_numbers<[1], [0], [0], [1], [0, 0, 1, 1], [], []>} : vector<16x128xbf16>, vector<128x512xbf16>, vector<16x512xf32> -> vector<16x512xf32>
    %327 = arith.addf %323, %326 : vector<16x512xf32>
    %328 = vector.extract_strided_slice %327 {offsets = [0, 0], sizes = [16, 384], strides = [1, 1]} : vector<16x512xf32> to vector<16x384xf32>
    %329 = arith.negf %328 : vector<16x384xf32>
    %330 = math.exp %329 : vector<16x384xf32>
    %cst_118 = arith.constant 1.000000e+00 : f32
    %331 = vector.broadcast %cst_118 : f32 to vector<16x384xf32>
    %332 = arith.addf %331, %330 : vector<16x384xf32>
    %333 = arith.divf %331, %332 : vector<16x384xf32>
    %334 = vector.extract_strided_slice %327 {offsets = [0, 384], sizes = [16, 128], strides = [1, 1]} : vector<16x512xf32> to vector<16x128xf32>
    %335 = math.tanh %334 : vector<16x128xf32>
    %336 = vector.extract_strided_slice %333 {offsets = [0, 0], sizes = [16, 128], strides = [1, 1]} : vector<16x384xf32> to vector<16x128xf32>
    %337 = vector.extract_strided_slice %333 {offsets = [0, 128], sizes = [16, 128], strides = [1, 1]} : vector<16x384xf32> to vector<16x128xf32>
    %338 = vector.extract_strided_slice %333 {offsets = [0, 256], sizes = [16, 128], strides = [1, 1]} : vector<16x384xf32> to vector<16x128xf32>
    %339 = arith.mulf %337, %317 : vector<16x128xf32>
    %340 = arith.mulf %336, %335 : vector<16x128xf32>
    %341 = arith.addf %339, %340 : vector<16x128xf32>
    %342 = math.tanh %341 : vector<16x128xf32>
    %343 = arith.mulf %338, %342 : vector<16x128xf32>
    %c4_i32_119 = arith.constant 4 : i32
    %c16_i32_120 = arith.constant 16 : i32
    %344 = arith.muli %c4_i32_119, %c16_i32_120 : i32
    %345 = tpu.assume_multiple %344, 16 : i32
    %346 = arith.index_cast %345 : i32 to index
    %c0_121 = arith.constant 0 : index
    %347 = vector.load %arg18[%346, %c0_121] : memref<128x512xf32, #tpu.memory_space<vmem>>, vector<16x512xf32>
    %348 = arith.truncf %343 : vector<16x128xf32> to vector<16x128xbf16>
    %c0_122 = arith.constant 0 : index
    %c0_123 = arith.constant 0 : index
    %349 = vector.load %arg8[%c0_122, %c0_123] : memref<128x512xbf16, #tpu.memory_space<vmem>>, vector<128x512xbf16>
    %cst_124 = arith.constant dense<0.000000e+00> : vector<16x512xf32>
    %350 = tpu.matmul %348, %349, %cst_124 {dimension_numbers = #tpu.dot_dimension_numbers<[1], [0], [0], [1], [0, 0, 1, 1], [], []>} : vector<16x128xbf16>, vector<128x512xbf16>, vector<16x512xf32> -> vector<16x512xf32>
    %351 = arith.addf %347, %350 : vector<16x512xf32>
    %352 = vector.extract_strided_slice %351 {offsets = [0, 0], sizes = [16, 384], strides = [1, 1]} : vector<16x512xf32> to vector<16x384xf32>
    %353 = arith.negf %352 : vector<16x384xf32>
    %354 = math.exp %353 : vector<16x384xf32>
    %cst_125 = arith.constant 1.000000e+00 : f32
    %355 = vector.broadcast %cst_125 : f32 to vector<16x384xf32>
    %356 = arith.addf %355, %354 : vector<16x384xf32>
    %357 = arith.divf %355, %356 : vector<16x384xf32>
    %358 = vector.extract_strided_slice %351 {offsets = [0, 384], sizes = [16, 128], strides = [1, 1]} : vector<16x512xf32> to vector<16x128xf32>
    %359 = math.tanh %358 : vector<16x128xf32>
    %360 = vector.extract_strided_slice %357 {offsets = [0, 0], sizes = [16, 128], strides = [1, 1]} : vector<16x384xf32> to vector<16x128xf32>
    %361 = vector.extract_strided_slice %357 {offsets = [0, 128], sizes = [16, 128], strides = [1, 1]} : vector<16x384xf32> to vector<16x128xf32>
    %362 = vector.extract_strided_slice %357 {offsets = [0, 256], sizes = [16, 128], strides = [1, 1]} : vector<16x384xf32> to vector<16x128xf32>
    %363 = arith.mulf %361, %341 : vector<16x128xf32>
    %364 = arith.mulf %360, %359 : vector<16x128xf32>
    %365 = arith.addf %363, %364 : vector<16x128xf32>
    %366 = math.tanh %365 : vector<16x128xf32>
    %367 = arith.mulf %362, %366 : vector<16x128xf32>
    %c5_i32_126 = arith.constant 5 : i32
    %c16_i32_127 = arith.constant 16 : i32
    %368 = arith.muli %c5_i32_126, %c16_i32_127 : i32
    %369 = tpu.assume_multiple %368, 16 : i32
    %370 = arith.index_cast %369 : i32 to index
    %c0_128 = arith.constant 0 : index
    %371 = vector.load %arg18[%370, %c0_128] : memref<128x512xf32, #tpu.memory_space<vmem>>, vector<16x512xf32>
    %372 = arith.truncf %367 : vector<16x128xf32> to vector<16x128xbf16>
    %c0_129 = arith.constant 0 : index
    %c0_130 = arith.constant 0 : index
    %373 = vector.load %arg8[%c0_129, %c0_130] : memref<128x512xbf16, #tpu.memory_space<vmem>>, vector<128x512xbf16>
    %cst_131 = arith.constant dense<0.000000e+00> : vector<16x512xf32>
    %374 = tpu.matmul %372, %373, %cst_131 {dimension_numbers = #tpu.dot_dimension_numbers<[1], [0], [0], [1], [0, 0, 1, 1], [], []>} : vector<16x128xbf16>, vector<128x512xbf16>, vector<16x512xf32> -> vector<16x512xf32>
    %375 = arith.addf %371, %374 : vector<16x512xf32>
    %376 = vector.extract_strided_slice %375 {offsets = [0, 0], sizes = [16, 384], strides = [1, 1]} : vector<16x512xf32> to vector<16x384xf32>
    %377 = arith.negf %376 : vector<16x384xf32>
    %378 = math.exp %377 : vector<16x384xf32>
    %cst_132 = arith.constant 1.000000e+00 : f32
    %379 = vector.broadcast %cst_132 : f32 to vector<16x384xf32>
    %380 = arith.addf %379, %378 : vector<16x384xf32>
    %381 = arith.divf %379, %380 : vector<16x384xf32>
    %382 = vector.extract_strided_slice %375 {offsets = [0, 384], sizes = [16, 128], strides = [1, 1]} : vector<16x512xf32> to vector<16x128xf32>
    %383 = math.tanh %382 : vector<16x128xf32>
    %384 = vector.extract_strided_slice %381 {offsets = [0, 0], sizes = [16, 128], strides = [1, 1]} : vector<16x384xf32> to vector<16x128xf32>
    %385 = vector.extract_strided_slice %381 {offsets = [0, 128], sizes = [16, 128], strides = [1, 1]} : vector<16x384xf32> to vector<16x128xf32>
    %386 = vector.extract_strided_slice %381 {offsets = [0, 256], sizes = [16, 128], strides = [1, 1]} : vector<16x384xf32> to vector<16x128xf32>
    %387 = arith.mulf %385, %365 : vector<16x128xf32>
    %388 = arith.mulf %384, %383 : vector<16x128xf32>
    %389 = arith.addf %387, %388 : vector<16x128xf32>
    %390 = math.tanh %389 : vector<16x128xf32>
    %391 = arith.mulf %386, %390 : vector<16x128xf32>
    %c6_i32_133 = arith.constant 6 : i32
    %c16_i32_134 = arith.constant 16 : i32
    %392 = arith.muli %c6_i32_133, %c16_i32_134 : i32
    %393 = tpu.assume_multiple %392, 16 : i32
    %394 = arith.index_cast %393 : i32 to index
    %c0_135 = arith.constant 0 : index
    %395 = vector.load %arg18[%394, %c0_135] : memref<128x512xf32, #tpu.memory_space<vmem>>, vector<16x512xf32>
    %396 = arith.truncf %391 : vector<16x128xf32> to vector<16x128xbf16>
    %c0_136 = arith.constant 0 : index
    %c0_137 = arith.constant 0 : index
    %397 = vector.load %arg8[%c0_136, %c0_137] : memref<128x512xbf16, #tpu.memory_space<vmem>>, vector<128x512xbf16>
    %cst_138 = arith.constant dense<0.000000e+00> : vector<16x512xf32>
    %398 = tpu.matmul %396, %397, %cst_138 {dimension_numbers = #tpu.dot_dimension_numbers<[1], [0], [0], [1], [0, 0, 1, 1], [], []>} : vector<16x128xbf16>, vector<128x512xbf16>, vector<16x512xf32> -> vector<16x512xf32>
    %399 = arith.addf %395, %398 : vector<16x512xf32>
    %400 = vector.extract_strided_slice %399 {offsets = [0, 0], sizes = [16, 384], strides = [1, 1]} : vector<16x512xf32> to vector<16x384xf32>
    %401 = arith.negf %400 : vector<16x384xf32>
    %402 = math.exp %401 : vector<16x384xf32>
    %cst_139 = arith.constant 1.000000e+00 : f32
    %403 = vector.broadcast %cst_139 : f32 to vector<16x384xf32>
    %404 = arith.addf %403, %402 : vector<16x384xf32>
    %405 = arith.divf %403, %404 : vector<16x384xf32>
    %406 = vector.extract_strided_slice %399 {offsets = [0, 384], sizes = [16, 128], strides = [1, 1]} : vector<16x512xf32> to vector<16x128xf32>
    %407 = math.tanh %406 : vector<16x128xf32>
    %408 = vector.extract_strided_slice %405 {offsets = [0, 0], sizes = [16, 128], strides = [1, 1]} : vector<16x384xf32> to vector<16x128xf32>
    %409 = vector.extract_strided_slice %405 {offsets = [0, 128], sizes = [16, 128], strides = [1, 1]} : vector<16x384xf32> to vector<16x128xf32>
    %410 = vector.extract_strided_slice %405 {offsets = [0, 256], sizes = [16, 128], strides = [1, 1]} : vector<16x384xf32> to vector<16x128xf32>
    %411 = arith.mulf %409, %389 : vector<16x128xf32>
    %412 = arith.mulf %408, %407 : vector<16x128xf32>
    %413 = arith.addf %411, %412 : vector<16x128xf32>
    %414 = math.tanh %413 : vector<16x128xf32>
    %415 = arith.mulf %410, %414 : vector<16x128xf32>
    %c7_i32_140 = arith.constant 7 : i32
    %c16_i32_141 = arith.constant 16 : i32
    %416 = arith.muli %c7_i32_140, %c16_i32_141 : i32
    %417 = tpu.assume_multiple %416, 16 : i32
    %418 = arith.index_cast %417 : i32 to index
    %c0_142 = arith.constant 0 : index
    %419 = vector.load %arg18[%418, %c0_142] : memref<128x512xf32, #tpu.memory_space<vmem>>, vector<16x512xf32>
    %420 = arith.truncf %415 : vector<16x128xf32> to vector<16x128xbf16>
    %c0_143 = arith.constant 0 : index
    %c0_144 = arith.constant 0 : index
    %421 = vector.load %arg8[%c0_143, %c0_144] : memref<128x512xbf16, #tpu.memory_space<vmem>>, vector<128x512xbf16>
    %cst_145 = arith.constant dense<0.000000e+00> : vector<16x512xf32>
    %422 = tpu.matmul %420, %421, %cst_145 {dimension_numbers = #tpu.dot_dimension_numbers<[1], [0], [0], [1], [0, 0, 1, 1], [], []>} : vector<16x128xbf16>, vector<128x512xbf16>, vector<16x512xf32> -> vector<16x512xf32>
    %423 = arith.addf %419, %422 : vector<16x512xf32>
    %424 = vector.extract_strided_slice %423 {offsets = [0, 0], sizes = [16, 384], strides = [1, 1]} : vector<16x512xf32> to vector<16x384xf32>
    %425 = arith.negf %424 : vector<16x384xf32>
    %426 = math.exp %425 : vector<16x384xf32>
    %cst_146 = arith.constant 1.000000e+00 : f32
    %427 = vector.broadcast %cst_146 : f32 to vector<16x384xf32>
    %428 = arith.addf %427, %426 : vector<16x384xf32>
    %429 = arith.divf %427, %428 : vector<16x384xf32>
    %430 = vector.extract_strided_slice %423 {offsets = [0, 384], sizes = [16, 128], strides = [1, 1]} : vector<16x512xf32> to vector<16x128xf32>
    %431 = math.tanh %430 : vector<16x128xf32>
    %432 = vector.extract_strided_slice %429 {offsets = [0, 0], sizes = [16, 128], strides = [1, 1]} : vector<16x384xf32> to vector<16x128xf32>
    %433 = vector.extract_strided_slice %429 {offsets = [0, 128], sizes = [16, 128], strides = [1, 1]} : vector<16x384xf32> to vector<16x128xf32>
    %434 = vector.extract_strided_slice %429 {offsets = [0, 256], sizes = [16, 128], strides = [1, 1]} : vector<16x384xf32> to vector<16x128xf32>
    %435 = arith.mulf %433, %413 : vector<16x128xf32>
    %436 = arith.mulf %432, %431 : vector<16x128xf32>
    %437 = arith.addf %435, %436 : vector<16x128xf32>
    %438 = math.tanh %437 : vector<16x128xf32>
    %439 = arith.mulf %434, %438 : vector<16x128xf32>
    %c8_i32_147 = arith.constant 8 : i32
    %c1_148 = arith.constant 1 : index
    %c0_149 = arith.constant 0 : index
    %c0_150 = arith.constant 0 : index
    %440 = vector.load %arg15[%c1_148, %c0_149, %c0_150] : memref<2x16x128xf32, #tpu.memory_space<vmem>>, vector<1x16x128xf32>
    %441 = vector.shape_cast %440 : vector<1x16x128xf32> to vector<16x128xf32>
    %442 = vector.shape_cast %439 : vector<16x128xf32> to vector<1x16x128xf32>
    tpu.vector_store %arg15[%c1_148, %c0_149, %c0_150], %442 {strides = array<i32>} : memref<2x16x128xf32, #tpu.memory_space<vmem>>, vector<1x16x128xf32>,
    %c1_151 = arith.constant 1 : index
    %c0_152 = arith.constant 0 : index
    %c0_153 = arith.constant 0 : index
    %443 = vector.load %arg16[%c1_151, %c0_152, %c0_153] : memref<2x16x128xf32, #tpu.memory_space<vmem>>, vector<1x16x128xf32>
    %444 = vector.shape_cast %443 : vector<1x16x128xf32> to vector<16x128xf32>
    %445 = vector.shape_cast %437 : vector<16x128xf32> to vector<1x16x128xf32>
    tpu.vector_store %arg16[%c1_151, %c0_152, %c0_153], %445 {strides = array<i32>} : memref<2x16x128xf32, #tpu.memory_space<vmem>>, vector<1x16x128xf32>,
    %c0_i32_154 = arith.constant 0 : i32
    %446 = arith.cmpi eq, %arg0, %c0_i32_154 : i32
    %447 = arith.extui %446 : i1 to i32
    %c0_i32_155 = arith.constant 0 : i32
    %448 = arith.cmpi ne, %447, %c0_i32_155 : i32
    scf.if %448 {
      %c0_156 = arith.constant 0 : index
      %c0_157 = arith.constant 0 : index
      %c0_158 = arith.constant 0 : index
      %449 = vector.load %arg15[%c0_156, %c0_157, %c0_158] : memref<2x16x128xf32, #tpu.memory_space<vmem>>, vector<2x16x128xf32>
      %c0_159 = arith.constant 0 : index
      %c0_160 = arith.constant 0 : index
      %c0_161 = arith.constant 0 : index
      %450 = vector.load %arg13[%c0_159, %c0_160, %c0_161] : memref<2x16x128xf32, #tpu.memory_space<vmem>>, vector<2x16x128xf32>
      tpu.vector_store %arg13[%c0_159, %c0_160, %c0_161], %449 {strides = array<i32>} : memref<2x16x128xf32, #tpu.memory_space<vmem>>, vector<2x16x128xf32>,
      %c0_162 = arith.constant 0 : index
      %c0_163 = arith.constant 0 : index
      %c0_164 = arith.constant 0 : index
      %451 = vector.load %arg16[%c0_162, %c0_163, %c0_164] : memref<2x16x128xf32, #tpu.memory_space<vmem>>, vector<2x16x128xf32>
      %c0_165 = arith.constant 0 : index
      %c0_166 = arith.constant 0 : index
      %c0_167 = arith.constant 0 : index
      %452 = vector.load %arg14[%c0_165, %c0_166, %c0_167] : memref<2x16x128xf32, #tpu.memory_space<vmem>>, vector<2x16x128xf32>
      tpu.vector_store %arg14[%c0_165, %c0_166, %c0_167], %451 {strides = array<i32>} : memref<2x16x128xf32, #tpu.memory_space<vmem>>, vector<2x16x128xf32>,
      %c1_168 = arith.constant 1 : index
      %c0_169 = arith.constant 0 : index
      %c0_170 = arith.constant 0 : index
      %453 = vector.load %arg15[%c1_168, %c0_169, %c0_170] : memref<2x16x128xf32, #tpu.memory_space<vmem>>, vector<1x16x128xf32>
      %454 = vector.shape_cast %453 : vector<1x16x128xf32> to vector<16x128xf32>
      %455 = arith.truncf %454 : vector<16x128xf32> to vector<16x128xbf16>
      %c0_171 = arith.constant 0 : index
      %c0_172 = arith.constant 0 : index
      %456 = vector.load %arg10[%c0_171, %c0_172] : memref<128x128xbf16, #tpu.memory_space<vmem>>, vector<128x128xbf16>
      %cst_173 = arith.constant dense<0.000000e+00> : vector<16x128xf32>
      %457 = tpu.matmul %455, %456, %cst_173 {dimension_numbers = #tpu.dot_dimension_numbers<[1], [0], [0], [1], [0, 0, 1, 1], [], []>} : vector<16x128xbf16>, vector<128x128xbf16>, vector<16x128xf32> -> vector<16x128xf32>
      %c0_174 = arith.constant 0 : index
      %c0_175 = arith.constant 0 : index
      %458 = vector.load %arg11[%c0_174, %c0_175] : memref<1x128xf32, #tpu.memory_space<vmem>>, vector<1x128xf32>
      %459 = vector.broadcast %458 : vector<1x128xf32> to vector<16x128xf32>
      %460 = arith.addf %457, %459 : vector<16x128xf32>
      %c0_176 = arith.constant 0 : index
      %c0_177 = arith.constant 0 : index
      %461 = vector.load %arg12[%c0_176, %c0_177] : memref<16x128xf32, #tpu.memory_space<vmem>>, vector<16x128xf32>
      tpu.vector_store %arg12[%c0_176, %c0_177], %460 {strides = array<i32>} : memref<16x128xf32, #tpu.memory_space<vmem>>, vector<16x128xf32>,
    } else {
    }
    return
  }
  func.func @transform_0(%arg0: i32) -> (i32, i32, i32) {
    %c0_i32 = arith.constant 0 : i32
    %c0_i32_0 = arith.constant 0 : i32
    %c0_i32_1 = arith.constant 0 : i32
    return %arg0, %c0_i32, %c0_i32_0 : i32, i32, i32
  }
  func.func @transform_1(%arg0: i32) -> (i32, i32, i32) {
    %c0_i32 = arith.constant 0 : i32
    %c0_i32_0 = arith.constant 0 : i32
    %c0_i32_1 = arith.constant 0 : i32
    %c0_i32_2 = arith.constant 0 : i32
    return %c0_i32, %c0_i32_0, %c0_i32_1 : i32, i32, i32
  }
  func.func @transform_2(%arg0: i32) -> (i32, i32, i32) {
    %c0_i32 = arith.constant 0 : i32
    %c0_i32_0 = arith.constant 0 : i32
    %c0_i32_1 = arith.constant 0 : i32
    %c0_i32_2 = arith.constant 0 : i32
    return %c0_i32, %c0_i32_0, %c0_i32_1 : i32, i32, i32
  }
  func.func @transform_3(%arg0: i32) -> (i32, i32) {
    %c0_i32 = arith.constant 0 : i32
    %c0_i32_0 = arith.constant 0 : i32
    %c0_i32_1 = arith.constant 0 : i32
    return %c0_i32, %c0_i32_0 : i32, i32
  }
  func.func @transform_4(%arg0: i32) -> (i32, i32) {
    %c0_i32 = arith.constant 0 : i32
    %c0_i32_0 = arith.constant 0 : i32
    %c0_i32_1 = arith.constant 0 : i32
    return %c0_i32, %c0_i32_0 : i32, i32
  }
  func.func @transform_5(%arg0: i32) -> (i32, i32) {
    %c0_i32 = arith.constant 0 : i32
    %c0_i32_0 = arith.constant 0 : i32
    %c0_i32_1 = arith.constant 0 : i32
    return %c0_i32, %c0_i32_0 : i32, i32
  }
  func.func @transform_6(%arg0: i32) -> (i32, i32) {
    %c0_i32 = arith.constant 0 : i32
    %c0_i32_0 = arith.constant 0 : i32
    %c0_i32_1 = arith.constant 0 : i32
    return %c0_i32, %c0_i32_0 : i32, i32
  }
  func.func @transform_7(%arg0: i32) -> (i32, i32) {
    %c0_i32 = arith.constant 0 : i32
    %c0_i32_0 = arith.constant 0 : i32
    %c0_i32_1 = arith.constant 0 : i32
    return %c0_i32, %c0_i32_0 : i32, i32
  }
  func.func @transform_8(%arg0: i32) -> (i32, i32) {
    %c0_i32 = arith.constant 0 : i32
    %c0_i32_0 = arith.constant 0 : i32
    %c0_i32_1 = arith.constant 0 : i32
    return %c0_i32, %c0_i32_0 : i32, i32
  }
  func.func @transform_9(%arg0: i32) -> (i32, i32) {
    %c0_i32 = arith.constant 0 : i32
    %c0_i32_0 = arith.constant 0 : i32
    %c0_i32_1 = arith.constant 0 : i32
    return %c0_i32, %c0_i32_0 : i32, i32
  }
  func.func @transform_10(%arg0: i32) -> (i32, i32) {
    %c0_i32 = arith.constant 0 : i32
    %c0_i32_0 = arith.constant 0 : i32
    %c0_i32_1 = arith.constant 0 : i32
    return %c0_i32, %c0_i32_0 : i32, i32
  }
  func.func @transform_11(%arg0: i32) -> (i32, i32) {
    %c0_i32 = arith.constant 0 : i32
    %c0_i32_0 = arith.constant 0 : i32
    %c0_i32_1 = arith.constant 0 : i32
    return %c0_i32, %c0_i32_0 : i32, i32
  }
  func.func @transform_12(%arg0: i32) -> (i32, i32, i32) {
    %c0_i32 = arith.constant 0 : i32
    %c0_i32_0 = arith.constant 0 : i32
    %c0_i32_1 = arith.constant 0 : i32
    %c0_i32_2 = arith.constant 0 : i32
    return %c0_i32, %c0_i32_0, %c0_i32_1 : i32, i32, i32
  }
  func.func @transform_13(%arg0: i32) -> (i32, i32, i32) {
    %c0_i32 = arith.constant 0 : i32
    %c0_i32_0 = arith.constant 0 : i32
    %c0_i32_1 = arith.constant 0 : i32
    %c0_i32_2 = arith.constant 0 : i32
    return %c0_i32, %c0_i32_0, %c0_i32_1 : i32, i32, i32
  }
}

</mosaic_0001>

<bundles_post_ra>
// kernel: a_call__.1
= control target key start
LH: loop header
LB: loop body
LE: loop exit
PB: predicated region body
PF: predicated region fallthrough
CT: control target
= control target key end

     0   :  { %v7061_v1 = vmov 0   ;;  %vm7063_vm0 = vmmov 0   ;;  %s8985_s3 = inlined_call_operand.vmem [shape: bf16[128,512], index: 3, kind: input, shape index: {}]   ;;  %s8986_s0 = inlined_call_operand.vmem [shape: bf16[1,128,128], index: 0, kind: input, shape index: {}]   ;;  %s8987_s4 = inlined_call_operand.vmem [shape: bf16[128,512], index: 4, kind: input, shape index: {}]   ;;  %s8988_s1 = inlined_call_operand.vmem [shape: f32[2,16,128], index: 1, kind: input, shape index: {}]   ;;  %s8989_s5 = inlined_call_operand.vmem [shape: f32[1,512], index: 5, kind: input, shape index: {}]   ;;  %s8990_s2 = inlined_call_operand.vmem [shape: f32[2,16,128], index: 2, kind: input, shape index: {}]   ;;  %s8991_s6 = inlined_call_operand.vmem [shape: bf16[128,512], index: 6, kind: input, shape index: {}]   ;;  %s8992_s7 = inlined_call_operand.vmem [shape: bf16[128,512], index: 7, kind: input, shape index: {}]   ;;  %s8993_s13 = inlined_call_operand.vmem [shape: f32[2,16,128], index: 13, kind: output, shape index: {2}]   ;;  %s8994_s12 = inlined_call_operand.vmem [shape: f32[2,16,128], index: 12, kind: output, shape index: {1}]   ;;  %s8995_s8 = inlined_call_operand.vmem [shape: f32[1,512], index: 8, kind: input, shape index: {}]   ;;  %s8996_s9 = inlined_call_operand.vmem [shape: bf16[128,128], index: 9, kind: input, shape index: {}]   ;;  %s8997_s10 = inlined_call_operand.vmem [shape: f32[1,128], index: 10, kind: input, shape index: {}]   ;;  %s8998_s11 = inlined_call_operand.vmem [shape: f32[16,128], index: 11, kind: output, shape index: {0}]  }
   0x1   :  { %v6252_v0 = vld [vmem:[%s8985_s3 + $0x4] ss:$16 sps:$4 sm:$0xff]   ;;  %372 = vmatprep.mubr.bf16.mxu0 %v7061_v1  ;;  %485 = vmatprep.mubr.bf16.mxu1 %v7061_v1  ;;  %v6254_v2 = vld [vmem:[%s8985_s3 + $0xc] ss:$16 sps:$4 sm:$0xff]   ;;  %v6256_v3 = vld [vmem:[%s8985_s3] ss:$16 sps:$4 sm:$0xff]  }
   0x2   :  { %340 = vmatprep.subr.bf16.mxu0 %v6252_v0  ;;  %v6257_v4 = vld [vmem:[%s8985_s3 + $0x8] ss:$16 sps:$4 sm:$0xff]   ;;  %453 = vmatprep.subr.bf16.mxu1 %v6254_v2  ;;  %v6258_v5 = vld [vmem:[%s8985_s3 + $0x24] ss:$16 sps:$4 sm:$0xff]   ;;  %v6260_v6 = vld [vmem:[%s8985_s3 + $0x2c] ss:$16 sps:$4 sm:$0xff]  }
   0x3   :  { %341 = vmatpush1.bf16.msra.mxu0 %v6256_v3  ;;  %454 = vmatpush1.bf16.msra.mxu1 %v6257_v4  ;;  %v6262_v7 = vld [vmem:[%s8985_s3 + $0x20] ss:$16 sps:$4 sm:$0xff]   ;;  %v6263_v8 = vld [vmem:[%s8985_s3 + $0x28] ss:$16 sps:$4 sm:$0xff]   ;;  %v6264_v9 = vld [vmem:[%s8985_s3 + $0x44] ss:$16 sps:$4 sm:$0xff]  }
   0x4   :  { %342 = vmatprep.subr.bf16.mxu0 %v6258_v5  ;;  %455 = vmatprep.subr.bf16.mxu1 %v6260_v6  ;;  %v6266_v10 = vld [vmem:[%s8985_s3 + $0x4c] ss:$16 sps:$4 sm:$0xff]   ;;  %v6268_v11 = vld [vmem:[%s8985_s3 + $0x40] ss:$16 sps:$4 sm:$0xff]   ;;  %v6269_v12 = vld [vmem:[%s8985_s3 + $0x48] ss:$16 sps:$4 sm:$0xff]  }
   0x5   :  { %v6270_v13 = vld [vmem:[%s8985_s3 + $0x64] ss:$16 sps:$4 sm:$0xff]   ;;  %v6272_v14 = vld [vmem:[%s8985_s3 + $0x6c] ss:$16 sps:$4 sm:$0xff]   ;;  %v6274_v15 = vld [vmem:[%s8985_s3 + $0x60] ss:$16 sps:$4 sm:$0xff]  }
   0x6   :  { %v6275_v16 = vld [vmem:[%s8985_s3 + $0x68] ss:$16 sps:$4 sm:$0xff]   ;;  %v6276_v17 = vld [vmem:[%s8985_s3 + $0x84] ss:$16 sps:$4 sm:$0xff]   ;;  %v6278_v18 = vld [vmem:[%s8985_s3 + $0x8c] ss:$16 sps:$4 sm:$0xff]  }
   0x7   :  { %343 = vmatpush1.bf16.msra.mxu0 %v6262_v7  ;;  %456 = vmatpush1.bf16.msra.mxu1 %v6263_v8  ;;  %v6280_v19 = vld [vmem:[%s8985_s3 + $0x80] ss:$16 sps:$4 sm:$0xff]   ;;  %v6281_v20 = vld [vmem:[%s8985_s3 + $0x88] ss:$16 sps:$4 sm:$0xff]   ;;  %v6282_v21 = vld [vmem:[%s8985_s3 + $0xa4] ss:$16 sps:$4 sm:$0xff]  }
   0x8   :  { %344 = vmatprep.subr.bf16.mxu0 %v6264_v9  ;;  %457 = vmatprep.subr.bf16.mxu1 %v6266_v10  ;;  %v6284_v22 = vld [vmem:[%s8985_s3 + $0xac] ss:$16 sps:$4 sm:$0xff]   ;;  %v6286_v23 = vld [vmem:[%s8985_s3 + $0xa0] ss:$16 sps:$4 sm:$0xff]   ;;  %v6287_v24 = vld [vmem:[%s8985_s3 + $0xa8] ss:$16 sps:$4 sm:$0xff]  }
   0x9   :  { %v6288_v25 = vld [vmem:[%s8985_s3 + $0xc4] ss:$16 sps:$4 sm:$0xff]   ;;  %v6290_v26 = vld [vmem:[%s8985_s3 + $0xcc] ss:$16 sps:$4 sm:$0xff]   ;;  %v6292_v27 = vld [vmem:[%s8985_s3 + $0xc0] ss:$16 sps:$4 sm:$0xff]  }
   0xa   :  { %v6293_v28 = vld [vmem:[%s8985_s3 + $0xc8] ss:$16 sps:$4 sm:$0xff]   ;;  %v6294_v29 = vld [vmem:[%s8985_s3 + $0xe4] ss:$16 sps:$4 sm:$0xff]   ;;  %v6296_v30 = vld [vmem:[%s8985_s3 + $0xec] ss:$16 sps:$4 sm:$0xff]  }
   0xb   :  { %345 = vmatpush1.bf16.msra.mxu0 %v6268_v11  ;;  %458 = vmatpush1.bf16.msra.mxu1 %v6269_v12  ;;  %v6298_v31 = vld [vmem:[%s8985_s3 + $0xe0] ss:$16 sps:$4 sm:$0xff]   ;;  %v6299_v32 = vld [vmem:[%s8985_s3 + $0xe8] ss:$16 sps:$4 sm:$0xff]   ;;  %v7235_v33 = vld [vmem:[%s8987_s4 + $0x4] ss:$16 sps:$4 sm:$0xff]  }
   0xc   :  { %346 = vmatprep.subr.bf16.mxu0 %v6270_v13  ;;  %459 = vmatprep.subr.bf16.mxu1 %v6272_v14  ;;  %v7240_v34 = vld [vmem:[%s8987_s4 + $0xc] ss:$16 sps:$4 sm:$0xff]   ;;  %v6300_v35 = vld [vmem:[%s8986_s0] sm:$0xff]   ;;  %v7260_v38 = vld [vmem:[%s8987_s4 + $0x8] ss:$16 sps:$4 sm:$0xff]   ;;  %v112_v13 = vlaneseq }
   0xd   :  { %v7248_v36 = vld [vmem:[%s8987_s4] ss:$16 sps:$4 sm:$0xff]   ;;  %v7254_v37 = vld [vmem:[%s8987_s4 + $0x24] ss:$16 sps:$4 sm:$0xff]   ;;  %v7265_v39 = vld [vmem:[%s8987_s4 + $0x2c] ss:$16 sps:$4 sm:$0xff]  }
   0xe   :  { %v7272_v40 = vld [vmem:[%s8987_s4 + $0x20] ss:$16 sps:$4 sm:$0xff]   ;;  %v7279_v41 = vld [vmem:[%s8987_s4 + $0x44] ss:$16 sps:$4 sm:$0xff]   ;;  %v7285_v42 = vld [vmem:[%s8987_s4 + $0x28] ss:$16 sps:$4 sm:$0xff]  }
   0xf   :  { %347 = vmatpush1.bf16.msra.mxu0 %v6274_v15  ;;  %460 = vmatpush1.bf16.msra.mxu1 %v6275_v16  ;;  %v6304_v43 = vld [vmem:[%s8986_s0 + $0x8] sm:$0xff]   ;;  %v7295_v44 = vld [vmem:[%s8987_s4 + $0x40] ss:$16 sps:$4 sm:$0xff]   ;;  %v7301_v45 = vld [vmem:[%s8987_s4 + $0x64] ss:$16 sps:$4 sm:$0xff]   ;;  %v7506_v14 = vshrl.u32 %v112_v13, 7 }
  0x10   :  { %348 = vmatprep.subr.bf16.mxu0 %v6276_v17  ;;  %461 = vmatprep.subr.bf16.mxu1 %v6278_v18  ;;  %v7306_v46 = vld [vmem:[%s8987_s4 + $0x4c] ss:$16 sps:$4 sm:$0xff]   ;;  %v7312_v47 = vld [vmem:[%s8987_s4 + $0x48] ss:$16 sps:$4 sm:$0xff]   ;;  %v7325_v49 = vld [vmem:[%s8987_s4 + $0x60] ss:$16 sps:$4 sm:$0xff]  }
  0x11   :  { %v7317_v48 = vld [vmem:[%s8987_s4 + $0x6c] ss:$16 sps:$4 sm:$0xff]   ;;  %v7331_v50 = vld [vmem:[%s8987_s4 + $0x84] ss:$16 sps:$4 sm:$0xff]   ;;  %v7338_v51 = vld [vmem:[%s8987_s4 + $0x68] ss:$16 sps:$4 sm:$0xff]  }
  0x12   :  { %v6311_v52 = vld [vmem:[%s8986_s0 + $0x10] sm:$0xff]   ;;  %v7353_v54 = vld [vmem:[%s8987_s4 + $0x8c] ss:$16 sps:$4 sm:$0xff]   ;;  %v7365_v56 = vld [vmem:[%s8987_s4 + $0x88] ss:$16 sps:$4 sm:$0xff]   ;;  %v114_v15 = vsub.s32 0, %v7506_v14 }
  0x13   :  { %349 = vmatpush1.bf16.msra.mxu0 %v6280_v19  ;;  %462 = vmatpush1.bf16.msra.mxu1 %v6281_v20  ;;  %v7347_v53 = vld [vmem:[%s8987_s4 + $0x80] ss:$16 sps:$4 sm:$0xff]   ;;  %v7359_v55 = vld [vmem:[%s8987_s4 + $0xa4] ss:$16 sps:$4 sm:$0xff]   ;;  %v7375_v58 = vld [vmem:[%s8987_s4 + $0xac] ss:$16 sps:$4 sm:$0xff]  }
  0x14   :  { %350 = vmatprep.subr.bf16.mxu0 %v6282_v21  ;;  %463 = vmatprep.subr.bf16.mxu1 %v6284_v22  ;;  %v7370_v57 = vld [vmem:[%s8987_s4 + $0xa0] ss:$16 sps:$4 sm:$0xff]   ;;  %v7382_v59 = vld [vmem:[%s8987_s4 + $0xc4] ss:$16 sps:$4 sm:$0xff]   ;;  %v7387_v60 = vld [vmem:[%s8987_s4 + $0xa8] ss:$16 sps:$4 sm:$0xff]  }
  0x15   :  { %v6318_v61 = vld [vmem:[%s8986_s0 + $0x18] sm:$0xff]   ;;  %v7399_v62 = vld [vmem:[%s8987_s4 + $0xc0] ss:$16 sps:$4 sm:$0xff]   ;;  %v7410_v0 = vld [vmem:[%s8987_s4 + $0xe4] ss:$16 sps:$4 sm:$0xff]   ;;  %v118_v17 = vsub.s32 1, %v7506_v14 }
  0x16   :  { %v7405_v63 = vld [vmem:[%s8987_s4 + $0xcc] ss:$16 sps:$4 sm:$0xff]   ;;  %v7415_v2 = vld [vmem:[%s8987_s4 + $0xc8] ss:$16 sps:$4 sm:$0xff]   ;;  %v7428_v4 = vld [vmem:[%s8987_s4 + $0xe0] ss:$16 sps:$4 sm:$0xff]  }
  0x17   :  { %351 = vmatpush1.bf16.msra.mxu0 %v6286_v23  ;;  %464 = vmatpush1.bf16.msra.mxu1 %v6287_v24  ;;  %v7421_v3 = vld [vmem:[%s8987_s4 + $0xec] ss:$16 sps:$4 sm:$0xff]   ;;  %v7435_v5 = vld [vmem:[%s8987_s4 + $0xe8] ss:$16 sps:$4 sm:$0xff]   ;;  %v6325_v6 = vld [vmem:[%s8986_s0 + $0x20] sm:$0xff]   ;;  %v9000_v21 = vsub.s32 2, %v7506_v14 }
  0x18   :  { %352 = vmatprep.subr.bf16.mxu0 %v6288_v25  ;;  %465 = vmatprep.subr.bf16.mxu1 %v6290_v26  ;;  %v6332_v7 = vld [vmem:[%s8986_s0 + $0x28] sm:$0xff]   ;;  %v6339_v8 = vld [vmem:[%s8986_s0 + $0x30] sm:$0xff]   ;;  %v6346_v9 = vld [vmem:[%s8986_s0 + $0x38] sm:$0xff]  }
  0x19   :  { %v46_v10 = vld [vmem:[%s8988_s1] sm:$0xff]  ;;  %v47_v11 = vld [vmem:[%s8988_s1 + $0x8] sm:$0xff] }
  0x1a   :  { %v645_v12 = vpack.c.bf16 %v47_v11, %v46_v10  ;;  %v110_v16 = vld [vmem:[%s8989_s5] sm:$0xf] }
  0x1b   :  { %353 = vmatpush1.bf16.msra.mxu0 %v6292_v27  ;;  %466 = vmatpush1.bf16.msra.mxu1 %v6293_v28  ;;  %v7515_v18 = vrot.slane %v110_v16, %v114_v15  ;;  %v7519_v19 = vrot.slane %v110_v16, %v118_v17 }
  0x1c   :  { %354 = vmatprep.subr.bf16.mxu0 %v6294_v29  ;;  %467 = vmatprep.subr.bf16.mxu1 %v6296_v30  ;;  %v8999_v30 = vsub.s32 3, %v7506_v14 }
  0x1f   :  { %355 = vmatpush1.bf16.msra.mxu0 %v6298_v31  ;;  %468 = vmatpush1.bf16.msra.mxu1 %v6299_v32 }
  0x20   :  { %838 = vmatprep.subr.bf16.mxu0 %v7235_v33  ;;  %881 = vmatprep.subr.bf16.mxu1 %v7240_v34 }
  0x22   :  { %373 = vmatmul.mubr.bf16.vlgmr.msra.gmra.mrb[0].mxu0 %v6300_v35  ;;  %486 = vmatmul.mubr.bf16.vlgmr.msra.gmra.mrb[0].mxu1 %v6300_v35  ;;  %v7528_v35 = vrot.slane %v110_v16, %v9000_v21 }
  0x23   :  { %839 = vmatpush1.bf16.msra.mxu0 %v7248_v36  ;;  %382 = vmatprep.mubr.bf16.mxu0 %v7061_v1 }
  0x24   :  { %495 = vmatprep.mubr.bf16.mxu1 %v7061_v1  ;;  %840 = vmatprep.subr.bf16.mxu0 %v7254_v37 }
  0x25   :  { %882 = vmatpush1.bf16.msra.mxu1 %v7260_v38 }
  0x26   :  { %883 = vmatprep.subr.bf16.mxu1 %v7265_v39 }
  0x27   :  { %841 = vmatpush1.bf16.msra.mxu0 %v7272_v40 }
  0x28   :  { %842 = vmatprep.subr.bf16.mxu0 %v7279_v41 }
  0x29   :  { %884 = vmatpush1.bf16.msra.mxu1 %v7285_v42 }
  0x2a   :  { %383 = vmatmul.mubr.bf16.gmra.mrb[4].mxu0 %v6304_v43  ;;  %496 = vmatmul.mubr.bf16.gmra.mrb[4].mxu1 %v6304_v43 }
  0x2b   :  { %392 = vmatprep.mubr.bf16.mxu0 %v7061_v1  ;;  %505 = vmatprep.mubr.bf16.mxu1 %v7061_v1 }
  0x2c   :  { %843 = vmatpush1.bf16.msra.mxu0 %v7295_v44  ;;  %885 = vmatprep.subr.bf16.mxu1 %v7306_v46 }
  0x2d   :  { %844 = vmatprep.subr.bf16.mxu0 %v7301_v45  ;;  %886 = vmatpush1.bf16.msra.mxu1 %v7312_v47 }
  0x2e   :  { %887 = vmatprep.subr.bf16.mxu1 %v7317_v48 }
  0x30   :  { %845 = vmatpush1.bf16.msra.mxu0 %v7325_v49 }
  0x31   :  { %846 = vmatprep.subr.bf16.mxu0 %v7331_v50  ;;  %888 = vmatpush1.bf16.msra.mxu1 %v7338_v51 }
  0x32   :  { %393 = vmatmul.mubr.bf16.gmra.mrb[8].mxu0 %v6311_v52  ;;  %506 = vmatmul.mubr.bf16.gmra.mrb[8].mxu1 %v6311_v52 }
  0x33   :  { %402 = vmatprep.mubr.bf16.mxu0 %v7061_v1  ;;  %515 = vmatprep.mubr.bf16.mxu1 %v7061_v1 }
  0x34   :  { %847 = vmatpush1.bf16.msra.mxu0 %v7347_v53  ;;  %889 = vmatprep.subr.bf16.mxu1 %v7353_v54 }
  0x35   :  { %848 = vmatprep.subr.bf16.mxu0 %v7359_v55  ;;  %890 = vmatpush1.bf16.msra.mxu1 %v7365_v56 }
  0x36   :  { %891 = vmatprep.subr.bf16.mxu1 %v7375_v58 }
  0x38   :  { %849 = vmatpush1.bf16.msra.mxu0 %v7370_v57 }
  0x39   :  { %850 = vmatprep.subr.bf16.mxu0 %v7382_v59  ;;  %892 = vmatpush1.bf16.msra.mxu1 %v7387_v60 }
  0x3a   :  { %403 = vmatmul.mubr.bf16.gmra.mrb[12].mxu0 %v6318_v61  ;;  %516 = vmatmul.mubr.bf16.gmra.mrb[12].mxu1 %v6318_v61 }
  0x3b   :  { %412 = vmatprep.mubr.bf16.mxu0 %v7061_v1  ;;  %525 = vmatprep.mubr.bf16.mxu1 %v7061_v1 }
  0x3c   :  { %851 = vmatpush1.bf16.msra.mxu0 %v7399_v62  ;;  %893 = vmatprep.subr.bf16.mxu1 %v7405_v63 }
  0x3d   :  { %852 = vmatprep.subr.bf16.mxu0 %v7410_v0  ;;  %894 = vmatpush1.bf16.msra.mxu1 %v7415_v2 }
  0x3e   :  { %895 = vmatprep.subr.bf16.mxu1 %v7421_v3 }
  0x40   :  { %853 = vmatpush1.bf16.msra.mxu0 %v7428_v4 }
  0x41   :  { %896 = vmatpush1.bf16.msra.mxu1 %v7435_v5  ;;  %1185 = vmatprep.subr.bf16.mxu0 %v7235_v33 }
  0x42   :  { %413 = vmatmul.mubr.bf16.gmra.mrb[16].mxu0 %v6325_v6  ;;  %526 = vmatmul.mubr.bf16.gmra.mrb[16].mxu1 %v6325_v6 }
  0x43   :  { %422 = vmatprep.mubr.bf16.mxu0 %v7061_v1  ;;  %535 = vmatprep.mubr.bf16.mxu1 %v7061_v1 }
  0x44   :  { %1228 = vmatprep.subr.bf16.mxu1 %v7240_v34 }
  0x4a   :  { %423 = vmatmul.mubr.bf16.gmra.mrb[20].mxu0 %v6332_v7  ;;  %536 = vmatmul.mubr.bf16.gmra.mrb[20].mxu1 %v6332_v7  ;;  %v7533_v7 = vrot.slane %v110_v16, %v8999_v30 }
  0x4b   :  { %432 = vmatprep.mubr.bf16.mxu0 %v7061_v1  ;;  %545 = vmatprep.mubr.bf16.mxu1 %v7061_v1 }
  0x52   :  { %433 = vmatmul.mubr.bf16.gmra.mrb[24].mxu0 %v6339_v8  ;;  %546 = vmatmul.mubr.bf16.gmra.mrb[24].mxu1 %v6339_v8 }
  0x53   :  { %442 = vmatprep.mubr.bf16.mxu0 %v7061_v1  ;;  %555 = vmatprep.mubr.bf16.mxu1 %v7061_v1 }
  0x5a   :  { %443 = vmatmul.mubr.bf16.gmra.mrb[28].mxu0 %v6346_v9  ;;  %556 = vmatmul.mubr.bf16.gmra.mrb[28].mxu1 %v6346_v9 }
  0x5b   :  { %870 = vmatprep.mubr.bf16.mxu0 %v7061_v1  ;;  %913 = vmatprep.mubr.bf16.mxu1 %v7061_v1 }
  0x62   :  { %871 = vmatmul.mubr.bf16.vlgmr.msra.gmra.mrb[0].mxu0 %v645_v12  ;;  %914 = vmatmul.mubr.bf16.vlgmr.msra.gmra.mrb[0].mxu1 %v645_v12 }
  0x63   :  { %1186 = vmatpush1.bf16.msra.mxu0 %v7248_v36  ;;  %1229 = vmatpush1.bf16.msra.mxu1 %v7260_v38 }
  0x64   :  { %1187 = vmatprep.subr.bf16.mxu0 %v7254_v37  ;;  %1230 = vmatprep.subr.bf16.mxu1 %v7265_v39 }
  0x65   :  { %1217 = vmatprep.mubr.bf16.mxu0 %v7061_v1  ;;  %1260 = vmatprep.mubr.bf16.mxu1 %v7061_v1 }
  0x67   :  { %1188 = vmatpush1.bf16.msra.mxu0 %v7272_v40  ;;  %1231 = vmatpush1.bf16.msra.mxu1 %v7285_v42 }
  0x68   :  { %1189 = vmatprep.subr.bf16.mxu0 %v7279_v41  ;;  %1232 = vmatprep.subr.bf16.mxu1 %v7306_v46 }
  0x6b   :  { %1190 = vmatpush1.bf16.msra.mxu0 %v7295_v44  ;;  %1233 = vmatpush1.bf16.msra.mxu1 %v7312_v47 }
  0x6c   :  { %1191 = vmatprep.subr.bf16.mxu0 %v7301_v45  ;;  %1234 = vmatprep.subr.bf16.mxu1 %v7317_v48 }
  0x6f   :  { %1192 = vmatpush1.bf16.msra.mxu0 %v7325_v49  ;;  %1235 = vmatpush1.bf16.msra.mxu1 %v7338_v51 }
  0x70   :  { %1193 = vmatprep.subr.bf16.mxu0 %v7331_v50  ;;  %1236 = vmatprep.subr.bf16.mxu1 %v7353_v54 }
  0x73   :  { %1194 = vmatpush1.bf16.msra.mxu0 %v7347_v53  ;;  %1237 = vmatpush1.bf16.msra.mxu1 %v7365_v56 }
  0x74   :  { %1195 = vmatprep.subr.bf16.mxu0 %v7359_v55  ;;  %1238 = vmatprep.subr.bf16.mxu1 %v7375_v58 }
  0x77   :  { %1196 = vmatpush1.bf16.msra.mxu0 %v7370_v57  ;;  %1239 = vmatpush1.bf16.msra.mxu1 %v7387_v60 }
  0x78   :  { %1197 = vmatprep.subr.bf16.mxu0 %v7382_v59  ;;  %1240 = vmatprep.subr.bf16.mxu1 %v7405_v63 }
  0x7b   :  { %1198 = vmatpush1.bf16.msra.mxu0 %v7399_v62  ;;  %1241 = vmatpush1.bf16.msra.mxu1 %v7415_v2 }
  0x7c   :  { %1199 = vmatprep.subr.bf16.mxu0 %v7410_v0  ;;  %1242 = vmatprep.subr.bf16.mxu1 %v7421_v3 }
  0x7f   :  { %1200 = vmatpush1.bf16.msra.mxu0 %v7428_v4  ;;  %1243 = vmatpush1.bf16.msra.mxu1 %v7435_v5 }
  0x80   :  { %1533 = vmatprep.subr.bf16.mxu0 %v7235_v33  ;;  %1576 = vmatprep.subr.bf16.mxu1 %v7240_v34 }
 0x135   :  { %v872_v20 = vpop.f32.mrb[0].mxu0  ;;  %v915_v22 = vpop.f32.mrb[0].mxu1 }
 0x136   :  { %v5993_v23 = vadd.f32 %v872_v20, %v7515_v18  ;;  %v874_v24 = vpop.f32.mrb[1].mxu0  ;;  %v917_v25 = vpop.f32.mrb[1].mxu1  ;;  %v6025_v8 = vadd.f32 %v915_v22, %v7528_v35 }
 0x137   :  { %v5994_v26 = vadd.f32 %v874_v24, %v7519_v19  ;;  %v876_v27 = vpop.f32.mrb[2].mxu0  ;;  %v919_v28 = vpop.f32.mrb[2].mxu1  ;;  %v6026_v10 = vadd.f32 %v917_v25, %v7533_v7 }
 0x138   :  { %v5571_v29 = vmul.f32 -1.442695, %v5993_v23  ;;  %v5995_v31 = vadd.f32 %v876_v27, %v7515_v18  ;;  %v878_v32 = vpop.f32.mrb[3].mxu0  ;;  %v921_v33 = vpop.f32.mrb[3].mxu1  ;;  %v6027_v9 = vadd.f32 %v919_v28, %v7528_v35  ;;  %v5573_v11 = vmul.f32 -1.442695, %v6025_v8 }
 0x139   :  { %v5572_v43 = vmul.f32 -1.442695, %v5994_v26  ;;  %v5996_v52 = vadd.f32 %v878_v32, %v7519_v19  ;;  %v6028_v20 = vadd.f32 %v921_v33, %v7533_v7  ;;  %v54_v33 = vld [vmem:[%s8990_s2] sm:$0xff] }
 0x13a   :  { %6517 = vpow2.f32 %v5571_v29  ;;  %v5574_v61 = vmul.f32 -1.442695, %v5995_v31  ;;  %v5576_v12 = vmul.f32 -1.442695, %v6027_v9 }
 0x13b   :  { %v5575_v6 = vmul.f32 -1.442695, %v5996_v52  ;;  %6519 = vpow2.f32 %v5572_v43 }
 0x13c   :  { %6521 = vpow2.f32 %v5574_v61 }
 0x13d   :  { %6523 = vpow2.f32 %v5575_v6 }
 0x13e   :  { %6525 = vtanh.f32 %v6026_v10  ;;  %v55_v10 = vld [vmem:[%s8990_s2 + $0x8] sm:$0xff] }
 0x13f   :  { %6527 = vpow2.f32 %v5573_v11 }
 0x140   :  { %6529 = vpow2.f32 %v5576_v12 }
 0x144   :  { %v6518_v13 = vpop.eup %6517 }
 0x145   :  { %v950_v23 = vadd.f32 1.0, %v6518_v13  ;;  %v6520_v24 = vpop.eup %6519 }
 0x146   :  { %v6522_v16 = vpop.eup %6521  ;;  %v951_v26 = vadd.f32 1.0, %v6520_v24 }
 0x147   :  { %6531 = vrcp.f32 %v950_v23  ;;  %v953_v22 = vadd.f32 1.0, %v6522_v16  ;;  %v6524_v27 = vpop.eup %6523 }
 0x148   :  { %6533 = vtanh.f32 %v6028_v20  ;;  %v954_v28 = vadd.f32 1.0, %v6524_v27  ;;  %v6526_v25 = vpop.eup %6525 }
 0x149   :  { %6535 = vrcp.f32 %v951_v26  ;;  %v6528_v29 = vpop.eup %6527 }
 0x14a   :  { %6537 = vrcp.f32 %v953_v22  ;;  %v6530_v31 = vpop.eup %6529  ;;  %v952_v8 = vadd.f32 1.0, %v6528_v29 }
 0x14b   :  { %6539 = vrcp.f32 %v954_v28  ;;  %v955_v20 = vadd.f32 1.0, %v6530_v31 }
 0x14c   :  { %6541 = vrcp.f32 %v952_v8 }
 0x151   :  { %v6532_v32 = vpop.eup %6531 }
 0x152   :  { %v6534_v43 = vpop.eup %6533  ;;  %v972_v52 = vmul.f32 %v6532_v32, %v6526_v25 }
 0x153   :  { %v6536_v61 = vpop.eup %6535 }
 0x154   :  { %v6538_v6 = vpop.eup %6537  ;;  %v970_v9 = vmul.f32 %v6536_v61, %v54_v33 }
 0x155   :  { %v973_v11 = vmul.f32 %v6538_v6, %v6534_v43  ;;  %v6540_v12 = vpop.eup %6539 }
 0x156   :  { %v7545_v13 = vadd.f32 %v972_v52, %v970_v9  ;;  %v971_v23 = vmul.f32 %v6540_v12, %v55_v10  ;;  %v6542_v16 = vpop.eup %6541 }
 0x158   :  { %6543 = vtanh.f32 %v7545_v13  ;;  %v7548_v24 = vadd.f32 %v973_v11, %v971_v23 }
 0x159   :  { %6545 = vrcp.f32 %v955_v20 }
 0x15a   :  { %6547 = vtanh.f32 %v7548_v24 }
 0x162   :  { %v6544_v26 = vpop.eup %6543 }
 0x163   :  { %v6546_v22 = vpop.eup %6545  ;;  %v978_v28 = vmul.f32 %v6544_v26, %v6542_v16 }
 0x164   :  { %v6548_v27 = vpop.eup %6547 }
 0x165   :  { %v979_v25 = vmul.f32 %v6548_v27, %v6546_v22 }
 0x167   :  { %v7551_v29 = vpack.c.bf16 %v979_v25, %v978_v28 }
 0x169   :  { %1218 = vmatmul.mubr.bf16.vlgmr.msra.gmra.mrb[4].mxu0 %v7551_v29  ;;  %1261 = vmatmul.mubr.bf16.vlgmr.msra.gmra.mrb[4].mxu1 %v7551_v29 }
 0x16a   :  { %1534 = vmatpush1.bf16.msra.mxu0 %v7248_v36  ;;  %1577 = vmatpush1.bf16.msra.mxu1 %v7260_v38 }
 0x16b   :  { %1535 = vmatprep.subr.bf16.mxu0 %v7254_v37  ;;  %1578 = vmatprep.subr.bf16.mxu1 %v7265_v39 }
 0x16c   :  { %1565 = vmatprep.mubr.bf16.mxu0 %v7061_v1  ;;  %1608 = vmatprep.mubr.bf16.mxu1 %v7061_v1 }
 0x16e   :  { %1536 = vmatpush1.bf16.msra.mxu0 %v7272_v40  ;;  %1579 = vmatpush1.bf16.msra.mxu1 %v7285_v42 }
 0x16f   :  { %1537 = vmatprep.subr.bf16.mxu0 %v7279_v41  ;;  %1580 = vmatprep.subr.bf16.mxu1 %v7306_v46 }
 0x172   :  { %1538 = vmatpush1.bf16.msra.mxu0 %v7295_v44  ;;  %1581 = vmatpush1.bf16.msra.mxu1 %v7312_v47 }
 0x173   :  { %1539 = vmatprep.subr.bf16.mxu0 %v7301_v45  ;;  %1582 = vmatprep.subr.bf16.mxu1 %v7317_v48 }
 0x176   :  { %1540 = vmatpush1.bf16.msra.mxu0 %v7325_v49  ;;  %1583 = vmatpush1.bf16.msra.mxu1 %v7338_v51 }
 0x177   :  { %1541 = vmatprep.subr.bf16.mxu0 %v7331_v50  ;;  %1584 = vmatprep.subr.bf16.mxu1 %v7353_v54 }
 0x17a   :  { %1542 = vmatpush1.bf16.msra.mxu0 %v7347_v53  ;;  %1585 = vmatpush1.bf16.msra.mxu1 %v7365_v56 }
 0x17b   :  { %1543 = vmatprep.subr.bf16.mxu0 %v7359_v55  ;;  %1586 = vmatprep.subr.bf16.mxu1 %v7375_v58 }
 0x17e   :  { %1544 = vmatpush1.bf16.msra.mxu0 %v7370_v57  ;;  %1587 = vmatpush1.bf16.msra.mxu1 %v7387_v60 }
 0x17f   :  { %1545 = vmatprep.subr.bf16.mxu0 %v7382_v59  ;;  %1588 = vmatprep.subr.bf16.mxu1 %v7405_v63 }
 0x182   :  { %1546 = vmatpush1.bf16.msra.mxu0 %v7399_v62  ;;  %1589 = vmatpush1.bf16.msra.mxu1 %v7415_v2 }
 0x183   :  { %1547 = vmatprep.subr.bf16.mxu0 %v7410_v0  ;;  %1590 = vmatprep.subr.bf16.mxu1 %v7421_v3 }
 0x186   :  { %1548 = vmatpush1.bf16.msra.mxu0 %v7428_v4  ;;  %1591 = vmatpush1.bf16.msra.mxu1 %v7435_v5 }
 0x187   :  { %1924 = vmatprep.subr.bf16.mxu1 %v7240_v34 }
 0x23c   :  { %v1219_v36 = vpop.f32.mrb[4].mxu0  ;;  %v1262_v37 = vpop.f32.mrb[4].mxu1 }
 0x23d   :  { %v5997_v40 = vadd.f32 %v1219_v36, %v7515_v18  ;;  %v1221_v41 = vpop.f32.mrb[5].mxu0  ;;  %v1264_v44 = vpop.f32.mrb[5].mxu1  ;;  %v6029_v11 = vadd.f32 %v1262_v37, %v7528_v35 }
 0x23e   :  { %v5998_v31 = vadd.f32 %v1221_v41, %v7519_v19  ;;  %v1223_v32 = vpop.f32.mrb[6].mxu0  ;;  %v1266_v33 = vpop.f32.mrb[6].mxu1  ;;  %v6030_v20 = vadd.f32 %v1264_v44, %v7533_v7 }
 0x23f   :  { %v5609_v43 = vmul.f32 -1.442695, %v5997_v40  ;;  %v5999_v52 = vadd.f32 %v1223_v32, %v7515_v18  ;;  %v1225_v61 = vpop.f32.mrb[7].mxu0  ;;  %v1268_v6 = vpop.f32.mrb[7].mxu1  ;;  %v6031_v12 = vadd.f32 %v1266_v33, %v7528_v35  ;;  %v5611_v23 = vmul.f32 -1.442695, %v6029_v11 }
 0x240   :  { %v5610_v8 = vmul.f32 -1.442695, %v5998_v31  ;;  %v6000_v9 = vadd.f32 %v1225_v61, %v7519_v19  ;;  %v6032_v22 = vadd.f32 %v1268_v6, %v7533_v7 }
 0x241   :  { %6549 = vpow2.f32 %v5609_v43  ;;  %v5612_v34 = vmul.f32 -1.442695, %v5999_v52  ;;  %v5614_v16 = vmul.f32 -1.442695, %v6031_v12 }
 0x242   :  { %v5613_v10 = vmul.f32 -1.442695, %v6000_v9  ;;  %6551 = vpow2.f32 %v5610_v8 }
 0x243   :  { %6553 = vpow2.f32 %v5612_v34 }
 0x244   :  { %6555 = vpow2.f32 %v5613_v10 }
 0x245   :  { %6557 = vtanh.f32 %v6030_v20 }
 0x246   :  { %6559 = vpow2.f32 %v5611_v23 }
 0x247   :  { %6561 = vpow2.f32 %v5614_v16 }
 0x24b   :  { %v6550_v26 = vpop.eup %6549 }
 0x24c   :  { %v1297_v27 = vadd.f32 1.0, %v6550_v26  ;;  %v6552_v28 = vpop.eup %6551 }
 0x24d   :  { %v6554_v25 = vpop.eup %6553  ;;  %v1298_v36 = vadd.f32 1.0, %v6552_v28 }
 0x24e   :  { %6563 = vrcp.f32 %v1297_v27  ;;  %v1300_v37 = vadd.f32 1.0, %v6554_v25  ;;  %v6556_v40 = vpop.eup %6555 }
 0x24f   :  { %6565 = vtanh.f32 %v6032_v22  ;;  %v1301_v41 = vadd.f32 1.0, %v6556_v40  ;;  %v6558_v44 = vpop.eup %6557 }
 0x250   :  { %6567 = vrcp.f32 %v1298_v36  ;;  %v6560_v31 = vpop.eup %6559 }
 0x251   :  { %6569 = vrcp.f32 %v1300_v37  ;;  %v6562_v32 = vpop.eup %6561  ;;  %v1299_v8 = vadd.f32 1.0, %v6560_v31 }
 0x252   :  { %6571 = vrcp.f32 %v1301_v41  ;;  %v1302_v12 = vadd.f32 1.0, %v6562_v32 }
 0x253   :  { %6573 = vrcp.f32 %v1299_v8 }
 0x258   :  { %v6564_v33 = vpop.eup %6563 }
 0x259   :  { %v6566_v43 = vpop.eup %6565  ;;  %v1319_v52 = vmul.f32 %v6564_v33, %v6558_v44 }
 0x25a   :  { %v6568_v61 = vpop.eup %6567 }
 0x25b   :  { %v6570_v6 = vpop.eup %6569  ;;  %v1317_v9 = vmul.f32 %v6568_v61, %v7545_v13 }
 0x25c   :  { %v1320_v34 = vmul.f32 %v6570_v6, %v6566_v43  ;;  %v6572_v10 = vpop.eup %6571 }
 0x25d   :  { %v7597_v11 = vadd.f32 %v1319_v52, %v1317_v9  ;;  %v1318_v20 = vmul.f32 %v6572_v10, %v7548_v24  ;;  %v6574_v16 = vpop.eup %6573 }
 0x25f   :  { %6575 = vtanh.f32 %v7597_v11  ;;  %v7601_v23 = vadd.f32 %v1320_v34, %v1318_v20 }
 0x260   :  { %6577 = vrcp.f32 %v1302_v12 }
 0x261   :  { %6579 = vtanh.f32 %v7601_v23 }
 0x269   :  { %v6576_v26 = vpop.eup %6575 }
 0x26a   :  { %v6578_v22 = vpop.eup %6577  ;;  %v1325_v13 = vmul.f32 %v6576_v26, %v6574_v16 }
 0x26b   :  { %v6580_v27 = vpop.eup %6579 }
 0x26c   :  { %v1326_v28 = vmul.f32 %v6580_v27, %v6578_v22 }
 0x26e   :  { %v7604_v25 = vpack.c.bf16 %v1326_v28, %v1325_v13 }
 0x270   :  { %1566 = vmatmul.mubr.bf16.vlgmr.msra.gmra.mrb[8].mxu0 %v7604_v25  ;;  %1609 = vmatmul.mubr.bf16.vlgmr.msra.gmra.mrb[8].mxu1 %v7604_v25 }
 0x271   :  { %1925 = vmatpush1.bf16.msra.mxu1 %v7260_v38  ;;  %1913 = vmatprep.mubr.bf16.mxu0 %v7061_v1  ;;  %v7628_v38 = vld [vmem:[%s8987_s4 + $0x4] ss:$16 sps:$4 sm:$0xff]  }
 0x272   :  { %1926 = vmatprep.subr.bf16.mxu1 %v7265_v39  ;;  %1956 = vmatprep.mubr.bf16.mxu1 %v7061_v1  ;;  %v7633_v39 = vld [vmem:[%s8987_s4] ss:$16 sps:$4 sm:$0xff]  }
 0x273   :  { %1881 = vmatprep.subr.bf16.mxu0 %v7628_v38 }
 0x274   :  { %1882 = vmatpush1.bf16.msra.mxu0 %v7633_v39 }
 0x275   :  { %1927 = vmatpush1.bf16.msra.mxu1 %v7285_v42  ;;  %v7640_v42 = vld [vmem:[%s8987_s4 + $0x24] ss:$16 sps:$4 sm:$0xff]  }
 0x276   :  { %1928 = vmatprep.subr.bf16.mxu1 %v7306_v46  ;;  %v7645_v46 = vld [vmem:[%s8987_s4 + $0x20] ss:$16 sps:$4 sm:$0xff]   ;;  %1883 = vmatprep.subr.bf16.mxu0 %v7640_v42 }
 0x278   :  { %1884 = vmatpush1.bf16.msra.mxu0 %v7645_v46 }
 0x279   :  { %1929 = vmatpush1.bf16.msra.mxu1 %v7312_v47  ;;  %v7652_v47 = vld [vmem:[%s8987_s4 + $0x44] ss:$16 sps:$4 sm:$0xff]  }
 0x27a   :  { %1930 = vmatprep.subr.bf16.mxu1 %v7317_v48  ;;  %v7657_v48 = vld [vmem:[%s8987_s4 + $0x40] ss:$16 sps:$4 sm:$0xff]   ;;  %1885 = vmatprep.subr.bf16.mxu0 %v7652_v47 }
 0x27c   :  { %1886 = vmatpush1.bf16.msra.mxu0 %v7657_v48 }
 0x27d   :  { %1931 = vmatpush1.bf16.msra.mxu1 %v7338_v51  ;;  %1887 = vmatprep.subr.bf16.mxu0 %v7301_v45 }
 0x27e   :  { %1932 = vmatprep.subr.bf16.mxu1 %v7353_v54 }
 0x280   :  { %1888 = vmatpush1.bf16.msra.mxu0 %v7325_v49 }
 0x281   :  { %1933 = vmatpush1.bf16.msra.mxu1 %v7365_v56  ;;  %1889 = vmatprep.subr.bf16.mxu0 %v7331_v50 }
 0x282   :  { %1934 = vmatprep.subr.bf16.mxu1 %v7375_v58 }
 0x284   :  { %1890 = vmatpush1.bf16.msra.mxu0 %v7347_v53 }
 0x285   :  { %1935 = vmatpush1.bf16.msra.mxu1 %v7387_v60  ;;  %1891 = vmatprep.subr.bf16.mxu0 %v7359_v55 }
 0x286   :  { %1936 = vmatprep.subr.bf16.mxu1 %v7405_v63 }
 0x288   :  { %1892 = vmatpush1.bf16.msra.mxu0 %v7370_v57 }
 0x289   :  { %1937 = vmatpush1.bf16.msra.mxu1 %v7415_v2  ;;  %1893 = vmatprep.subr.bf16.mxu0 %v7382_v59 }
 0x28a   :  { %1938 = vmatprep.subr.bf16.mxu1 %v7421_v3 }
 0x28c   :  { %1894 = vmatpush1.bf16.msra.mxu0 %v7399_v62 }
 0x28d   :  { %1939 = vmatpush1.bf16.msra.mxu1 %v7435_v5  ;;  %1895 = vmatprep.subr.bf16.mxu0 %v7410_v0 }
 0x290   :  { %1896 = vmatpush1.bf16.msra.mxu0 %v7428_v4 }
 0x291   :  { %2229 = vmatprep.subr.bf16.mxu0 %v7628_v38 }
 0x343   :  { %v1567_v45 = vpop.f32.mrb[8].mxu0  ;;  %v1610_v49 = vpop.f32.mrb[8].mxu1 }
 0x344   :  { %v6001_v50 = vadd.f32 %v1567_v45, %v7515_v18  ;;  %v1569_v51 = vpop.f32.mrb[9].mxu0  ;;  %v1612_v53 = vpop.f32.mrb[9].mxu1  ;;  %v6033_v3 = vadd.f32 %v1610_v49, %v7528_v35 }
 0x345   :  { %v6002_v54 = vadd.f32 %v1569_v51, %v7519_v19  ;;  %v1571_v55 = vpop.f32.mrb[10].mxu0  ;;  %v1614_v56 = vpop.f32.mrb[10].mxu1  ;;  %v6034_v5 = vadd.f32 %v1612_v53, %v7533_v7 }
 0x346   :  { %v5647_v57 = vmul.f32 -1.442695, %v6001_v50  ;;  %v6003_v58 = vadd.f32 %v1571_v55, %v7515_v18  ;;  %v1573_v59 = vpop.f32.mrb[11].mxu0  ;;  %v1616_v60 = vpop.f32.mrb[11].mxu1  ;;  %v6035_v4 = vadd.f32 %v1614_v56, %v7528_v35  ;;  %v5649_v24 = vmul.f32 -1.442695, %v6033_v3 }
 0x347   :  { %v5648_v62 = vmul.f32 -1.442695, %v6002_v54  ;;  %v6004_v63 = vadd.f32 %v1573_v59, %v7519_v19  ;;  %v6036_v40 = vadd.f32 %v1616_v60, %v7533_v7  ;;  %v7719_v59 = vld [vmem:[%s8987_s4 + $0x28] ss:$16 sps:$4 sm:$0xff]   ;;  %v7726_v60 = vld [vmem:[%s8987_s4 + $0x4c] ss:$16 sps:$4 sm:$0xff]  }
 0x348   :  { %6581 = vpow2.f32 %v5647_v57  ;;  %v5650_v0 = vmul.f32 -1.442695, %v6003_v58  ;;  %v5652_v36 = vmul.f32 -1.442695, %v6035_v4  ;;  %v7707_v57 = vld [vmem:[%s8987_s4 + $0x8] ss:$16 sps:$4 sm:$0xff]  }
 0x349   :  { %v5651_v2 = vmul.f32 -1.442695, %v6004_v63  ;;  %6583 = vpow2.f32 %v5648_v62  ;;  %v7714_v58 = vld [vmem:[%s8987_s4 + $0x2c] ss:$16 sps:$4 sm:$0xff]   ;;  %v7731_v62 = vld [vmem:[%s8987_s4 + $0x48] ss:$16 sps:$4 sm:$0xff]  }
 0x34a   :  { %6585 = vpow2.f32 %v5650_v0  ;;  %v7738_v63 = vld [vmem:[%s8987_s4 + $0x64] ss:$16 sps:$4 sm:$0xff]   ;;  %v7743_v0 = vld [vmem:[%s8987_s4 + $0x6c] ss:$16 sps:$4 sm:$0xff]   ;;  %v7753_v3 = vld [vmem:[%s8987_s4 + $0x68] ss:$16 sps:$4 sm:$0xff]  }
 0x34b   :  { %6587 = vpow2.f32 %v5651_v2  ;;  %v7748_v2 = vld [vmem:[%s8987_s4 + $0x60] ss:$16 sps:$4 sm:$0xff]  }
 0x34c   :  { %6589 = vtanh.f32 %v6034_v5  ;;  %v7762_v4 = vld [vmem:[%s8987_s4 + $0x80] ss:$16 sps:$4 sm:$0xff]   ;;  %v7767_v5 = vld [vmem:[%s8987_s4 + $0x84] ss:$16 sps:$4 sm:$0xff]  }
 0x34d   :  { %6591 = vpow2.f32 %v5649_v24  ;;  %v7772_v24 = vld [vmem:[%s8987_s4 + $0x88] ss:$16 sps:$4 sm:$0xff]  }
 0x34e   :  { %6593 = vpow2.f32 %v5652_v36  ;;  %v7777_v36 = vld [vmem:[%s8987_s4 + $0x8c] ss:$16 sps:$4 sm:$0xff]  }
 0x352   :  { %v6582_v37 = vpop.eup %6581 }
 0x353   :  { %v1645_v41 = vadd.f32 1.0, %v6582_v37  ;;  %v6584_v44 = vpop.eup %6583  ;;  %v7782_v37 = vld [vmem:[%s8987_s4 + $0xa4] ss:$16 sps:$4 sm:$0xff]  }
 0x354   :  { %v6586_v31 = vpop.eup %6585  ;;  %v1646_v32 = vadd.f32 1.0, %v6584_v44  ;;  %v7802_v44 = vld [vmem:[%s8987_s4 + $0xa8] ss:$16 sps:$4 sm:$0xff]  }
 0x355   :  { %6595 = vrcp.f32 %v1645_v41  ;;  %v1648_v33 = vadd.f32 1.0, %v6586_v31  ;;  %v6588_v43 = vpop.eup %6587  ;;  %v7795_v41 = vld [vmem:[%s8987_s4 + $0xa0] ss:$16 sps:$4 sm:$0xff]   ;;  %v7807_v31 = vld [vmem:[%s8987_s4 + $0xc4] ss:$16 sps:$4 sm:$0xff]  }
 0x356   :  { %6597 = vtanh.f32 %v6036_v40  ;;  %v1649_v52 = vadd.f32 1.0, %v6588_v43  ;;  %v6590_v61 = vpop.eup %6589  ;;  %v7788_v40 = vld [vmem:[%s8987_s4 + $0xac] ss:$16 sps:$4 sm:$0xff]   ;;  %v7826_v43 = vld [vmem:[%s8987_s4 + $0xc8] ss:$16 sps:$4 sm:$0xff]  }
 0x357   :  { %6599 = vrcp.f32 %v1646_v32  ;;  %v6592_v6 = vpop.eup %6591  ;;  %v7813_v32 = vld [vmem:[%s8987_s4 + $0xcc] ss:$16 sps:$4 sm:$0xff]  }
 0x358   :  { %6601 = vrcp.f32 %v1648_v33  ;;  %v6594_v8 = vpop.eup %6593  ;;  %v1647_v16 = vadd.f32 1.0, %v6592_v6  ;;  %v7819_v33 = vld [vmem:[%s8987_s4 + $0xc0] ss:$16 sps:$4 sm:$0xff]  }
 0x359   :  { %6603 = vrcp.f32 %v1649_v52  ;;  %v1650_v28 = vadd.f32 1.0, %v6594_v8  ;;  %v7831_v52 = vld [vmem:[%s8987_s4 + $0xe4] ss:$16 sps:$4 sm:$0xff]   ;;  %v7843_v6 = vld [vmem:[%s8987_s4 + $0xe0] ss:$16 sps:$4 sm:$0xff]  }
 0x35a   :  { %6605 = vrcp.f32 %v1647_v16  ;;  %v7850_v8 = vld [vmem:[%s8987_s4 + $0xe8] ss:$16 sps:$4 sm:$0xff]  }
 0x35f   :  { %v6596_v9 = vpop.eup %6595 }
 0x360   :  { %v6598_v34 = vpop.eup %6597  ;;  %v1667_v10 = vmul.f32 %v6596_v9, %v6590_v61  ;;  %v7837_v61 = vld [vmem:[%s8987_s4 + $0xec] ss:$16 sps:$4 sm:$0xff]  }
 0x361   :  { %v6600_v12 = vpop.eup %6599 }
 0x362   :  { %v6602_v20 = vpop.eup %6601  ;;  %v1665_v26 = vmul.f32 %v6600_v12, %v7597_v11 }
 0x363   :  { %v1668_v22 = vmul.f32 %v6602_v20, %v6598_v34  ;;  %v6604_v27 = vpop.eup %6603 }
 0x364   :  { %v7681_v13 = vadd.f32 %v1667_v10, %v1665_v26  ;;  %v1666_v45 = vmul.f32 %v6604_v27, %v7601_v23  ;;  %v6606_v50 = vpop.eup %6605  ;;  %v7702_v23 = vld [vmem:[%s8987_s4 + $0xc] ss:$16 sps:$4 sm:$0xff]  }
 0x365   :  { %2272 = vmatprep.subr.bf16.mxu1 %v7702_v23 }
 0x366   :  { %6607 = vtanh.f32 %v7681_v13  ;;  %v7685_v49 = vadd.f32 %v1668_v22, %v1666_v45 }
 0x367   :  { %6609 = vrcp.f32 %v1650_v28 }
 0x368   :  { %6611 = vtanh.f32 %v7685_v49 }
 0x370   :  { %v6608_v51 = vpop.eup %6607 }
 0x371   :  { %v6610_v53 = vpop.eup %6609  ;;  %v1673_v11 = vmul.f32 %v6608_v51, %v6606_v50 }
 0x372   :  { %v6612_v54 = vpop.eup %6611 }
 0x373   :  { %v1674_v55 = vmul.f32 %v6612_v54, %v6610_v53 }
 0x375   :  { %v7688_v56 = vpack.c.bf16 %v1674_v55, %v1673_v11 }
 0x377   :  { %1914 = vmatmul.mubr.bf16.vlgmr.msra.gmra.mrb[12].mxu0 %v7688_v56  ;;  %1957 = vmatmul.mubr.bf16.vlgmr.msra.gmra.mrb[12].mxu1 %v7688_v56 }
 0x378   :  { %2230 = vmatpush1.bf16.msra.mxu0 %v7633_v39  ;;  %2261 = vmatprep.mubr.bf16.mxu0 %v7061_v1 }
 0x379   :  { %2231 = vmatprep.subr.bf16.mxu0 %v7640_v42  ;;  %2304 = vmatprep.mubr.bf16.mxu1 %v7061_v1 }
 0x37a   :  { %2273 = vmatpush1.bf16.msra.mxu1 %v7707_v57 }
 0x37b   :  { %2274 = vmatprep.subr.bf16.mxu1 %v7714_v58 }
 0x37c   :  { %2232 = vmatpush1.bf16.msra.mxu0 %v7645_v46 }
 0x37d   :  { %2233 = vmatprep.subr.bf16.mxu0 %v7652_v47 }
 0x37e   :  { %2275 = vmatpush1.bf16.msra.mxu1 %v7719_v59 }
 0x37f   :  { %2276 = vmatprep.subr.bf16.mxu1 %v7726_v60 }
 0x380   :  { %2234 = vmatpush1.bf16.msra.mxu0 %v7657_v48 }
 0x381   :  { %2235 = vmatprep.subr.bf16.mxu0 %v7738_v63 }
 0x382   :  { %2277 = vmatpush1.bf16.msra.mxu1 %v7731_v62 }
 0x383   :  { %2278 = vmatprep.subr.bf16.mxu1 %v7743_v0 }
 0x384   :  { %2236 = vmatpush1.bf16.msra.mxu0 %v7748_v2 }
 0x385   :  { %2237 = vmatprep.subr.bf16.mxu0 %v7767_v5 }
 0x386   :  { %2279 = vmatpush1.bf16.msra.mxu1 %v7753_v3 }
 0x387   :  { %2280 = vmatprep.subr.bf16.mxu1 %v7777_v36 }
 0x388   :  { %2238 = vmatpush1.bf16.msra.mxu0 %v7762_v4 }
 0x389   :  { %2239 = vmatprep.subr.bf16.mxu0 %v7782_v37 }
 0x38a   :  { %2281 = vmatpush1.bf16.msra.mxu1 %v7772_v24 }
 0x38b   :  { %2282 = vmatprep.subr.bf16.mxu1 %v7788_v40 }
 0x38c   :  { %2240 = vmatpush1.bf16.msra.mxu0 %v7795_v41 }
 0x38d   :  { %2241 = vmatprep.subr.bf16.mxu0 %v7807_v31 }
 0x38e   :  { %2283 = vmatpush1.bf16.msra.mxu1 %v7802_v44 }
 0x38f   :  { %2284 = vmatprep.subr.bf16.mxu1 %v7813_v32 }
 0x390   :  { %2242 = vmatpush1.bf16.msra.mxu0 %v7819_v33 }
 0x391   :  { %2243 = vmatprep.subr.bf16.mxu0 %v7831_v52 }
 0x392   :  { %2285 = vmatpush1.bf16.msra.mxu1 %v7826_v43 }
 0x393   :  { %2286 = vmatprep.subr.bf16.mxu1 %v7837_v61 }
 0x394   :  { %2244 = vmatpush1.bf16.msra.mxu0 %v7843_v6 }
 0x395   :  { %2577 = vmatprep.subr.bf16.mxu0 %v7628_v38 }
 0x396   :  { %2287 = vmatpush1.bf16.msra.mxu1 %v7850_v8 }
 0x397   :  { %2620 = vmatprep.subr.bf16.mxu1 %v7702_v23 }
 0x44a   :  { %v1915_v9 = vpop.f32.mrb[12].mxu0  ;;  %v1958_v34 = vpop.f32.mrb[12].mxu1 }
 0x44b   :  { %v6005_v10 = vadd.f32 %v1915_v9, %v7515_v18  ;;  %v1917_v12 = vpop.f32.mrb[13].mxu0  ;;  %v1960_v20 = vpop.f32.mrb[13].mxu1  ;;  %v6037_v55 = vadd.f32 %v1958_v34, %v7528_v35 }
 0x44c   :  { %v6006_v16 = vadd.f32 %v1917_v12, %v7519_v19  ;;  %v1919_v26 = vpop.f32.mrb[14].mxu0  ;;  %v1962_v22 = vpop.f32.mrb[14].mxu1  ;;  %v6038_v12 = vadd.f32 %v1960_v20, %v7533_v7 }
 0x44d   :  { %v5685_v27 = vmul.f32 -1.442695, %v6005_v10  ;;  %v6007_v28 = vadd.f32 %v1919_v26, %v7515_v18  ;;  %v1921_v45 = vpop.f32.mrb[15].mxu0  ;;  %v1964_v50 = vpop.f32.mrb[15].mxu1  ;;  %v6039_v9 = vadd.f32 %v1962_v22, %v7528_v35  ;;  %v5687_v10 = vmul.f32 -1.442695, %v6037_v55 }
 0x44e   :  { %v5686_v51 = vmul.f32 -1.442695, %v6006_v16  ;;  %v6008_v53 = vadd.f32 %v1921_v45, %v7519_v19  ;;  %v6040_v16 = vadd.f32 %v1964_v50, %v7533_v7 }
 0x44f   :  { %6613 = vpow2.f32 %v5685_v27  ;;  %v5688_v54 = vmul.f32 -1.442695, %v6007_v28  ;;  %v5690_v30 = vmul.f32 -1.442695, %v6039_v9 }
 0x450   :  { %v5689_v11 = vmul.f32 -1.442695, %v6008_v53  ;;  %6615 = vpow2.f32 %v5686_v51 }
 0x451   :  { %6617 = vpow2.f32 %v5688_v54 }
 0x452   :  { %6619 = vpow2.f32 %v5689_v11 }
 0x453   :  { %6621 = vtanh.f32 %v6038_v12 }
 0x454   :  { %6623 = vpow2.f32 %v5687_v10 }
 0x455   :  { %6625 = vpow2.f32 %v5690_v30 }
 0x459   :  { %v6614_v26 = vpop.eup %6613 }
 0x45a   :  { %v1993_v21 = vadd.f32 1.0, %v6614_v26  ;;  %v6616_v27 = vpop.eup %6615 }
 0x45b   :  { %v6618_v28 = vpop.eup %6617  ;;  %v1994_v45 = vadd.f32 1.0, %v6616_v27 }
 0x45c   :  { %6627 = vrcp.f32 %v1993_v21  ;;  %v1996_v34 = vadd.f32 1.0, %v6618_v28  ;;  %v6620_v51 = vpop.eup %6619 }
 0x45d   :  { %6629 = vtanh.f32 %v6040_v16  ;;  %v1997_v22 = vadd.f32 1.0, %v6620_v51  ;;  %v6622_v20 = vpop.eup %6621 }
 0x45e   :  { %6631 = vrcp.f32 %v1994_v45  ;;  %v6624_v53 = vpop.eup %6623 }
 0x45f   :  { %6633 = vrcp.f32 %v1996_v34  ;;  %v6626_v54 = vpop.eup %6625  ;;  %v1995_v10 = vadd.f32 1.0, %v6624_v53 }
 0x460   :  { %6635 = vrcp.f32 %v1997_v22  ;;  %v1998_v16 = vadd.f32 1.0, %v6626_v54 }
 0x461   :  { %6637 = vrcp.f32 %v1995_v10 }
 0x466   :  { %v6628_v11 = vpop.eup %6627 }
 0x467   :  { %v6630_v55 = vpop.eup %6629  ;;  %v2015_v50 = vmul.f32 %v6628_v11, %v6622_v20 }
 0x468   :  { %v6632_v9 = vpop.eup %6631 }
 0x469   :  { %v6634_v12 = vpop.eup %6633  ;;  %v2013_v30 = vmul.f32 %v6632_v9, %v7681_v13 }
 0x46a   :  { %v2016_v21 = vmul.f32 %v6634_v12, %v6630_v55  ;;  %v6636_v26 = vpop.eup %6635 }
 0x46b   :  { %v7866_v27 = vadd.f32 %v2015_v50, %v2013_v30  ;;  %v2014_v28 = vmul.f32 %v6636_v26, %v7685_v49  ;;  %v6638_v34 = vpop.eup %6637 }
 0x46d   :  { %6639 = vtanh.f32 %v7866_v27  ;;  %v7870_v45 = vadd.f32 %v2016_v21, %v2014_v28 }
 0x46e   :  { %6641 = vrcp.f32 %v1998_v16 }
 0x46f   :  { %6643 = vtanh.f32 %v7870_v45 }
 0x477   :  { %v6640_v51 = vpop.eup %6639 }
 0x478   :  { %v6642_v22 = vpop.eup %6641  ;;  %v2021_v13 = vmul.f32 %v6640_v51, %v6638_v34 }
 0x479   :  { %v6644_v20 = vpop.eup %6643 }
 0x47a   :  { %v2022_v53 = vmul.f32 %v6644_v20, %v6642_v22 }
 0x47c   :  { %v7873_v11 = vpack.c.bf16 %v2022_v53, %v2021_v13 }
 0x47e   :  { %2262 = vmatmul.mubr.bf16.vlgmr.msra.gmra.mrb[16].mxu0 %v7873_v11  ;;  %2305 = vmatmul.mubr.bf16.vlgmr.msra.gmra.mrb[16].mxu1 %v7873_v11 }
 0x47f   :  { %2578 = vmatpush1.bf16.msra.mxu0 %v7633_v39  ;;  %2621 = vmatpush1.bf16.msra.mxu1 %v7707_v57 }
 0x480   :  { %2579 = vmatprep.subr.bf16.mxu0 %v7640_v42  ;;  %2622 = vmatprep.subr.bf16.mxu1 %v7714_v58 }
 0x481   :  { %2609 = vmatprep.mubr.bf16.mxu0 %v7061_v1  ;;  %2652 = vmatprep.mubr.bf16.mxu1 %v7061_v1 }
 0x483   :  { %2580 = vmatpush1.bf16.msra.mxu0 %v7645_v46  ;;  %2623 = vmatpush1.bf16.msra.mxu1 %v7719_v59 }
 0x484   :  { %2581 = vmatprep.subr.bf16.mxu0 %v7652_v47  ;;  %2624 = vmatprep.subr.bf16.mxu1 %v7726_v60 }
 0x487   :  { %2582 = vmatpush1.bf16.msra.mxu0 %v7657_v48  ;;  %2625 = vmatpush1.bf16.msra.mxu1 %v7731_v62 }
 0x488   :  { %2583 = vmatprep.subr.bf16.mxu0 %v7738_v63  ;;  %2626 = vmatprep.subr.bf16.mxu1 %v7743_v0 }
 0x48b   :  { %2584 = vmatpush1.bf16.msra.mxu0 %v7748_v2  ;;  %2627 = vmatpush1.bf16.msra.mxu1 %v7753_v3 }
 0x48c   :  { %2585 = vmatprep.subr.bf16.mxu0 %v7767_v5  ;;  %2628 = vmatprep.subr.bf16.mxu1 %v7777_v36 }
 0x48f   :  { %2586 = vmatpush1.bf16.msra.mxu0 %v7762_v4  ;;  %2629 = vmatpush1.bf16.msra.mxu1 %v7772_v24 }
 0x490   :  { %2587 = vmatprep.subr.bf16.mxu0 %v7782_v37  ;;  %2630 = vmatprep.subr.bf16.mxu1 %v7788_v40 }
 0x493   :  { %2588 = vmatpush1.bf16.msra.mxu0 %v7795_v41  ;;  %2631 = vmatpush1.bf16.msra.mxu1 %v7802_v44 }
 0x494   :  { %2589 = vmatprep.subr.bf16.mxu0 %v7807_v31  ;;  %2632 = vmatprep.subr.bf16.mxu1 %v7813_v32 }
 0x497   :  { %2590 = vmatpush1.bf16.msra.mxu0 %v7819_v33  ;;  %2633 = vmatpush1.bf16.msra.mxu1 %v7826_v43 }
 0x498   :  { %2591 = vmatprep.subr.bf16.mxu0 %v7831_v52  ;;  %2634 = vmatprep.subr.bf16.mxu1 %v7837_v61 }
 0x49b   :  { %2592 = vmatpush1.bf16.msra.mxu0 %v7843_v6  ;;  %2635 = vmatpush1.bf16.msra.mxu1 %v7850_v8 }
 0x49c   :  { %2925 = vmatprep.subr.bf16.mxu0 %v7628_v38  ;;  %2968 = vmatprep.subr.bf16.mxu1 %v7702_v23 }
 0x551   :  { %v2263_v49 = vpop.f32.mrb[16].mxu0  ;;  %v2306_v54 = vpop.f32.mrb[16].mxu1 }
 0x552   :  { %v6009_v55 = vadd.f32 %v2263_v49, %v7515_v18  ;;  %v2265_v50 = vpop.f32.mrb[17].mxu0  ;;  %v2308_v9 = vpop.f32.mrb[17].mxu1  ;;  %v6041_v20 = vadd.f32 %v2306_v54, %v7528_v35 }
 0x553   :  { %v6010_v12 = vadd.f32 %v2265_v50, %v7519_v19  ;;  %v2267_v10 = vpop.f32.mrb[18].mxu0  ;;  %v2310_v30 = vpop.f32.mrb[18].mxu1  ;;  %v6042_v53 = vadd.f32 %v2308_v9, %v7533_v7 }
 0x554   :  { %v5723_v21 = vmul.f32 -1.442695, %v6009_v55  ;;  %v6011_v26 = vadd.f32 %v2267_v10, %v7515_v18  ;;  %v2269_v16 = vpop.f32.mrb[19].mxu0  ;;  %v2312_v28 = vpop.f32.mrb[19].mxu1  ;;  %v6043_v13 = vadd.f32 %v2310_v30, %v7528_v35  ;;  %v5725_v49 = vmul.f32 -1.442695, %v6041_v20 }
 0x555   :  { %v5724_v34 = vmul.f32 -1.442695, %v6010_v12  ;;  %v6012_v38 = vadd.f32 %v2269_v16, %v7519_v19  ;;  %v6044_v12 = vadd.f32 %v2312_v28, %v7533_v7 }
 0x556   :  { %6645 = vpow2.f32 %v5723_v21  ;;  %v5726_v51 = vmul.f32 -1.442695, %v6011_v26  ;;  %v5728_v55 = vmul.f32 -1.442695, %v6043_v13 }
 0x557   :  { %v5727_v22 = vmul.f32 -1.442695, %v6012_v38  ;;  %6647 = vpow2.f32 %v5724_v34 }
 0x558   :  { %6649 = vpow2.f32 %v5726_v51 }
 0x559   :  { %6651 = vpow2.f32 %v5727_v22 }
 0x55a   :  { %6653 = vtanh.f32 %v6042_v53 }
 0x55b   :  { %6655 = vpow2.f32 %v5725_v49 }
 0x55c   :  { %6657 = vpow2.f32 %v5728_v55 }
 0x560   :  { %v6646_v50 = vpop.eup %6645 }
 0x561   :  { %v2341_v10 = vadd.f32 1.0, %v6646_v50  ;;  %v6648_v21 = vpop.eup %6647 }
 0x562   :  { %v6650_v26 = vpop.eup %6649  ;;  %v2342_v16 = vadd.f32 1.0, %v6648_v21 }
 0x563   :  { %6659 = vrcp.f32 %v2341_v10  ;;  %v2344_v54 = vadd.f32 1.0, %v6650_v26  ;;  %v6652_v34 = vpop.eup %6651 }
 0x564   :  { %6661 = vtanh.f32 %v6044_v12  ;;  %v2345_v30 = vadd.f32 1.0, %v6652_v34  ;;  %v6654_v9 = vpop.eup %6653 }
 0x565   :  { %6663 = vrcp.f32 %v2342_v16  ;;  %v6656_v38 = vpop.eup %6655 }
 0x566   :  { %6665 = vrcp.f32 %v2344_v54  ;;  %v6658_v51 = vpop.eup %6657  ;;  %v2343_v49 = vadd.f32 1.0, %v6656_v38 }
 0x567   :  { %6667 = vrcp.f32 %v2345_v30  ;;  %v2346_v12 = vadd.f32 1.0, %v6658_v51 }
 0x568   :  { %6669 = vrcp.f32 %v2343_v49 }
 0x56d   :  { %v6660_v22 = vpop.eup %6659 }
 0x56e   :  { %v6662_v20 = vpop.eup %6661  ;;  %v2363_v28 = vmul.f32 %v6660_v22, %v6654_v9 }
 0x56f   :  { %v6664_v13 = vpop.eup %6663 }
 0x570   :  { %v6666_v53 = vpop.eup %6665  ;;  %v2361_v55 = vmul.f32 %v6664_v13, %v7866_v27 }
 0x571   :  { %v2364_v50 = vmul.f32 %v6666_v53, %v6662_v20  ;;  %v6668_v10 = vpop.eup %6667 }
 0x572   :  { %v7920_v21 = vadd.f32 %v2363_v28, %v2361_v55  ;;  %v2362_v26 = vmul.f32 %v6668_v10, %v7870_v45  ;;  %v6670_v54 = vpop.eup %6669 }
 0x574   :  { %6671 = vtanh.f32 %v7920_v21  ;;  %v7924_v16 = vadd.f32 %v2364_v50, %v2362_v26 }
 0x575   :  { %6673 = vrcp.f32 %v2346_v12 }
 0x576   :  { %6675 = vtanh.f32 %v7924_v16 }
 0x57e   :  { %v6672_v34 = vpop.eup %6671 }
 0x57f   :  { %v6674_v30 = vpop.eup %6673  ;;  %v2369_v27 = vmul.f32 %v6672_v34, %v6670_v54 }
 0x580   :  { %v6676_v9 = vpop.eup %6675 }
 0x581   :  { %v2370_v38 = vmul.f32 %v6676_v9, %v6674_v30 }
 0x583   :  { %v7927_v22 = vpack.c.bf16 %v2370_v38, %v2369_v27 }
 0x585   :  { %2610 = vmatmul.mubr.bf16.vlgmr.msra.gmra.mrb[20].mxu0 %v7927_v22  ;;  %2653 = vmatmul.mubr.bf16.vlgmr.msra.gmra.mrb[20].mxu1 %v7927_v22 }
 0x586   :  { %2926 = vmatpush1.bf16.msra.mxu0 %v7633_v39  ;;  %2969 = vmatpush1.bf16.msra.mxu1 %v7707_v57 }
 0x587   :  { %2927 = vmatprep.subr.bf16.mxu0 %v7640_v42  ;;  %2970 = vmatprep.subr.bf16.mxu1 %v7714_v58 }
 0x588   :  { %2957 = vmatprep.mubr.bf16.mxu0 %v7061_v1  ;;  %3000 = vmatprep.mubr.bf16.mxu1 %v7061_v1 }
 0x58a   :  { %2928 = vmatpush1.bf16.msra.mxu0 %v7645_v46  ;;  %2971 = vmatpush1.bf16.msra.mxu1 %v7719_v59 }
 0x58b   :  { %2929 = vmatprep.subr.bf16.mxu0 %v7652_v47  ;;  %2972 = vmatprep.subr.bf16.mxu1 %v7726_v60 }
 0x58e   :  { %2930 = vmatpush1.bf16.msra.mxu0 %v7657_v48  ;;  %2973 = vmatpush1.bf16.msra.mxu1 %v7731_v62 }
 0x58f   :  { %2931 = vmatprep.subr.bf16.mxu0 %v7738_v63  ;;  %2974 = vmatprep.subr.bf16.mxu1 %v7743_v0 }
 0x592   :  { %2932 = vmatpush1.bf16.msra.mxu0 %v7748_v2  ;;  %2975 = vmatpush1.bf16.msra.mxu1 %v7753_v3 }
 0x593   :  { %2933 = vmatprep.subr.bf16.mxu0 %v7767_v5  ;;  %2976 = vmatprep.subr.bf16.mxu1 %v7777_v36 }
 0x596   :  { %2934 = vmatpush1.bf16.msra.mxu0 %v7762_v4  ;;  %2977 = vmatpush1.bf16.msra.mxu1 %v7772_v24 }
 0x597   :  { %2935 = vmatprep.subr.bf16.mxu0 %v7782_v37  ;;  %2978 = vmatprep.subr.bf16.mxu1 %v7788_v40 }
 0x59a   :  { %2936 = vmatpush1.bf16.msra.mxu0 %v7795_v41  ;;  %2979 = vmatpush1.bf16.msra.mxu1 %v7802_v44 }
 0x59b   :  { %2937 = vmatprep.subr.bf16.mxu0 %v7807_v31  ;;  %2980 = vmatprep.subr.bf16.mxu1 %v7813_v32 }
 0x59e   :  { %2938 = vmatpush1.bf16.msra.mxu0 %v7819_v33  ;;  %2981 = vmatpush1.bf16.msra.mxu1 %v7826_v43 }
 0x59f   :  { %2939 = vmatprep.subr.bf16.mxu0 %v7831_v52  ;;  %2982 = vmatprep.subr.bf16.mxu1 %v7837_v61 }
 0x5a2   :  { %2940 = vmatpush1.bf16.msra.mxu0 %v7843_v6  ;;  %2983 = vmatpush1.bf16.msra.mxu1 %v7850_v8 }
 0x5a3   :  { %3316 = vmatprep.subr.bf16.mxu1 %v7702_v23 }
 0x658   :  { %v2611_v39 = vpop.f32.mrb[20].mxu0  ;;  %v2654_v42 = vpop.f32.mrb[20].mxu1 }
 0x659   :  { %v6013_v46 = vadd.f32 %v2611_v39, %v7515_v18  ;;  %v2613_v47 = vpop.f32.mrb[21].mxu0  ;;  %v2656_v48 = vpop.f32.mrb[21].mxu1  ;;  %v6045_v12 = vadd.f32 %v2654_v42, %v7528_v35 }
 0x65a   :  { %v6014_v45 = vadd.f32 %v2613_v47, %v7519_v19  ;;  %v2615_v51 = vpop.f32.mrb[22].mxu0  ;;  %v2658_v20 = vpop.f32.mrb[22].mxu1  ;;  %v6046_v54 = vadd.f32 %v2656_v48, %v7533_v7 }
 0x65b   :  { %v5761_v28 = vmul.f32 -1.442695, %v6013_v46  ;;  %v6015_v13 = vadd.f32 %v2615_v51, %v7515_v18  ;;  %v2617_v53 = vpop.f32.mrb[23].mxu0  ;;  %v2660_v49 = vpop.f32.mrb[23].mxu1  ;;  %v6047_v26 = vadd.f32 %v2658_v20, %v7528_v35  ;;  %v5763_v34 = vmul.f32 -1.442695, %v6045_v12 }
 0x65c   :  { %v5762_v55 = vmul.f32 -1.442695, %v6014_v45  ;;  %v6016_v50 = vadd.f32 %v2617_v53, %v7519_v19  ;;  %v6048_v27 = vadd.f32 %v2660_v49, %v7533_v7 }
 0x65d   :  { %6677 = vpow2.f32 %v5761_v28  ;;  %v5764_v23 = vmul.f32 -1.442695, %v6015_v13  ;;  %v5766_v30 = vmul.f32 -1.442695, %v6047_v26 }
 0x65e   :  { %v5765_v10 = vmul.f32 -1.442695, %v6016_v50  ;;  %6679 = vpow2.f32 %v5762_v55 }
 0x65f   :  { %6681 = vpow2.f32 %v5764_v23 }
 0x660   :  { %6683 = vpow2.f32 %v5765_v10 }
 0x661   :  { %6685 = vtanh.f32 %v6046_v54 }
 0x662   :  { %6687 = vpow2.f32 %v5763_v34 }
 0x663   :  { %6689 = vpow2.f32 %v5766_v30 }
 0x667   :  { %v6678_v9 = vpop.eup %6677 }
 0x668   :  { %v2689_v38 = vadd.f32 1.0, %v6678_v9  ;;  %v6680_v39 = vpop.eup %6679 }
 0x669   :  { %v6682_v46 = vpop.eup %6681  ;;  %v2690_v47 = vadd.f32 1.0, %v6680_v39 }
 0x66a   :  { %6691 = vrcp.f32 %v2689_v38  ;;  %v2692_v42 = vadd.f32 1.0, %v6682_v46  ;;  %v6684_v45 = vpop.eup %6683 }
 0x66b   :  { %6693 = vtanh.f32 %v6048_v27  ;;  %v2693_v51 = vadd.f32 1.0, %v6684_v45  ;;  %v6686_v48 = vpop.eup %6685 }
 0x66c   :  { %6695 = vrcp.f32 %v2690_v47  ;;  %v6688_v20 = vpop.eup %6687 }
 0x66d   :  { %6697 = vrcp.f32 %v2692_v42  ;;  %v6690_v28 = vpop.eup %6689  ;;  %v2691_v23 = vadd.f32 1.0, %v6688_v20 }
 0x66e   :  { %6699 = vrcp.f32 %v2693_v51  ;;  %v2694_v34 = vadd.f32 1.0, %v6690_v28 }
 0x66f   :  { %6701 = vrcp.f32 %v2691_v23 }
 0x674   :  { %v6692_v13 = vpop.eup %6691 }
 0x675   :  { %v6694_v53 = vpop.eup %6693  ;;  %v2711_v49 = vmul.f32 %v6692_v13, %v6686_v48 }
 0x676   :  { %v6696_v55 = vpop.eup %6695 }
 0x677   :  { %v6698_v50 = vpop.eup %6697  ;;  %v2709_v10 = vmul.f32 %v6696_v55, %v7920_v21 }
 0x678   :  { %v2712_v12 = vmul.f32 %v6698_v50, %v6694_v53  ;;  %v6700_v26 = vpop.eup %6699 }
 0x679   :  { %v7973_v54 = vadd.f32 %v2711_v49, %v2709_v10  ;;  %v2710_v30 = vmul.f32 %v6700_v26, %v7924_v16  ;;  %v6702_v27 = vpop.eup %6701 }
 0x67b   :  { %6703 = vtanh.f32 %v7973_v54  ;;  %v7977_v9 = vadd.f32 %v2712_v12, %v2710_v30 }
 0x67c   :  { %6705 = vrcp.f32 %v2694_v34 }
 0x67d   :  { %6707 = vtanh.f32 %v7977_v9 }
 0x685   :  { %v6704_v38 = vpop.eup %6703 }
 0x686   :  { %v6706_v39 = vpop.eup %6705  ;;  %v2717_v21 = vmul.f32 %v6704_v38, %v6702_v27 }
 0x687   :  { %v6708_v46 = vpop.eup %6707 }
 0x688   :  { %v2718_v47 = vmul.f32 %v6708_v46, %v6706_v39 }
 0x68a   :  { %v7980_v42 = vpack.c.bf16 %v2718_v47, %v2717_v21 }
 0x68c   :  { %2958 = vmatmul.mubr.bf16.vlgmr.msra.gmra.mrb[24].mxu0 %v7980_v42  ;;  %3001 = vmatmul.mubr.bf16.vlgmr.msra.gmra.mrb[24].mxu1 %v7980_v42 }
 0x68d   :  { %3317 = vmatpush1.bf16.msra.mxu1 %v7707_v57  ;;  %3305 = vmatprep.mubr.bf16.mxu0 %v7061_v1  ;;  %v6406_v57 = vld [vmem:[%s8987_s4 + $0x4] ss:$16 sps:$4 sm:$0xff]  }
 0x68e   :  { %3318 = vmatprep.subr.bf16.mxu1 %v7714_v58  ;;  %3348 = vmatprep.mubr.bf16.mxu1 %v7061_v1  ;;  %v6404_v58 = vld [vmem:[%s8987_s4] ss:$16 sps:$4 sm:$0xff]  }
 0x68f   :  { %3273 = vmatprep.subr.bf16.mxu0 %v6406_v57 }
 0x690   :  { %3274 = vmatpush1.bf16.msra.mxu0 %v6404_v58 }
 0x691   :  { %3319 = vmatpush1.bf16.msra.mxu1 %v7719_v59  ;;  %v6409_v59 = vld [vmem:[%s8987_s4 + $0x24] ss:$16 sps:$4 sm:$0xff]  }
 0x692   :  { %3320 = vmatprep.subr.bf16.mxu1 %v7726_v60  ;;  %v6407_v60 = vld [vmem:[%s8987_s4 + $0x20] ss:$16 sps:$4 sm:$0xff]   ;;  %3275 = vmatprep.subr.bf16.mxu0 %v6409_v59 }
 0x694   :  { %3276 = vmatpush1.bf16.msra.mxu0 %v6407_v60 }
 0x695   :  { %3321 = vmatpush1.bf16.msra.mxu1 %v7731_v62  ;;  %v6412_v62 = vld [vmem:[%s8987_s4 + $0x44] ss:$16 sps:$4 sm:$0xff]  }
 0x696   :  { %3322 = vmatprep.subr.bf16.mxu1 %v7743_v0  ;;  %v6410_v0 = vld [vmem:[%s8987_s4 + $0x40] ss:$16 sps:$4 sm:$0xff]   ;;  %3277 = vmatprep.subr.bf16.mxu0 %v6412_v62 }
 0x698   :  { %3278 = vmatpush1.bf16.msra.mxu0 %v6410_v0 }
 0x699   :  { %3323 = vmatpush1.bf16.msra.mxu1 %v7753_v3  ;;  %3279 = vmatprep.subr.bf16.mxu0 %v7738_v63  ;;  %v6418_v3 = vld [vmem:[%s8991_s6 + $0xc] ss:$16 sps:$4 sm:$0xff]   ;;  %v6415_v63 = vld [vmem:[%s8991_s6 + $0x4] ss:$16 sps:$4 sm:$0xff]  }
 0x69a   :  { %3324 = vmatprep.subr.bf16.mxu1 %v7777_v36 }
 0x69c   :  { %3280 = vmatpush1.bf16.msra.mxu0 %v7748_v2 }
 0x69d   :  { %3325 = vmatpush1.bf16.msra.mxu1 %v7772_v24  ;;  %3281 = vmatprep.subr.bf16.mxu0 %v7767_v5 }
 0x69e   :  { %3326 = vmatprep.subr.bf16.mxu1 %v7788_v40 }
 0x6a0   :  { %3282 = vmatpush1.bf16.msra.mxu0 %v7762_v4 }
 0x6a1   :  { %3327 = vmatpush1.bf16.msra.mxu1 %v7802_v44  ;;  %3283 = vmatprep.subr.bf16.mxu0 %v7782_v37 }
 0x6a2   :  { %3328 = vmatprep.subr.bf16.mxu1 %v7813_v32 }
 0x6a4   :  { %3284 = vmatpush1.bf16.msra.mxu0 %v7795_v41 }
 0x6a5   :  { %3329 = vmatpush1.bf16.msra.mxu1 %v7826_v43  ;;  %3285 = vmatprep.subr.bf16.mxu0 %v7807_v31 }
 0x6a6   :  { %3330 = vmatprep.subr.bf16.mxu1 %v7837_v61 }
 0x6a8   :  { %3286 = vmatpush1.bf16.msra.mxu0 %v7819_v33 }
 0x6a9   :  { %3331 = vmatpush1.bf16.msra.mxu1 %v7850_v8  ;;  %3287 = vmatprep.subr.bf16.mxu0 %v7831_v52 }
 0x6aa   :  { %3757 = vmatprep.subr.bf16.mxu1 %v6418_v3 }
 0x6ac   :  { %3288 = vmatpush1.bf16.msra.mxu0 %v7843_v6 }
 0x6ad   :  { %3644 = vmatprep.subr.bf16.mxu0 %v6415_v63 }
 0x75f   :  { %v2959_v2 = vpop.f32.mrb[24].mxu0  ;;  %v3002_v4 = vpop.f32.mrb[24].mxu1 }
 0x760   :  { %v6017_v5 = vadd.f32 %v2959_v2, %v7515_v18  ;;  %v2961_v24 = vpop.f32.mrb[25].mxu0  ;;  %v3004_v36 = vpop.f32.mrb[25].mxu1  ;;  %v6049_v8 = vadd.f32 %v3002_v4, %v7528_v35 }
 0x761   :  { %v6018_v37 = vadd.f32 %v2961_v24, %v7519_v19  ;;  %v2963_v40 = vpop.f32.mrb[26].mxu0  ;;  %v3006_v41 = vpop.f32.mrb[26].mxu1  ;;  %v6050_v45 = vadd.f32 %v3004_v36, %v7533_v7  ;;  %v6413_v24 = vld [vmem:[%s8991_s6] ss:$16 sps:$4 sm:$0xff]  }
 0x762   :  { %v5799_v44 = vmul.f32 -1.442695, %v6017_v5  ;;  %v6019_v31 = vadd.f32 %v2963_v40, %v7515_v18  ;;  %v2965_v32 = vpop.f32.mrb[27].mxu0  ;;  %v3008_v33 = vpop.f32.mrb[27].mxu1  ;;  %v6051_v16 = vadd.f32 %v3006_v41, %v7528_v35  ;;  %v5801_v51 = vmul.f32 -1.442695, %v6049_v8 }
 0x763   :  { %v5800_v43 = vmul.f32 -1.442695, %v6018_v37  ;;  %v6020_v52 = vadd.f32 %v2965_v32, %v7519_v19  ;;  %v6052_v28 = vadd.f32 %v3008_v33, %v7533_v7  ;;  %v6421_v37 = vld [vmem:[%s8991_s6 + $0x24] ss:$16 sps:$4 sm:$0xff]   ;;  %v6424_v40 = vld [vmem:[%s8991_s6 + $0x2c] ss:$16 sps:$4 sm:$0xff]  }
 0x764   :  { %6709 = vpow2.f32 %v5799_v44  ;;  %v5802_v61 = vmul.f32 -1.442695, %v6019_v31  ;;  %v5804_v48 = vmul.f32 -1.442695, %v6051_v16  ;;  %v6419_v41 = vld [vmem:[%s8991_s6 + $0x20] ss:$16 sps:$4 sm:$0xff]  }
 0x765   :  { %v5803_v6 = vmul.f32 -1.442695, %v6020_v52  ;;  %6711 = vpow2.f32 %v5800_v43  ;;  %v6422_v44 = vld [vmem:[%s8991_s6 + $0x28] ss:$16 sps:$4 sm:$0xff]   ;;  %v6427_v31 = vld [vmem:[%s8991_s6 + $0x44] ss:$16 sps:$4 sm:$0xff]  }
 0x766   :  { %6713 = vpow2.f32 %v5802_v61  ;;  %v6430_v32 = vld [vmem:[%s8991_s6 + $0x4c] ss:$16 sps:$4 sm:$0xff]   ;;  %v6425_v33 = vld [vmem:[%s8991_s6 + $0x40] ss:$16 sps:$4 sm:$0xff]   ;;  %v6428_v43 = vld [vmem:[%s8991_s6 + $0x48] ss:$16 sps:$4 sm:$0xff]  }
 0x767   :  { %6715 = vpow2.f32 %v5803_v6  ;;  %v6433_v52 = vld [vmem:[%s8991_s6 + $0x64] ss:$16 sps:$4 sm:$0xff]   ;;  %v6436_v61 = vld [vmem:[%s8991_s6 + $0x6c] ss:$16 sps:$4 sm:$0xff]   ;;  %v6431_v6 = vld [vmem:[%s8991_s6 + $0x60] ss:$16 sps:$4 sm:$0xff]  }
 0x768   :  { %6717 = vtanh.f32 %v6050_v45  ;;  %v6434_v8 = vld [vmem:[%s8991_s6 + $0x68] ss:$16 sps:$4 sm:$0xff]   ;;  %v6439_v16 = vld [vmem:[%s8991_s6 + $0x84] ss:$16 sps:$4 sm:$0xff]   ;;  %v6442_v45 = vld [vmem:[%s8991_s6 + $0x8c] ss:$16 sps:$4 sm:$0xff]  }
 0x769   :  { %6719 = vpow2.f32 %v5801_v51  ;;  %v6437_v51 = vld [vmem:[%s8991_s6 + $0x80] ss:$16 sps:$4 sm:$0xff]  }
 0x76a   :  { %6721 = vpow2.f32 %v5804_v48  ;;  %v6440_v48 = vld [vmem:[%s8991_s6 + $0x88] ss:$16 sps:$4 sm:$0xff]  }
 0x76e   :  { %v6710_v20 = vpop.eup %6709 }
 0x76f   :  { %v3037_v13 = vadd.f32 1.0, %v6710_v20  ;;  %v6712_v53 = vpop.eup %6711  ;;  %v6445_v20 = vld [vmem:[%s8991_s6 + $0xa4] ss:$16 sps:$4 sm:$0xff]  }
 0x770   :  { %v6714_v49 = vpop.eup %6713  ;;  %v3038_v55 = vadd.f32 1.0, %v6712_v53  ;;  %v6446_v53 = vld [vmem:[%s8991_s6 + $0xa8] ss:$16 sps:$4 sm:$0xff]  }
 0x771   :  { %6723 = vrcp.f32 %v3037_v13  ;;  %v3040_v50 = vadd.f32 1.0, %v6714_v49  ;;  %v6716_v23 = vpop.eup %6715  ;;  %v6443_v13 = vld [vmem:[%s8991_s6 + $0xa0] ss:$16 sps:$4 sm:$0xff]   ;;  %v6451_v49 = vld [vmem:[%s8991_s6 + $0xc4] ss:$16 sps:$4 sm:$0xff]  }
 0x772   :  { %6725 = vtanh.f32 %v6052_v28  ;;  %v3041_v10 = vadd.f32 1.0, %v6716_v23  ;;  %v6718_v12 = vpop.eup %6717  ;;  %v6448_v28 = vld [vmem:[%s8991_s6 + $0xac] ss:$16 sps:$4 sm:$0xff]   ;;  %v6452_v23 = vld [vmem:[%s8991_s6 + $0xc8] ss:$16 sps:$4 sm:$0xff]  }
 0x773   :  { %6727 = vrcp.f32 %v3038_v55  ;;  %v6720_v26 = vpop.eup %6719  ;;  %v6454_v55 = vld [vmem:[%s8991_s6 + $0xcc] ss:$16 sps:$4 sm:$0xff]  }
 0x774   :  { %6729 = vrcp.f32 %v3040_v50  ;;  %v6722_v34 = vpop.eup %6721  ;;  %v3039_v21 = vadd.f32 1.0, %v6720_v26  ;;  %v6449_v50 = vld [vmem:[%s8991_s6 + $0xc0] ss:$16 sps:$4 sm:$0xff]  }
 0x775   :  { %6731 = vrcp.f32 %v3041_v10  ;;  %v3042_v60 = vadd.f32 1.0, %v6722_v34  ;;  %v6457_v10 = vld [vmem:[%s8991_s6 + $0xe4] ss:$16 sps:$4 sm:$0xff]   ;;  %v6455_v26 = vld [vmem:[%s8991_s6 + $0xe0] ss:$16 sps:$4 sm:$0xff]  }
 0x776   :  { %6733 = vrcp.f32 %v3039_v21  ;;  %v6458_v34 = vld [vmem:[%s8991_s6 + $0xe8] ss:$16 sps:$4 sm:$0xff]   ;;  %v8241_v21 = vld [vmem:[%s8992_s7 + $0x4c] ss:$16 sps:$4 sm:$0xff]  }
 0x77b   :  { %v6724_v30 = vpop.eup %6723 }
 0x77c   :  { %v6726_v27 = vpop.eup %6725  ;;  %v3059_v38 = vmul.f32 %v6724_v30, %v6718_v12  ;;  %v6460_v12 = vld [vmem:[%s8991_s6 + $0xec] ss:$16 sps:$4 sm:$0xff]   ;;  %v8150_v30 = vld [vmem:[%s8992_s7 + $0x4] ss:$16 sps:$4 sm:$0xff]  }
 0x77d   :  { %v6728_v39 = vpop.eup %6727 }
 0x77e   :  { %v6730_v46 = vpop.eup %6729  ;;  %v3057_v47 = vmul.f32 %v6728_v39, %v7973_v54  ;;  %v8231_v39 = vld [vmem:[%s8992_s7 + $0x40] ss:$16 sps:$4 sm:$0xff]  }
 0x77f   :  { %v3060_v57 = vmul.f32 %v6730_v46, %v6726_v27  ;;  %v6732_v58 = vpop.eup %6731  ;;  %v8156_v27 = vld [vmem:[%s8992_s7] ss:$16 sps:$4 sm:$0xff]   ;;  %v8236_v46 = vld [vmem:[%s8992_s7 + $0x64] ss:$16 sps:$4 sm:$0xff]  }
 0x780   :  { %v8044_v59 = vadd.f32 %v3059_v38, %v3057_v47  ;;  %v3058_v62 = vmul.f32 %v6732_v58, %v7977_v9  ;;  %v6734_v3 = vpop.eup %6733  ;;  %v6416_v9 = vld [vmem:[%s8991_s6 + $0x8] ss:$16 sps:$4 sm:$0xff]   ;;  %v8226_v38 = vld [vmem:[%s8992_s7 + $0x44] ss:$16 sps:$4 sm:$0xff]   ;;  %v8258_v58 = vld [vmem:[%s8992_s7 + $0x60] ss:$16 sps:$4 sm:$0xff]  }
 0x781   :  { %v8247_v47 = vld [vmem:[%s8992_s7 + $0x48] ss:$16 sps:$4 sm:$0xff]  }
 0x782   :  { %6735 = vtanh.f32 %v8044_v59  ;;  %v8048_v0 = vadd.f32 %v3060_v57, %v3058_v62  ;;  %v8252_v57 = vld [vmem:[%s8992_s7 + $0x6c] ss:$16 sps:$4 sm:$0xff]   ;;  %v8271_v62 = vld [vmem:[%s8992_s7 + $0x68] ss:$16 sps:$4 sm:$0xff]  }
 0x783   :  { %6737 = vrcp.f32 %v3042_v60  ;;  %v8265_v60 = vld [vmem:[%s8992_s7 + $0x84] ss:$16 sps:$4 sm:$0xff]  }
 0x784   :  { %6739 = vtanh.f32 %v8048_v0 }
 0x78c   :  { %v6736_v63 = vpop.eup %6735 }
 0x78d   :  { %v6738_v2 = vpop.eup %6737  ;;  %v3065_v54 = vmul.f32 %v6736_v63, %v6734_v3  ;;  %v8277_v3 = vld [vmem:[%s8992_s7 + $0x8c] ss:$16 sps:$4 sm:$0xff]   ;;  %v8283_v63 = vld [vmem:[%s8992_s7 + $0x80] ss:$16 sps:$4 sm:$0xff]  }
 0x78e   :  { %v6740_v4 = vpop.eup %6739 }
 0x78f   :  { %v3066_v5 = vmul.f32 %v6740_v4, %v6738_v2  ;;  %v8289_v2 = vld [vmem:[%s8992_s7 + $0xa4] ss:$16 sps:$4 sm:$0xff]   ;;  %v8295_v4 = vld [vmem:[%s8992_s7 + $0x88] ss:$16 sps:$4 sm:$0xff]  }
 0x791   :  { %v8057_v36 = vpack.c.bf16 %v3066_v5, %v3065_v54  ;;  %v8301_v54 = vld [vmem:[%s8992_s7 + $0xac] ss:$16 sps:$4 sm:$0xff]   ;;  %v8307_v5 = vld [vmem:[%s8992_s7 + $0xa0] ss:$16 sps:$4 sm:$0xff]  }
 0x793   :  { %3306 = vmatmul.mubr.bf16.vlgmr.msra.gmra.mrb[28].mxu0 %v8057_v36  ;;  %3349 = vmatmul.mubr.bf16.vlgmr.msra.gmra.mrb[28].mxu1 %v8057_v36 }
 0x794   :  { %3645 = vmatpush1.bf16.msra.mxu0 %v6413_v24  ;;  %3758 = vmatpush1.bf16.msra.mxu1 %v6416_v9  ;;  %v8313_v24 = vld [vmem:[%s8992_s7 + $0xc4] ss:$16 sps:$4 sm:$0xff]   ;;  %v8319_v9 = vld [vmem:[%s8992_s7 + $0xa8] ss:$16 sps:$4 sm:$0xff]  }
 0x795   :  { %3646 = vmatprep.subr.bf16.mxu0 %v6421_v37  ;;  %3759 = vmatprep.subr.bf16.mxu1 %v6424_v40  ;;  %v8331_v37 = vld [vmem:[%s8992_s7 + $0xcc] ss:$16 sps:$4 sm:$0xff]   ;;  %v8338_v40 = vld [vmem:[%s8992_s7 + $0xe4] ss:$16 sps:$4 sm:$0xff]  }
 0x796   :  { %3676 = vmatprep.mubr.bf16.mxu0 %v7061_v1  ;;  %3789 = vmatprep.mubr.bf16.mxu1 %v7061_v1 }
 0x798   :  { %3647 = vmatpush1.bf16.msra.mxu0 %v6419_v41  ;;  %3760 = vmatpush1.bf16.msra.mxu1 %v6422_v44  ;;  %v8343_v41 = vld [vmem:[%s8992_s7 + $0xc8] ss:$16 sps:$4 sm:$0xff]   ;;  %v8349_v44 = vld [vmem:[%s8992_s7 + $0xec] ss:$16 sps:$4 sm:$0xff]  }
 0x799   :  { %3648 = vmatprep.subr.bf16.mxu0 %v6427_v31  ;;  %3761 = vmatprep.subr.bf16.mxu1 %v6430_v32  ;;  %v8355_v31 = vld [vmem:[%s8992_s7 + $0xe0] ss:$16 sps:$4 sm:$0xff]   ;;  %v8362_v32 = vld [vmem:[%s8992_s7 + $0xe8] ss:$16 sps:$4 sm:$0xff]  }
 0x79c   :  { %3649 = vmatpush1.bf16.msra.mxu0 %v6425_v33  ;;  %3762 = vmatpush1.bf16.msra.mxu1 %v6428_v43 }
 0x79d   :  { %3650 = vmatprep.subr.bf16.mxu0 %v6433_v52  ;;  %3763 = vmatprep.subr.bf16.mxu1 %v6436_v61 }
 0x7a0   :  { %3651 = vmatpush1.bf16.msra.mxu0 %v6431_v6  ;;  %3764 = vmatpush1.bf16.msra.mxu1 %v6434_v8 }
 0x7a1   :  { %3652 = vmatprep.subr.bf16.mxu0 %v6439_v16  ;;  %3765 = vmatprep.subr.bf16.mxu1 %v6442_v45 }
 0x7a4   :  { %3653 = vmatpush1.bf16.msra.mxu0 %v6437_v51  ;;  %3766 = vmatpush1.bf16.msra.mxu1 %v6440_v48 }
 0x7a5   :  { %3654 = vmatprep.subr.bf16.mxu0 %v6445_v20  ;;  %3767 = vmatprep.subr.bf16.mxu1 %v6448_v28 }
 0x7a8   :  { %3655 = vmatpush1.bf16.msra.mxu0 %v6443_v13  ;;  %3768 = vmatpush1.bf16.msra.mxu1 %v6446_v53 }
 0x7a9   :  { %3656 = vmatprep.subr.bf16.mxu0 %v6451_v49  ;;  %3769 = vmatprep.subr.bf16.mxu1 %v6454_v55 }
 0x7ac   :  { %3657 = vmatpush1.bf16.msra.mxu0 %v6449_v50  ;;  %3770 = vmatpush1.bf16.msra.mxu1 %v6452_v23 }
 0x7ad   :  { %3658 = vmatprep.subr.bf16.mxu0 %v6457_v10  ;;  %3771 = vmatprep.subr.bf16.mxu1 %v6460_v12 }
 0x7b0   :  { %3659 = vmatpush1.bf16.msra.mxu0 %v6455_v26  ;;  %3772 = vmatpush1.bf16.msra.mxu1 %v6458_v34 }
 0x7b1   :  { %4141 = vmatprep.subr.bf16.mxu0 %v8150_v30 }
 0x7b3   :  { %3677 = vmatmul.mubr.bf16.vlgmr.msra.gmra.mrb[32].mxu0 %v7551_v29  ;;  %3790 = vmatmul.mubr.bf16.vlgmr.msra.gmra.mrb[32].mxu1 %v7551_v29  ;;  %v8190_v29 = vld [vmem:[%s8992_s7 + $0xc] ss:$16 sps:$4 sm:$0xff]  }
 0x7b4   :  { %3686 = vmatprep.mubr.bf16.mxu0 %v7061_v1  ;;  %3799 = vmatprep.mubr.bf16.mxu1 %v7061_v1 }
 0x7b5   :  { %4142 = vmatpush1.bf16.msra.mxu0 %v8156_v27  ;;  %4184 = vmatprep.subr.bf16.mxu1 %v8190_v29 }
 0x7bb   :  { %3687 = vmatmul.mubr.bf16.gmra.mrb[36].mxu0 %v7604_v25  ;;  %3800 = vmatmul.mubr.bf16.gmra.mrb[36].mxu1 %v7604_v25  ;;  %v8195_v25 = vld [vmem:[%s8992_s7 + $0x8] ss:$16 sps:$4 sm:$0xff]  }
 0x7bc   :  { %3696 = vmatprep.mubr.bf16.mxu0 %v7061_v1  ;;  %3809 = vmatprep.mubr.bf16.mxu1 %v7061_v1 }
 0x7bd   :  { %4185 = vmatpush1.bf16.msra.mxu1 %v8195_v25 }
 0x7c3   :  { %3697 = vmatmul.mubr.bf16.gmra.mrb[40].mxu0 %v7688_v56  ;;  %3810 = vmatmul.mubr.bf16.gmra.mrb[40].mxu1 %v7688_v56  ;;  %v8202_v56 = vld [vmem:[%s8992_s7 + $0x24] ss:$16 sps:$4 sm:$0xff]  }
 0x7c4   :  { %3706 = vmatprep.mubr.bf16.mxu0 %v7061_v1  ;;  %3819 = vmatprep.mubr.bf16.mxu1 %v7061_v1 }
 0x7c5   :  { %4143 = vmatprep.subr.bf16.mxu0 %v8202_v56 }
 0x7cb   :  { %3707 = vmatmul.mubr.bf16.gmra.mrb[44].mxu0 %v7873_v11  ;;  %3820 = vmatmul.mubr.bf16.gmra.mrb[44].mxu1 %v7873_v11  ;;  %v8207_v11 = vld [vmem:[%s8992_s7 + $0x2c] ss:$16 sps:$4 sm:$0xff]  }
 0x7cc   :  { %3716 = vmatprep.mubr.bf16.mxu0 %v7061_v1  ;;  %3829 = vmatprep.mubr.bf16.mxu1 %v7061_v1 }
 0x7cd   :  { %4186 = vmatprep.subr.bf16.mxu1 %v8207_v11 }
 0x7d3   :  { %3717 = vmatmul.mubr.bf16.gmra.mrb[48].mxu0 %v7927_v22  ;;  %3830 = vmatmul.mubr.bf16.gmra.mrb[48].mxu1 %v7927_v22  ;;  %v8212_v22 = vld [vmem:[%s8992_s7 + $0x20] ss:$16 sps:$4 sm:$0xff]  }
 0x7d4   :  { %3726 = vmatprep.mubr.bf16.mxu0 %v7061_v1  ;;  %3839 = vmatprep.mubr.bf16.mxu1 %v7061_v1 }
 0x7d5   :  { %4144 = vmatpush1.bf16.msra.mxu0 %v8212_v22 }
 0x7d6   :  { %4145 = vmatprep.subr.bf16.mxu0 %v8226_v38 }
 0x7d9   :  { %4146 = vmatpush1.bf16.msra.mxu0 %v8231_v39 }
 0x7da   :  { %4147 = vmatprep.subr.bf16.mxu0 %v8236_v46 }
 0x7db   :  { %3727 = vmatmul.mubr.bf16.gmra.mrb[52].mxu0 %v7980_v42  ;;  %3840 = vmatmul.mubr.bf16.gmra.mrb[52].mxu1 %v7980_v42  ;;  %v8217_v42 = vld [vmem:[%s8992_s7 + $0x28] ss:$16 sps:$4 sm:$0xff]  }
 0x7dc   :  { %3736 = vmatprep.mubr.bf16.mxu0 %v7061_v1  ;;  %3849 = vmatprep.mubr.bf16.mxu1 %v7061_v1 }
 0x7dd   :  { %4187 = vmatpush1.bf16.msra.mxu1 %v8217_v42  ;;  %4148 = vmatpush1.bf16.msra.mxu0 %v8258_v58 }
 0x7de   :  { %4188 = vmatprep.subr.bf16.mxu1 %v8241_v21  ;;  %4149 = vmatprep.subr.bf16.mxu0 %v8265_v60 }
 0x7e1   :  { %4189 = vmatpush1.bf16.msra.mxu1 %v8247_v47  ;;  %4150 = vmatpush1.bf16.msra.mxu0 %v8283_v63 }
 0x7e2   :  { %4190 = vmatprep.subr.bf16.mxu1 %v8252_v57  ;;  %4151 = vmatprep.subr.bf16.mxu0 %v8289_v2 }
 0x7e3   :  { %3737 = vmatmul.mubr.bf16.gmra.mrb[56].mxu0 %v8057_v36  ;;  %3850 = vmatmul.mubr.bf16.gmra.mrb[56].mxu1 %v8057_v36  ;;  %v8326_v36 = vld [vmem:[%s8992_s7 + $0xc0] ss:$16 sps:$4 sm:$0xff]  }
 0x7e4   :  { %3746 = vmatprep.mubr.bf16.mxu0 %v7061_v1  ;;  %3859 = vmatprep.mubr.bf16.mxu1 %v7061_v1 }
 0x7e5   :  { %4191 = vmatpush1.bf16.msra.mxu1 %v8271_v62  ;;  %4152 = vmatpush1.bf16.msra.mxu0 %v8307_v5 }
 0x7e6   :  { %4192 = vmatprep.subr.bf16.mxu1 %v8277_v3  ;;  %4153 = vmatprep.subr.bf16.mxu0 %v8313_v24 }
 0x7e9   :  { %4193 = vmatpush1.bf16.msra.mxu1 %v8295_v4  ;;  %4154 = vmatpush1.bf16.msra.mxu0 %v8326_v36 }
 0x7ea   :  { %4194 = vmatprep.subr.bf16.mxu1 %v8301_v54  ;;  %4155 = vmatprep.subr.bf16.mxu0 %v8338_v40 }
 0x7ed   :  { %4195 = vmatpush1.bf16.msra.mxu1 %v8319_v9  ;;  %4156 = vmatpush1.bf16.msra.mxu0 %v8355_v31 }
 0x7ee   :  { %4196 = vmatprep.subr.bf16.mxu1 %v8331_v37  ;;  %4292 = vmatprep.subr.bf16.mxu0 %v8150_v30 }
 0x7f1   :  { %4197 = vmatpush1.bf16.msra.mxu1 %v8343_v41 }
 0x7f2   :  { %4198 = vmatprep.subr.bf16.mxu1 %v8349_v44 }
 0x7f5   :  { %4199 = vmatpush1.bf16.msra.mxu1 %v8362_v32 }
 0x7f6   :  { %4335 = vmatprep.subr.bf16.mxu1 %v8190_v29 }
 0x866   :  { %v3307_v33 = vpop.f32.mrb[28].mxu0  ;;  %v3350_v43 = vpop.f32.mrb[28].mxu1 }
 0x867   :  { %v6021_v52 = vadd.f32 %v3307_v33, %v7515_v18  ;;  %v3309_v61 = vpop.f32.mrb[29].mxu0  ;;  %v3352_v6 = vpop.f32.mrb[29].mxu1  ;;  %v6053_v50 = vadd.f32 %v3350_v43, %v7528_v35 }
 0x868   :  { %v6022_v8 = vadd.f32 %v3309_v61, %v7519_v19  ;;  %v3311_v16 = vpop.f32.mrb[30].mxu0  ;;  %v3354_v45 = vpop.f32.mrb[30].mxu1  ;;  %v6054_v10 = vadd.f32 %v3352_v6, %v7533_v7 }
 0x869   :  { %v5837_v51 = vmul.f32 -1.442695, %v6021_v52  ;;  %v6023_v48 = vadd.f32 %v3311_v16, %v7515_v18  ;;  %v3313_v20 = vpop.f32.mrb[31].mxu0  ;;  %v3356_v28 = vpop.f32.mrb[31].mxu1  ;;  %v6055_v23 = vadd.f32 %v3354_v45, %v7528_v35  ;;  %v5839_v12 = vmul.f32 -1.442695, %v6053_v50 }
 0x86a   :  { %v5838_v13 = vmul.f32 -1.442695, %v6022_v8  ;;  %v6024_v53 = vadd.f32 %v3313_v20, %v7519_v19  ;;  %v6056_v34 = vadd.f32 %v3356_v28, %v7533_v7 }
 0x86b   :  { %6741 = vpow2.f32 %v5837_v51  ;;  %v5840_v49 = vmul.f32 -1.442695, %v6023_v48  ;;  %v5842_v26 = vmul.f32 -1.442695, %v6055_v23 }
 0x86c   :  { %v5841_v55 = vmul.f32 -1.442695, %v6024_v53  ;;  %6743 = vpow2.f32 %v5838_v13 }
 0x86d   :  { %6745 = vpow2.f32 %v5840_v49 }
 0x86e   :  { %6747 = vpow2.f32 %v5841_v55 }
 0x86f   :  { %6749 = vtanh.f32 %v6054_v10 }
 0x870   :  { %6751 = vpow2.f32 %v5839_v12 }
 0x871   :  { %6753 = vpow2.f32 %v5842_v26 }
 0x875   :  { %v6742_v18 = vpop.eup %6741 }
 0x876   :  { %v3385_v33 = vadd.f32 1.0, %v6742_v18  ;;  %v6744_v19 = vpop.eup %6743 }
 0x877   :  { %v6746_v52 = vpop.eup %6745  ;;  %v3386_v61 = vadd.f32 1.0, %v6744_v19 }
 0x878   :  { %6755 = vrcp.f32 %v3385_v33  ;;  %v3388_v43 = vadd.f32 1.0, %v6746_v52  ;;  %v6748_v8 = vpop.eup %6747  ;;  %v48_v52 = vld [vmem:[%s8988_s1 + $0x10] sm:$0xff] }
 0x879   :  { %6757 = vtanh.f32 %v6056_v34  ;;  %v3389_v35 = vadd.f32 1.0, %v6748_v8  ;;  %v6750_v6 = vpop.eup %6749  ;;  %v3462_v8 = vld [vmem:[%s8995_s8] sm:$0xf] }
 0x87a   :  { %6759 = vrcp.f32 %v3386_v61  ;;  %v6752_v16 = vpop.eup %6751  ;;  %v49_v61 = vld [vmem:[%s8988_s1 + $0x18] sm:$0xff] }
 0x87b   :  { %6761 = vrcp.f32 %v3388_v43  ;;  %v6754_v45 = vpop.eup %6753  ;;  %v3387_v28 = vadd.f32 1.0, %v6752_v16  ;;  %v3948_v43 = vpack.c.bf16 %v49_v61, %v48_v52 }
 0x87c   :  { %6763 = vrcp.f32 %v3389_v35  ;;  %v3390_v23 = vadd.f32 1.0, %v6754_v45  ;;  %v8438_v35 = vrot.slane %v3462_v8, %v114_v15 }
 0x87d   :  { %6765 = vrcp.f32 %v3387_v28 }
 0x882   :  { %v6756_v51 = vpop.eup %6755 }
 0x883   :  { %v6758_v48 = vpop.eup %6757  ;;  %v3407_v7 = vmul.f32 %v6756_v51, %v6750_v6  ;;  %v8442_v6 = vrot.slane %v3462_v8, %v118_v17 }
 0x884   :  { %v6760_v20 = vpop.eup %6759 }
 0x885   :  { %v6762_v13 = vpop.eup %6761  ;;  %v3405_v53 = vmul.f32 %v6760_v20, %v8044_v59 }
 0x886   :  { %v3408_v49 = vmul.f32 %v6762_v13, %v6758_v48  ;;  %v6764_v55 = vpop.eup %6763 }
 0x887   :  { %v3409_v50 = vadd.f32 %v3407_v7, %v3405_v53  ;;  %v3406_v10 = vmul.f32 %v6764_v55, %v8048_v0  ;;  %v6766_v59 = vpop.eup %6765 }
 0x889   :  { %6767 = vtanh.f32 %v3409_v50  ;;  %5359 = vst [vmem:[%s8993_s13] sm:$0xff] %v3409_v50  ;;  %v3410_v12 = vadd.f32 %v3408_v49, %v3406_v10  ;;  %v9001_v50 = vsub.s32 2, %v7506_v14 }
 0x88a   :  { %6769 = vrcp.f32 %v3390_v23 }
 0x88b   :  { %6771 = vtanh.f32 %v3410_v12  ;;  %5360 = vst [vmem:[%s8993_s13 + $0x8] sm:$0xff] %v3410_v12  ;;  %v8449_v23 = vrot.slane %v3462_v8, %v9001_v50 }
 0x893   :  { %v6768_v26 = vpop.eup %6767 }
 0x894   :  { %v3413_v18 = vmul.f32 %v6768_v26, %v6766_v59  ;;  %v6770_v34 = vpop.eup %6769  ;;  %v9002_v26 = vsub.s32 3, %v7506_v14 }
 0x895   :  { %v6772_v33 = vpop.eup %6771 }
 0x896   :  { %5351 = vst [vmem:[%s8994_s12] sm:$0xff] %v3413_v18  ;;  %v3414_v0 = vmul.f32 %v6772_v33, %v6770_v34 }
 0x898   :  { %v3415_v19 = vpack.c.bf16 %v3414_v0, %v3413_v18  ;;  %5352 = vst [vmem:[%s8994_s12 + $0x8] sm:$0xff] %v3414_v0  ;;  %v8454_v18 = vrot.slane %v3462_v8, %v9002_v26 }
 0x89a   :  { %3747 = vmatmul.mubr.bf16.gmra.mrb[60].mxu0 %v3415_v19  ;;  %3860 = vmatmul.mubr.bf16.gmra.mrb[60].mxu1 %v3415_v19 }
 0x89b   :  { %4173 = vmatprep.mubr.bf16.mxu0 %v7061_v1  ;;  %4216 = vmatprep.mubr.bf16.mxu1 %v7061_v1 }
 0x8a2   :  { %4174 = vmatmul.mubr.bf16.vlgmr.msra.gmra.mrb[32].mxu0 %v3948_v43  ;;  %4217 = vmatmul.mubr.bf16.vlgmr.msra.gmra.mrb[32].mxu1 %v3948_v43 }
 0x8a3   :  { %4293 = vmatpush1.bf16.msra.mxu0 %v8156_v27  ;;  %4336 = vmatpush1.bf16.msra.mxu1 %v8195_v25 }
 0x8a4   :  { %4294 = vmatprep.subr.bf16.mxu0 %v8202_v56  ;;  %4337 = vmatprep.subr.bf16.mxu1 %v8207_v11 }
 0x8a5   :  { %4324 = vmatprep.mubr.bf16.mxu0 %v7061_v1  ;;  %4367 = vmatprep.mubr.bf16.mxu1 %v7061_v1 }
 0x8a7   :  { %4295 = vmatpush1.bf16.msra.mxu0 %v8212_v22  ;;  %4338 = vmatpush1.bf16.msra.mxu1 %v8217_v42 }
 0x8a8   :  { %4296 = vmatprep.subr.bf16.mxu0 %v8226_v38  ;;  %4339 = vmatprep.subr.bf16.mxu1 %v8241_v21 }
 0x8ab   :  { %4297 = vmatpush1.bf16.msra.mxu0 %v8231_v39  ;;  %4340 = vmatpush1.bf16.msra.mxu1 %v8247_v47 }
 0x8ac   :  { %4298 = vmatprep.subr.bf16.mxu0 %v8236_v46  ;;  %4341 = vmatprep.subr.bf16.mxu1 %v8252_v57 }
 0x8af   :  { %4299 = vmatpush1.bf16.msra.mxu0 %v8258_v58  ;;  %4342 = vmatpush1.bf16.msra.mxu1 %v8271_v62 }
 0x8b0   :  { %4300 = vmatprep.subr.bf16.mxu0 %v8265_v60  ;;  %4343 = vmatprep.subr.bf16.mxu1 %v8277_v3 }
 0x8b3   :  { %4301 = vmatpush1.bf16.msra.mxu0 %v8283_v63  ;;  %4344 = vmatpush1.bf16.msra.mxu1 %v8295_v4 }
 0x8b4   :  { %4302 = vmatprep.subr.bf16.mxu0 %v8289_v2  ;;  %4345 = vmatprep.subr.bf16.mxu1 %v8301_v54 }
 0x8b7   :  { %4303 = vmatpush1.bf16.msra.mxu0 %v8307_v5  ;;  %4346 = vmatpush1.bf16.msra.mxu1 %v8319_v9 }
 0x8b8   :  { %4304 = vmatprep.subr.bf16.mxu0 %v8313_v24  ;;  %4347 = vmatprep.subr.bf16.mxu1 %v8331_v37 }
 0x8bb   :  { %4305 = vmatpush1.bf16.msra.mxu0 %v8326_v36  ;;  %4348 = vmatpush1.bf16.msra.mxu1 %v8343_v41 }
 0x8bc   :  { %4306 = vmatprep.subr.bf16.mxu0 %v8338_v40  ;;  %4349 = vmatprep.subr.bf16.mxu1 %v8349_v44 }
 0x8bf   :  { %4307 = vmatpush1.bf16.msra.mxu0 %v8355_v31  ;;  %4350 = vmatpush1.bf16.msra.mxu1 %v8362_v32 }
 0x8c0   :  { %4443 = vmatprep.subr.bf16.mxu0 %v8150_v30  ;;  %4486 = vmatprep.subr.bf16.mxu1 %v8190_v29 }
 0x975   :  { %v4175_v16 = vpop.f32.mrb[32].mxu0  ;;  %v4218_v45 = vpop.f32.mrb[32].mxu1 }
 0x976   :  { %v6057_v51 = vadd.f32 %v4175_v16, %v8438_v35  ;;  %v4177_v48 = vpop.f32.mrb[33].mxu0  ;;  %v4220_v7 = vpop.f32.mrb[33].mxu1  ;;  %v6089_v34 = vadd.f32 %v4218_v45, %v8449_v23 }
 0x977   :  { %v6058_v20 = vadd.f32 %v4177_v48, %v8442_v6  ;;  %v4179_v28 = vpop.f32.mrb[34].mxu0  ;;  %v4222_v13 = vpop.f32.mrb[34].mxu1  ;;  %v6090_v0 = vadd.f32 %v4220_v7, %v8454_v18 }
 0x978   :  { %v5907_v53 = vmul.f32 -1.442695, %v6057_v51  ;;  %v6059_v49 = vadd.f32 %v4179_v28, %v8438_v35  ;;  %v4181_v55 = vpop.f32.mrb[35].mxu0  ;;  %v4224_v15 = vpop.f32.mrb[35].mxu1  ;;  %v6091_v33 = vadd.f32 %v4222_v13, %v8449_v23  ;;  %v5909_v19 = vmul.f32 -1.442695, %v6089_v34 }
 0x979   :  { %v5908_v17 = vmul.f32 -1.442695, %v6058_v20  ;;  %v6060_v10 = vadd.f32 %v4181_v55, %v8442_v6  ;;  %v6092_v43 = vadd.f32 %v4224_v15, %v8454_v18 }
 0x97a   :  { %6773 = vpow2.f32 %v5907_v53  ;;  %v5910_v12 = vmul.f32 -1.442695, %v6059_v49  ;;  %v5912_v52 = vmul.f32 -1.442695, %v6091_v33  ;;  %v56_v49 = vld [vmem:[%s8990_s2 + $0x10] sm:$0xff] }
 0x97b   :  { %v5911_v59 = vmul.f32 -1.442695, %v6060_v10  ;;  %6775 = vpow2.f32 %v5908_v17 }
 0x97c   :  { %6777 = vpow2.f32 %v5910_v12 }
 0x97d   :  { %6779 = vpow2.f32 %v5911_v59  ;;  %v57_v59 = vld [vmem:[%s8990_s2 + $0x18] sm:$0xff] }
 0x97e   :  { %6781 = vtanh.f32 %v6090_v0 }
 0x97f   :  { %6783 = vpow2.f32 %v5909_v19 }
 0x980   :  { %6785 = vpow2.f32 %v5912_v52 }
 0x984   :  { %v6774_v61 = vpop.eup %6773 }
 0x985   :  { %v4253_v16 = vadd.f32 1.0, %v6774_v61  ;;  %v6776_v51 = vpop.eup %6775 }
 0x986   :  { %v6778_v14 = vpop.eup %6777  ;;  %v4254_v8 = vadd.f32 1.0, %v6776_v51 }
 0x987   :  { %6787 = vrcp.f32 %v4253_v16  ;;  %v4256_v45 = vadd.f32 1.0, %v6778_v14  ;;  %v6780_v48 = vpop.eup %6779 }
 0x988   :  { %6789 = vtanh.f32 %v6092_v43  ;;  %v4257_v20 = vadd.f32 1.0, %v6780_v48  ;;  %v6782_v7 = vpop.eup %6781 }
 0x989   :  { %6791 = vrcp.f32 %v4254_v8  ;;  %v6784_v28 = vpop.eup %6783 }
 0x98a   :  { %6793 = vrcp.f32 %v4256_v45  ;;  %v6786_v13 = vpop.eup %6785  ;;  %v4255_v10 = vadd.f32 1.0, %v6784_v28 }
 0x98b   :  { %6795 = vrcp.f32 %v4257_v20  ;;  %v4258_v0 = vadd.f32 1.0, %v6786_v13 }
 0x98c   :  { %6797 = vrcp.f32 %v4255_v10 }
 0x991   :  { %v6788_v53 = vpop.eup %6787 }
 0x992   :  { %v6790_v55 = vpop.eup %6789  ;;  %v4275_v15 = vmul.f32 %v6788_v53, %v6782_v7 }
 0x993   :  { %v6792_v50 = vpop.eup %6791 }
 0x994   :  { %v6794_v17 = vpop.eup %6793  ;;  %v4273_v12 = vmul.f32 %v6792_v50, %v56_v49 }
 0x995   :  { %v4276_v26 = vmul.f32 %v6794_v17, %v6790_v55  ;;  %v6796_v34 = vpop.eup %6795 }
 0x996   :  { %v8466_v33 = vadd.f32 %v4275_v15, %v4273_v12  ;;  %v4274_v19 = vmul.f32 %v6796_v34, %v57_v59  ;;  %v6798_v61 = vpop.eup %6797 }
 0x998   :  { %6799 = vtanh.f32 %v8466_v33  ;;  %v8469_v52 = vadd.f32 %v4276_v26, %v4274_v19 }
 0x999   :  { %6801 = vrcp.f32 %v4258_v0 }
 0x99a   :  { %6803 = vtanh.f32 %v8469_v52 }
 0x9a2   :  { %v6800_v43 = vpop.eup %6799 }
 0x9a3   :  { %v6802_v16 = vpop.eup %6801  ;;  %v4281_v14 = vmul.f32 %v6800_v43, %v6798_v61 }
 0x9a4   :  { %v6804_v51 = vpop.eup %6803 }
 0x9a5   :  { %v4282_v8 = vmul.f32 %v6804_v51, %v6802_v16 }
 0x9a7   :  { %v4291_v45 = vpack.c.bf16 %v4282_v8, %v4281_v14 }
 0x9a9   :  { %4325 = vmatmul.mubr.bf16.vlgmr.msra.gmra.mrb[36].mxu0 %v4291_v45  ;;  %4368 = vmatmul.mubr.bf16.vlgmr.msra.gmra.mrb[36].mxu1 %v4291_v45 }
 0x9aa   :  { %4444 = vmatpush1.bf16.msra.mxu0 %v8156_v27  ;;  %4487 = vmatpush1.bf16.msra.mxu1 %v8195_v25 }
 0x9ab   :  { %4445 = vmatprep.subr.bf16.mxu0 %v8202_v56  ;;  %4488 = vmatprep.subr.bf16.mxu1 %v8207_v11 }
 0x9ac   :  { %4475 = vmatprep.mubr.bf16.mxu0 %v7061_v1  ;;  %4518 = vmatprep.mubr.bf16.mxu1 %v7061_v1 }
 0x9ae   :  { %4446 = vmatpush1.bf16.msra.mxu0 %v8212_v22  ;;  %4489 = vmatpush1.bf16.msra.mxu1 %v8217_v42 }
 0x9af   :  { %4447 = vmatprep.subr.bf16.mxu0 %v8226_v38  ;;  %4490 = vmatprep.subr.bf16.mxu1 %v8241_v21 }
 0x9b2   :  { %4448 = vmatpush1.bf16.msra.mxu0 %v8231_v39  ;;  %4491 = vmatpush1.bf16.msra.mxu1 %v8247_v47 }
 0x9b3   :  { %4449 = vmatprep.subr.bf16.mxu0 %v8236_v46  ;;  %4492 = vmatprep.subr.bf16.mxu1 %v8252_v57 }
 0x9b6   :  { %4450 = vmatpush1.bf16.msra.mxu0 %v8258_v58  ;;  %4493 = vmatpush1.bf16.msra.mxu1 %v8271_v62 }
 0x9b7   :  { %4451 = vmatprep.subr.bf16.mxu0 %v8265_v60  ;;  %4494 = vmatprep.subr.bf16.mxu1 %v8277_v3 }
 0x9ba   :  { %4452 = vmatpush1.bf16.msra.mxu0 %v8283_v63  ;;  %4495 = vmatpush1.bf16.msra.mxu1 %v8295_v4 }
 0x9bb   :  { %4453 = vmatprep.subr.bf16.mxu0 %v8289_v2  ;;  %4496 = vmatprep.subr.bf16.mxu1 %v8301_v54 }
 0x9be   :  { %4454 = vmatpush1.bf16.msra.mxu0 %v8307_v5  ;;  %4497 = vmatpush1.bf16.msra.mxu1 %v8319_v9 }
 0x9bf   :  { %4455 = vmatprep.subr.bf16.mxu0 %v8313_v24  ;;  %4498 = vmatprep.subr.bf16.mxu1 %v8331_v37 }
 0x9c2   :  { %4456 = vmatpush1.bf16.msra.mxu0 %v8326_v36  ;;  %4499 = vmatpush1.bf16.msra.mxu1 %v8343_v41 }
 0x9c3   :  { %4457 = vmatprep.subr.bf16.mxu0 %v8338_v40  ;;  %4500 = vmatprep.subr.bf16.mxu1 %v8349_v44 }
 0x9c6   :  { %4458 = vmatpush1.bf16.msra.mxu0 %v8355_v31  ;;  %4501 = vmatpush1.bf16.msra.mxu1 %v8362_v32 }
 0x9c7   :  { %4594 = vmatprep.subr.bf16.mxu0 %v8150_v30  ;;  %4637 = vmatprep.subr.bf16.mxu1 %v8190_v29 }
 0xa7c   :  { %v4326_v48 = vpop.f32.mrb[36].mxu0  ;;  %v4369_v20 = vpop.f32.mrb[36].mxu1 }
 0xa7d   :  { %v6061_v7 = vadd.f32 %v4326_v48, %v8438_v35  ;;  %v4328_v28 = vpop.f32.mrb[37].mxu0  ;;  %v4371_v13 = vpop.f32.mrb[37].mxu1  ;;  %v6093_v0 = vadd.f32 %v4369_v20, %v8449_v23 }
 0xa7e   :  { %v6062_v53 = vadd.f32 %v4328_v28, %v8442_v6  ;;  %v4330_v49 = vpop.f32.mrb[38].mxu0  ;;  %v4373_v55 = vpop.f32.mrb[38].mxu1  ;;  %v6094_v61 = vadd.f32 %v4371_v13, %v8454_v18 }
 0xa7f   :  { %v5913_v15 = vmul.f32 -1.442695, %v6061_v7  ;;  %v6063_v50 = vadd.f32 %v4330_v49, %v8438_v35  ;;  %v4332_v17 = vpop.f32.mrb[39].mxu0  ;;  %v4375_v10 = vpop.f32.mrb[39].mxu1  ;;  %v6095_v19 = vadd.f32 %v4373_v55, %v8449_v23  ;;  %v5915_v43 = vmul.f32 -1.442695, %v6093_v0 }
 0xa80   :  { %v5914_v12 = vmul.f32 -1.442695, %v6062_v53  ;;  %v6064_v59 = vadd.f32 %v4332_v17, %v8442_v6  ;;  %v6096_v14 = vadd.f32 %v4375_v10, %v8454_v18 }
 0xa81   :  { %6805 = vpow2.f32 %v5913_v15  ;;  %v5916_v26 = vmul.f32 -1.442695, %v6063_v50  ;;  %v5918_v16 = vmul.f32 -1.442695, %v6095_v19 }
 0xa82   :  { %v5917_v34 = vmul.f32 -1.442695, %v6064_v59  ;;  %6807 = vpow2.f32 %v5914_v12 }
 0xa83   :  { %6809 = vpow2.f32 %v5916_v26 }
 0xa84   :  { %6811 = vpow2.f32 %v5917_v34 }
 0xa85   :  { %6813 = vtanh.f32 %v6094_v61 }
 0xa86   :  { %6815 = vpow2.f32 %v5915_v43 }
 0xa87   :  { %6817 = vpow2.f32 %v5918_v16 }
 0xa8b   :  { %v6806_v51 = vpop.eup %6805 }
 0xa8c   :  { %v4404_v8 = vadd.f32 1.0, %v6806_v51  ;;  %v6808_v45 = vpop.eup %6807 }
 0xa8d   :  { %v6810_v48 = vpop.eup %6809  ;;  %v4405_v7 = vadd.f32 1.0, %v6808_v45 }
 0xa8e   :  { %6819 = vrcp.f32 %v4404_v8  ;;  %v4407_v20 = vadd.f32 1.0, %v6810_v48  ;;  %v6812_v28 = vpop.eup %6811 }
 0xa8f   :  { %6821 = vtanh.f32 %v6096_v14  ;;  %v4408_v53 = vadd.f32 1.0, %v6812_v28  ;;  %v6814_v13 = vpop.eup %6813 }
 0xa90   :  { %6823 = vrcp.f32 %v4405_v7  ;;  %v6816_v49 = vpop.eup %6815 }
 0xa91   :  { %6825 = vrcp.f32 %v4407_v20  ;;  %v6818_v55 = vpop.eup %6817  ;;  %v4406_v59 = vadd.f32 1.0, %v6816_v49 }
 0xa92   :  { %6827 = vrcp.f32 %v4408_v53  ;;  %v4409_v61 = vadd.f32 1.0, %v6818_v55 }
 0xa93   :  { %6829 = vrcp.f32 %v4406_v59 }
 0xa98   :  { %v6820_v15 = vpop.eup %6819 }
 0xa99   :  { %v6822_v50 = vpop.eup %6821  ;;  %v4426_v17 = vmul.f32 %v6820_v15, %v6814_v13 }
 0xa9a   :  { %v6824_v10 = vpop.eup %6823 }
 0xa9b   :  { %v6826_v12 = vpop.eup %6825  ;;  %v4424_v26 = vmul.f32 %v6824_v10, %v8466_v33 }
 0xa9c   :  { %v4427_v34 = vmul.f32 %v6826_v12, %v6822_v50  ;;  %v6828_v0 = vpop.eup %6827 }
 0xa9d   :  { %v8515_v19 = vadd.f32 %v4426_v17, %v4424_v26  ;;  %v4425_v43 = vmul.f32 %v6828_v0, %v8469_v52  ;;  %v6830_v51 = vpop.eup %6829 }
 0xa9f   :  { %6831 = vtanh.f32 %v8515_v19  ;;  %v8519_v16 = vadd.f32 %v4427_v34, %v4425_v43 }
 0xaa0   :  { %6833 = vrcp.f32 %v4409_v61 }
 0xaa1   :  { %6835 = vtanh.f32 %v8519_v16 }
 0xaa9   :  { %v6832_v14 = vpop.eup %6831 }
 0xaaa   :  { %v6834_v8 = vpop.eup %6833  ;;  %v4432_v33 = vmul.f32 %v6832_v14, %v6830_v51 }
 0xaab   :  { %v6836_v45 = vpop.eup %6835 }
 0xaac   :  { %v4433_v48 = vmul.f32 %v6836_v45, %v6834_v8 }
 0xaae   :  { %v4442_v7 = vpack.c.bf16 %v4433_v48, %v4432_v33 }
 0xab0   :  { %4476 = vmatmul.mubr.bf16.vlgmr.msra.gmra.mrb[40].mxu0 %v4442_v7  ;;  %4519 = vmatmul.mubr.bf16.vlgmr.msra.gmra.mrb[40].mxu1 %v4442_v7 }
 0xab1   :  { %4595 = vmatpush1.bf16.msra.mxu0 %v8156_v27  ;;  %4638 = vmatpush1.bf16.msra.mxu1 %v8195_v25 }
 0xab2   :  { %4596 = vmatprep.subr.bf16.mxu0 %v8202_v56  ;;  %4639 = vmatprep.subr.bf16.mxu1 %v8207_v11 }
 0xab3   :  { %4626 = vmatprep.mubr.bf16.mxu0 %v7061_v1  ;;  %4669 = vmatprep.mubr.bf16.mxu1 %v7061_v1 }
 0xab5   :  { %4597 = vmatpush1.bf16.msra.mxu0 %v8212_v22  ;;  %4640 = vmatpush1.bf16.msra.mxu1 %v8217_v42 }
 0xab6   :  { %4598 = vmatprep.subr.bf16.mxu0 %v8226_v38  ;;  %4641 = vmatprep.subr.bf16.mxu1 %v8241_v21 }
 0xab9   :  { %4599 = vmatpush1.bf16.msra.mxu0 %v8231_v39  ;;  %4642 = vmatpush1.bf16.msra.mxu1 %v8247_v47 }
 0xaba   :  { %4600 = vmatprep.subr.bf16.mxu0 %v8236_v46  ;;  %4643 = vmatprep.subr.bf16.mxu1 %v8252_v57 }
 0xabd   :  { %4601 = vmatpush1.bf16.msra.mxu0 %v8258_v58  ;;  %4644 = vmatpush1.bf16.msra.mxu1 %v8271_v62 }
 0xabe   :  { %4602 = vmatprep.subr.bf16.mxu0 %v8265_v60  ;;  %4645 = vmatprep.subr.bf16.mxu1 %v8277_v3 }
 0xac1   :  { %4603 = vmatpush1.bf16.msra.mxu0 %v8283_v63  ;;  %4646 = vmatpush1.bf16.msra.mxu1 %v8295_v4 }
 0xac2   :  { %4604 = vmatprep.subr.bf16.mxu0 %v8289_v2  ;;  %4647 = vmatprep.subr.bf16.mxu1 %v8301_v54 }
 0xac5   :  { %4605 = vmatpush1.bf16.msra.mxu0 %v8307_v5  ;;  %4648 = vmatpush1.bf16.msra.mxu1 %v8319_v9 }
 0xac6   :  { %4606 = vmatprep.subr.bf16.mxu0 %v8313_v24  ;;  %4649 = vmatprep.subr.bf16.mxu1 %v8331_v37 }
 0xac9   :  { %4607 = vmatpush1.bf16.msra.mxu0 %v8326_v36  ;;  %4650 = vmatpush1.bf16.msra.mxu1 %v8343_v41 }
 0xaca   :  { %4608 = vmatprep.subr.bf16.mxu0 %v8338_v40  ;;  %4651 = vmatprep.subr.bf16.mxu1 %v8349_v44 }
 0xacd   :  { %4609 = vmatpush1.bf16.msra.mxu0 %v8355_v31  ;;  %4652 = vmatpush1.bf16.msra.mxu1 %v8362_v32 }
 0xace   :  { %4745 = vmatprep.subr.bf16.mxu0 %v8150_v30  ;;  %4788 = vmatprep.subr.bf16.mxu1 %v8190_v29 }
 0xb83   :  { %v4477_v52 = vpop.f32.mrb[40].mxu0  ;;  %v4520_v20 = vpop.f32.mrb[40].mxu1 }
 0xb84   :  { %v6065_v28 = vadd.f32 %v4477_v52, %v8438_v35  ;;  %v4479_v53 = vpop.f32.mrb[41].mxu0  ;;  %v4522_v13 = vpop.f32.mrb[41].mxu1  ;;  %v6097_v0 = vadd.f32 %v4520_v20, %v8449_v23 }
 0xb85   :  { %v6066_v49 = vadd.f32 %v4479_v53, %v8442_v6  ;;  %v4481_v55 = vpop.f32.mrb[42].mxu0  ;;  %v4524_v15 = vpop.f32.mrb[42].mxu1  ;;  %v6098_v43 = vadd.f32 %v4522_v13, %v8454_v18 }
 0xb86   :  { %v5919_v50 = vmul.f32 -1.442695, %v6065_v28  ;;  %v6067_v17 = vadd.f32 %v4481_v55, %v8438_v35  ;;  %v4483_v10 = vpop.f32.mrb[43].mxu0  ;;  %v4526_v12 = vpop.f32.mrb[43].mxu1  ;;  %v6099_v61 = vadd.f32 %v4524_v15, %v8449_v23  ;;  %v5921_v51 = vmul.f32 -1.442695, %v6097_v0 }
 0xb87   :  { %v5920_v59 = vmul.f32 -1.442695, %v6066_v49  ;;  %v6068_v30 = vadd.f32 %v4483_v10, %v8442_v6  ;;  %v6100_v45 = vadd.f32 %v4526_v12, %v8454_v18 }
 0xb88   :  { %6837 = vpow2.f32 %v5919_v50  ;;  %v5922_v26 = vmul.f32 -1.442695, %v6067_v17  ;;  %v5924_v14 = vmul.f32 -1.442695, %v6099_v61 }
 0xb89   :  { %v5923_v34 = vmul.f32 -1.442695, %v6068_v30  ;;  %6839 = vpow2.f32 %v5920_v59 }
 0xb8a   :  { %6841 = vpow2.f32 %v5922_v26 }
 0xb8b   :  { %6843 = vpow2.f32 %v5923_v34 }
 0xb8c   :  { %6845 = vtanh.f32 %v6098_v43 }
 0xb8d   :  { %6847 = vpow2.f32 %v5921_v51 }
 0xb8e   :  { %6849 = vpow2.f32 %v5924_v14 }
 0xb92   :  { %v6838_v8 = vpop.eup %6837 }
 0xb93   :  { %v4555_v33 = vadd.f32 1.0, %v6838_v8  ;;  %v6840_v48 = vpop.eup %6839 }
 0xb94   :  { %v6842_v7 = vpop.eup %6841  ;;  %v4556_v52 = vadd.f32 1.0, %v6840_v48 }
 0xb95   :  { %6851 = vrcp.f32 %v4555_v33  ;;  %v4558_v20 = vadd.f32 1.0, %v6842_v7  ;;  %v6844_v28 = vpop.eup %6843 }
 0xb96   :  { %6853 = vtanh.f32 %v6100_v45  ;;  %v4559_v53 = vadd.f32 1.0, %v6844_v28  ;;  %v6846_v13 = vpop.eup %6845 }
 0xb97   :  { %6855 = vrcp.f32 %v4556_v52  ;;  %v6848_v49 = vpop.eup %6847 }
 0xb98   :  { %6857 = vrcp.f32 %v4558_v20  ;;  %v6850_v55 = vpop.eup %6849  ;;  %v4557_v59 = vadd.f32 1.0, %v6848_v49 }
 0xb99   :  { %6859 = vrcp.f32 %v4559_v53  ;;  %v4560_v61 = vadd.f32 1.0, %v6850_v55 }
 0xb9a   :  { %6861 = vrcp.f32 %v4557_v59 }
 0xb9f   :  { %v6852_v15 = vpop.eup %6851 }
 0xba0   :  { %v6854_v50 = vpop.eup %6853  ;;  %v4577_v17 = vmul.f32 %v6852_v15, %v6846_v13 }
 0xba1   :  { %v6856_v10 = vpop.eup %6855 }
 0xba2   :  { %v6858_v12 = vpop.eup %6857  ;;  %v4575_v30 = vmul.f32 %v6856_v10, %v8515_v19 }
 0xba3   :  { %v4578_v26 = vmul.f32 %v6858_v12, %v6854_v50  ;;  %v6860_v34 = vpop.eup %6859 }
 0xba4   :  { %v8565_v0 = vadd.f32 %v4577_v17, %v4575_v30  ;;  %v4576_v43 = vmul.f32 %v6860_v34, %v8519_v16  ;;  %v6862_v14 = vpop.eup %6861 }
 0xba6   :  { %6863 = vtanh.f32 %v8565_v0  ;;  %v8569_v51 = vadd.f32 %v4578_v26, %v4576_v43 }
 0xba7   :  { %6865 = vrcp.f32 %v4560_v61 }
 0xba8   :  { %6867 = vtanh.f32 %v8569_v51 }
 0xbb0   :  { %v6864_v8 = vpop.eup %6863 }
 0xbb1   :  { %v6866_v45 = vpop.eup %6865  ;;  %v4583_v19 = vmul.f32 %v6864_v8, %v6862_v14 }
 0xbb2   :  { %v6868_v33 = vpop.eup %6867 }
 0xbb3   :  { %v4584_v48 = vmul.f32 %v6868_v33, %v6866_v45  ;;  %v8636_v33 = vld [vmem:[%s8992_s7 + $0x8] ss:$16 sps:$4 sm:$0xff]  }
 0xbb5   :  { %v4593_v7 = vpack.c.bf16 %v4584_v48, %v4583_v19  ;;  %v8642_v19 = vld [vmem:[%s8992_s7 + $0x24] ss:$16 sps:$4 sm:$0xff]   ;;  %v8648_v48 = vld [vmem:[%s8992_s7 + $0x2c] ss:$16 sps:$4 sm:$0xff]  }
 0xbb7   :  { %4627 = vmatmul.mubr.bf16.vlgmr.msra.gmra.mrb[44].mxu0 %v4593_v7  ;;  %4670 = vmatmul.mubr.bf16.vlgmr.msra.gmra.mrb[44].mxu1 %v4593_v7  ;;  %v8656_v7 = vld [vmem:[%s8992_s7 + $0x20] ss:$16 sps:$4 sm:$0xff]  }
 0xbb8   :  { %4746 = vmatpush1.bf16.msra.mxu0 %v8156_v27  ;;  %4789 = vmatpush1.bf16.msra.mxu1 %v8195_v25  ;;  %v8607_v27 = vld [vmem:[%s8992_s7 + $0x4] ss:$16 sps:$4 sm:$0xff]  }
 0xbb9   :  { %4747 = vmatprep.subr.bf16.mxu0 %v8202_v56  ;;  %4790 = vmatprep.subr.bf16.mxu1 %v8207_v11 }
 0xbba   :  { %4777 = vmatprep.mubr.bf16.mxu0 %v7061_v1  ;;  %4820 = vmatprep.mubr.bf16.mxu1 %v7061_v1 }
 0xbbc   :  { %4748 = vmatpush1.bf16.msra.mxu0 %v8212_v22  ;;  %4791 = vmatpush1.bf16.msra.mxu1 %v8217_v42 }
 0xbbd   :  { %4749 = vmatprep.subr.bf16.mxu0 %v8226_v38  ;;  %4792 = vmatprep.subr.bf16.mxu1 %v8241_v21 }
 0xbc0   :  { %4750 = vmatpush1.bf16.msra.mxu0 %v8231_v39  ;;  %4793 = vmatpush1.bf16.msra.mxu1 %v8247_v47 }
 0xbc1   :  { %4751 = vmatprep.subr.bf16.mxu0 %v8236_v46  ;;  %4794 = vmatprep.subr.bf16.mxu1 %v8252_v57 }
 0xbc4   :  { %4752 = vmatpush1.bf16.msra.mxu0 %v8258_v58  ;;  %4795 = vmatpush1.bf16.msra.mxu1 %v8271_v62 }
 0xbc5   :  { %4753 = vmatprep.subr.bf16.mxu0 %v8265_v60  ;;  %4796 = vmatprep.subr.bf16.mxu1 %v8277_v3 }
 0xbc8   :  { %4754 = vmatpush1.bf16.msra.mxu0 %v8283_v63  ;;  %4797 = vmatpush1.bf16.msra.mxu1 %v8295_v4 }
 0xbc9   :  { %4755 = vmatprep.subr.bf16.mxu0 %v8289_v2  ;;  %4798 = vmatprep.subr.bf16.mxu1 %v8301_v54 }
 0xbcc   :  { %4756 = vmatpush1.bf16.msra.mxu0 %v8307_v5  ;;  %4799 = vmatpush1.bf16.msra.mxu1 %v8319_v9 }
 0xbcd   :  { %4757 = vmatprep.subr.bf16.mxu0 %v8313_v24  ;;  %4800 = vmatprep.subr.bf16.mxu1 %v8331_v37 }
 0xbd0   :  { %4758 = vmatpush1.bf16.msra.mxu0 %v8326_v36  ;;  %4801 = vmatpush1.bf16.msra.mxu1 %v8343_v41 }
 0xbd1   :  { %4759 = vmatprep.subr.bf16.mxu0 %v8338_v40  ;;  %4802 = vmatprep.subr.bf16.mxu1 %v8349_v44 }
 0xbd4   :  { %4760 = vmatpush1.bf16.msra.mxu0 %v8355_v31  ;;  %4803 = vmatpush1.bf16.msra.mxu1 %v8362_v32 }
 0xbd5   :  { %4896 = vmatprep.subr.bf16.mxu0 %v8607_v27  ;;  %4939 = vmatprep.subr.bf16.mxu1 %v8190_v29 }
 0xc8a   :  { %v4628_v25 = vpop.f32.mrb[44].mxu0  ;;  %v4671_v56 = vpop.f32.mrb[44].mxu1 }
 0xc8b   :  { %v6069_v11 = vadd.f32 %v4628_v25, %v8438_v35  ;;  %v4630_v22 = vpop.f32.mrb[45].mxu0  ;;  %v4673_v42 = vpop.f32.mrb[45].mxu1  ;;  %v6101_v63 = vadd.f32 %v4671_v56, %v8449_v23  ;;  %v8662_v25 = vld [vmem:[%s8992_s7 + $0x28] ss:$16 sps:$4 sm:$0xff]   ;;  %v8668_v56 = vld [vmem:[%s8992_s7 + $0x44] ss:$16 sps:$4 sm:$0xff]  }
 0xc8c   :  { %v6070_v38 = vadd.f32 %v4630_v22, %v8442_v6  ;;  %v4632_v39 = vpop.f32.mrb[46].mxu0  ;;  %v4675_v46 = vpop.f32.mrb[46].mxu1  ;;  %v6102_v4 = vadd.f32 %v4673_v42, %v8454_v18  ;;  %v8680_v22 = vld [vmem:[%s8992_s7 + $0x40] ss:$16 sps:$4 sm:$0xff]   ;;  %v8686_v42 = vld [vmem:[%s8992_s7 + $0x48] ss:$16 sps:$4 sm:$0xff]  }
 0xc8d   :  { %v5925_v21 = vmul.f32 -1.442695, %v6069_v11  ;;  %v6071_v47 = vadd.f32 %v4632_v39, %v8438_v35  ;;  %v4634_v57 = vpop.f32.mrb[47].mxu0  ;;  %v4677_v58 = vpop.f32.mrb[47].mxu1  ;;  %v6103_v2 = vadd.f32 %v4675_v46, %v8449_v23  ;;  %v5927_v54 = vmul.f32 -1.442695, %v6101_v63 }
 0xc8e   :  { %v5926_v60 = vmul.f32 -1.442695, %v6070_v38  ;;  %v6072_v62 = vadd.f32 %v4634_v57, %v8442_v6  ;;  %v6104_v9 = vadd.f32 %v4677_v58, %v8454_v18  ;;  %v8674_v11 = vld [vmem:[%s8992_s7 + $0x4c] ss:$16 sps:$4 sm:$0xff]   ;;  %v8692_v38 = vld [vmem:[%s8992_s7 + $0x64] ss:$16 sps:$4 sm:$0xff]  }
 0xc8f   :  { %6869 = vpow2.f32 %v5925_v21  ;;  %v5928_v29 = vmul.f32 -1.442695, %v6071_v47  ;;  %v5930_v5 = vmul.f32 -1.442695, %v6103_v2  ;;  %v8698_v39 = vld [vmem:[%s8992_s7 + $0x6c] ss:$16 sps:$4 sm:$0xff]  }
 0xc90   :  { %v5929_v3 = vmul.f32 -1.442695, %v6072_v62  ;;  %6871 = vpow2.f32 %v5926_v60  ;;  %v8704_v46 = vld [vmem:[%s8992_s7 + $0x60] ss:$16 sps:$4 sm:$0xff]   ;;  %v8710_v21 = vld [vmem:[%s8992_s7 + $0x68] ss:$16 sps:$4 sm:$0xff]  }
 0xc91   :  { %6873 = vpow2.f32 %v5928_v29  ;;  %v8716_v47 = vld [vmem:[%s8992_s7 + $0x84] ss:$16 sps:$4 sm:$0xff]   ;;  %v8722_v57 = vld [vmem:[%s8992_s7 + $0x8c] ss:$16 sps:$4 sm:$0xff]   ;;  %v8728_v58 = vld [vmem:[%s8992_s7 + $0x80] ss:$16 sps:$4 sm:$0xff]  }
 0xc92   :  { %6875 = vpow2.f32 %v5929_v3  ;;  %v8734_v60 = vld [vmem:[%s8992_s7 + $0x88] ss:$16 sps:$4 sm:$0xff]   ;;  %v8740_v62 = vld [vmem:[%s8992_s7 + $0xa4] ss:$16 sps:$4 sm:$0xff]   ;;  %v8746_v29 = vld [vmem:[%s8992_s7 + $0xac] ss:$16 sps:$4 sm:$0xff]  }
 0xc93   :  { %6877 = vtanh.f32 %v6102_v4  ;;  %v8752_v3 = vld [vmem:[%s8992_s7 + $0xa0] ss:$16 sps:$4 sm:$0xff]   ;;  %v8758_v63 = vld [vmem:[%s8992_s7 + $0xa8] ss:$16 sps:$4 sm:$0xff]   ;;  %v8764_v2 = vld [vmem:[%s8992_s7 + $0xc4] ss:$16 sps:$4 sm:$0xff]  }
 0xc94   :  { %6879 = vpow2.f32 %v5927_v54  ;;  %v8770_v4 = vld [vmem:[%s8992_s7 + $0xcc] ss:$16 sps:$4 sm:$0xff]   ;;  %v8776_v54 = vld [vmem:[%s8992_s7 + $0xc0] ss:$16 sps:$4 sm:$0xff]  }
 0xc95   :  { %6881 = vpow2.f32 %v5930_v5  ;;  %v8782_v5 = vld [vmem:[%s8992_s7 + $0xc8] ss:$16 sps:$4 sm:$0xff]  }
 0xc99   :  { %v6870_v24 = vpop.eup %6869 }
 0xc9a   :  { %v4706_v36 = vadd.f32 1.0, %v6870_v24  ;;  %v6872_v37 = vpop.eup %6871  ;;  %v8788_v24 = vld [vmem:[%s8992_s7 + $0xe4] ss:$16 sps:$4 sm:$0xff]  }
 0xc9b   :  { %v6874_v40 = vpop.eup %6873  ;;  %v4707_v41 = vadd.f32 1.0, %v6872_v37  ;;  %v8806_v37 = vld [vmem:[%s8992_s7 + $0xe8] ss:$16 sps:$4 sm:$0xff]  }
 0xc9c   :  { %6883 = vrcp.f32 %v4706_v36  ;;  %v4709_v44 = vadd.f32 1.0, %v6874_v40  ;;  %v6876_v31 = vpop.eup %6875  ;;  %v8800_v36 = vld [vmem:[%s8992_s7 + $0xe0] ss:$16 sps:$4 sm:$0xff]   ;;  %v8813_v40 = vld [vmem:[%s8992_s7 + $0xc] ss:$16 sps:$4 sm:$0xff]  }
 0xc9d   :  { %6885 = vtanh.f32 %v6104_v9  ;;  %v4710_v32 = vadd.f32 1.0, %v6876_v31  ;;  %v6878_v16 = vpop.eup %6877  ;;  %v8794_v9 = vld [vmem:[%s8992_s7 + $0xec] ss:$16 sps:$4 sm:$0xff]  }
 0xc9e   :  { %6887 = vrcp.f32 %v4707_v41  ;;  %v6880_v52 = vpop.eup %6879 }
 0xc9f   :  { %6889 = vrcp.f32 %v4709_v44  ;;  %v6882_v20 = vpop.eup %6881  ;;  %v4708_v15 = vadd.f32 1.0, %v6880_v52 }
 0xca0   :  { %6891 = vrcp.f32 %v4710_v32  ;;  %v4711_v59 = vadd.f32 1.0, %v6882_v20 }
 0xca1   :  { %6893 = vrcp.f32 %v4708_v15 }
 0xca6   :  { %v6884_v28 = vpop.eup %6883 }
 0xca7   :  { %v6886_v53 = vpop.eup %6885  ;;  %v4728_v13 = vmul.f32 %v6884_v28, %v6878_v16 }
 0xca8   :  { %v6888_v49 = vpop.eup %6887 }
 0xca9   :  { %v6890_v55 = vpop.eup %6889  ;;  %v4726_v50 = vmul.f32 %v6888_v49, %v8565_v0 }
 0xcaa   :  { %v4729_v17 = vmul.f32 %v6890_v55, %v6886_v53  ;;  %v6892_v10 = vpop.eup %6891 }
 0xcab   :  { %v8620_v12 = vadd.f32 %v4728_v13, %v4726_v50  ;;  %v4727_v30 = vmul.f32 %v6892_v10, %v8569_v51  ;;  %v6894_v34 = vpop.eup %6893  ;;  %v8630_v51 = vld [vmem:[%s8992_s7] ss:$16 sps:$4 sm:$0xff]  }
 0xcad   :  { %6895 = vtanh.f32 %v8620_v12  ;;  %v8624_v26 = vadd.f32 %v4729_v17, %v4727_v30 }
 0xcae   :  { %6897 = vrcp.f32 %v4711_v59 }
 0xcaf   :  { %6899 = vtanh.f32 %v8624_v26 }
 0xcb7   :  { %v6896_v61 = vpop.eup %6895 }
 0xcb8   :  { %v6898_v43 = vpop.eup %6897  ;;  %v4734_v0 = vmul.f32 %v6896_v61, %v6894_v34 }
 0xcb9   :  { %v6900_v14 = vpop.eup %6899 }
 0xcba   :  { %v4735_v8 = vmul.f32 %v6900_v14, %v6898_v43 }
 0xcbc   :  { %v4744_v45 = vpack.c.bf16 %v4735_v8, %v4734_v0 }
 0xcbe   :  { %4778 = vmatmul.mubr.bf16.vlgmr.msra.gmra.mrb[48].mxu0 %v4744_v45  ;;  %4821 = vmatmul.mubr.bf16.vlgmr.msra.gmra.mrb[48].mxu1 %v4744_v45 }
 0xcbf   :  { %4897 = vmatpush1.bf16.msra.mxu0 %v8630_v51  ;;  %4940 = vmatpush1.bf16.msra.mxu1 %v8636_v33 }
 0xcc0   :  { %4898 = vmatprep.subr.bf16.mxu0 %v8642_v19  ;;  %4941 = vmatprep.subr.bf16.mxu1 %v8648_v48 }
 0xcc1   :  { %4928 = vmatprep.mubr.bf16.mxu0 %v7061_v1  ;;  %4971 = vmatprep.mubr.bf16.mxu1 %v7061_v1 }
 0xcc3   :  { %4899 = vmatpush1.bf16.msra.mxu0 %v8656_v7  ;;  %4942 = vmatpush1.bf16.msra.mxu1 %v8662_v25 }
 0xcc4   :  { %4900 = vmatprep.subr.bf16.mxu0 %v8668_v56  ;;  %4943 = vmatprep.subr.bf16.mxu1 %v8674_v11 }
 0xcc7   :  { %4901 = vmatpush1.bf16.msra.mxu0 %v8680_v22  ;;  %4944 = vmatpush1.bf16.msra.mxu1 %v8686_v42 }
 0xcc8   :  { %4902 = vmatprep.subr.bf16.mxu0 %v8692_v38  ;;  %4945 = vmatprep.subr.bf16.mxu1 %v8698_v39 }
 0xccb   :  { %4903 = vmatpush1.bf16.msra.mxu0 %v8704_v46  ;;  %4946 = vmatpush1.bf16.msra.mxu1 %v8710_v21 }
 0xccc   :  { %4904 = vmatprep.subr.bf16.mxu0 %v8716_v47  ;;  %4947 = vmatprep.subr.bf16.mxu1 %v8722_v57 }
 0xccf   :  { %4905 = vmatpush1.bf16.msra.mxu0 %v8728_v58  ;;  %4948 = vmatpush1.bf16.msra.mxu1 %v8734_v60 }
 0xcd0   :  { %4906 = vmatprep.subr.bf16.mxu0 %v8740_v62  ;;  %4949 = vmatprep.subr.bf16.mxu1 %v8746_v29 }
 0xcd3   :  { %4907 = vmatpush1.bf16.msra.mxu0 %v8752_v3  ;;  %4950 = vmatpush1.bf16.msra.mxu1 %v8758_v63 }
 0xcd4   :  { %4908 = vmatprep.subr.bf16.mxu0 %v8764_v2  ;;  %4951 = vmatprep.subr.bf16.mxu1 %v8770_v4 }
 0xcd7   :  { %4909 = vmatpush1.bf16.msra.mxu0 %v8776_v54  ;;  %4952 = vmatpush1.bf16.msra.mxu1 %v8782_v5 }
 0xcd8   :  { %4910 = vmatprep.subr.bf16.mxu0 %v8788_v24  ;;  %4953 = vmatprep.subr.bf16.mxu1 %v8794_v9 }
 0xcdb   :  { %4911 = vmatpush1.bf16.msra.mxu0 %v8800_v36  ;;  %4954 = vmatpush1.bf16.msra.mxu1 %v8806_v37 }
 0xcdc   :  { %5047 = vmatprep.subr.bf16.mxu0 %v8607_v27  ;;  %5090 = vmatprep.subr.bf16.mxu1 %v8813_v40 }
 0xd91   :  { %v4779_v41 = vpop.f32.mrb[48].mxu0  ;;  %v4822_v44 = vpop.f32.mrb[48].mxu1 }
 0xd92   :  { %v6073_v31 = vadd.f32 %v4779_v41, %v8438_v35  ;;  %v4781_v32 = vpop.f32.mrb[49].mxu0  ;;  %v4824_v16 = vpop.f32.mrb[49].mxu1  ;;  %v6105_v59 = vadd.f32 %v4822_v44, %v8449_v23 }
 0xd93   :  { %v6074_v52 = vadd.f32 %v4781_v32, %v8442_v6  ;;  %v4783_v20 = vpop.f32.mrb[50].mxu0  ;;  %v4826_v28 = vpop.f32.mrb[50].mxu1  ;;  %v6106_v34 = vadd.f32 %v4824_v16, %v8454_v18 }
 0xd94   :  { %v5931_v53 = vmul.f32 -1.442695, %v6073_v31  ;;  %v6075_v13 = vadd.f32 %v4783_v20, %v8438_v35  ;;  %v4785_v49 = vpop.f32.mrb[51].mxu0  ;;  %v4828_v55 = vpop.f32.mrb[51].mxu1  ;;  %v6107_v30 = vadd.f32 %v4826_v28, %v8449_v23  ;;  %v5933_v61 = vmul.f32 -1.442695, %v6105_v59 }
 0xd95   :  { %v5932_v15 = vmul.f32 -1.442695, %v6074_v52  ;;  %v6076_v50 = vadd.f32 %v4785_v49, %v8442_v6  ;;  %v6108_v0 = vadd.f32 %v4828_v55, %v8454_v18 }
 0xd96   :  { %6901 = vpow2.f32 %v5931_v53  ;;  %v5934_v17 = vmul.f32 -1.442695, %v6075_v13  ;;  %v5936_v43 = vmul.f32 -1.442695, %v6107_v30 }
 0xd97   :  { %v5935_v10 = vmul.f32 -1.442695, %v6076_v50  ;;  %6903 = vpow2.f32 %v5932_v15 }
 0xd98   :  { %6905 = vpow2.f32 %v5934_v17 }
 0xd99   :  { %6907 = vpow2.f32 %v5935_v10 }
 0xd9a   :  { %6909 = vtanh.f32 %v6106_v34 }
 0xd9b   :  { %6911 = vpow2.f32 %v5933_v61 }
 0xd9c   :  { %6913 = vpow2.f32 %v5936_v43 }
 0xda0   :  { %v6902_v14 = vpop.eup %6901 }
 0xda1   :  { %v4857_v8 = vadd.f32 1.0, %v6902_v14  ;;  %v6904_v45 = vpop.eup %6903 }
 0xda2   :  { %v6906_v41 = vpop.eup %6905  ;;  %v4858_v31 = vadd.f32 1.0, %v6904_v45 }
 0xda3   :  { %6915 = vrcp.f32 %v4857_v8  ;;  %v4860_v44 = vadd.f32 1.0, %v6906_v41  ;;  %v6908_v32 = vpop.eup %6907 }
 0xda4   :  { %6917 = vtanh.f32 %v6108_v0  ;;  %v4861_v52 = vadd.f32 1.0, %v6908_v32  ;;  %v6910_v16 = vpop.eup %6909 }
 0xda5   :  { %6919 = vrcp.f32 %v4858_v31  ;;  %v6912_v20 = vpop.eup %6911 }
 0xda6   :  { %6921 = vrcp.f32 %v4860_v44  ;;  %v6914_v28 = vpop.eup %6913  ;;  %v4859_v50 = vadd.f32 1.0, %v6912_v20 }
 0xda7   :  { %6923 = vrcp.f32 %v4861_v52  ;;  %v4862_v34 = vadd.f32 1.0, %v6914_v28 }
 0xda8   :  { %6925 = vrcp.f32 %v4859_v50 }
 0xdad   :  { %v6916_v53 = vpop.eup %6915 }
 0xdae   :  { %v6918_v13 = vpop.eup %6917  ;;  %v4879_v49 = vmul.f32 %v6916_v53, %v6910_v16 }
 0xdaf   :  { %v6920_v55 = vpop.eup %6919 }
 0xdb0   :  { %v6922_v15 = vpop.eup %6921  ;;  %v4877_v17 = vmul.f32 %v6920_v55, %v8620_v12 }
 0xdb1   :  { %v4880_v10 = vmul.f32 %v6922_v15, %v6918_v13  ;;  %v6924_v59 = vpop.eup %6923 }
 0xdb2   :  { %v8825_v30 = vadd.f32 %v4879_v49, %v4877_v17  ;;  %v4878_v61 = vmul.f32 %v6924_v59, %v8624_v26  ;;  %v6926_v14 = vpop.eup %6925 }
 0xdb4   :  { %6927 = vtanh.f32 %v8825_v30  ;;  %v8829_v43 = vadd.f32 %v4880_v10, %v4878_v61 }
 0xdb5   :  { %6929 = vrcp.f32 %v4862_v34 }
 0xdb6   :  { %6931 = vtanh.f32 %v8829_v43 }
 0xdbe   :  { %v6928_v0 = vpop.eup %6927 }
 0xdbf   :  { %v6930_v8 = vpop.eup %6929  ;;  %v4885_v12 = vmul.f32 %v6928_v0, %v6926_v14 }
 0xdc0   :  { %v6932_v45 = vpop.eup %6931 }
 0xdc1   :  { %v4886_v41 = vmul.f32 %v6932_v45, %v6930_v8 }
 0xdc3   :  { %v4895_v31 = vpack.c.bf16 %v4886_v41, %v4885_v12 }
 0xdc5   :  { %4929 = vmatmul.mubr.bf16.vlgmr.msra.gmra.mrb[52].mxu0 %v4895_v31  ;;  %4972 = vmatmul.mubr.bf16.vlgmr.msra.gmra.mrb[52].mxu1 %v4895_v31 }
 0xdc6   :  { %5048 = vmatpush1.bf16.msra.mxu0 %v8630_v51  ;;  %5091 = vmatpush1.bf16.msra.mxu1 %v8636_v33 }
 0xdc7   :  { %5049 = vmatprep.subr.bf16.mxu0 %v8642_v19  ;;  %5092 = vmatprep.subr.bf16.mxu1 %v8648_v48 }
 0xdc8   :  { %5079 = vmatprep.mubr.bf16.mxu0 %v7061_v1  ;;  %5122 = vmatprep.mubr.bf16.mxu1 %v7061_v1 }
 0xdca   :  { %5050 = vmatpush1.bf16.msra.mxu0 %v8656_v7  ;;  %5093 = vmatpush1.bf16.msra.mxu1 %v8662_v25 }
 0xdcb   :  { %5051 = vmatprep.subr.bf16.mxu0 %v8668_v56  ;;  %5094 = vmatprep.subr.bf16.mxu1 %v8674_v11 }
 0xdce   :  { %5052 = vmatpush1.bf16.msra.mxu0 %v8680_v22  ;;  %5095 = vmatpush1.bf16.msra.mxu1 %v8686_v42 }
 0xdcf   :  { %5053 = vmatprep.subr.bf16.mxu0 %v8692_v38  ;;  %5096 = vmatprep.subr.bf16.mxu1 %v8698_v39 }
 0xdd2   :  { %5054 = vmatpush1.bf16.msra.mxu0 %v8704_v46  ;;  %5097 = vmatpush1.bf16.msra.mxu1 %v8710_v21 }
 0xdd3   :  { %5055 = vmatprep.subr.bf16.mxu0 %v8716_v47  ;;  %5098 = vmatprep.subr.bf16.mxu1 %v8722_v57 }
 0xdd6   :  { %5056 = vmatpush1.bf16.msra.mxu0 %v8728_v58  ;;  %5099 = vmatpush1.bf16.msra.mxu1 %v8734_v60 }
 0xdd7   :  { %5057 = vmatprep.subr.bf16.mxu0 %v8740_v62  ;;  %5100 = vmatprep.subr.bf16.mxu1 %v8746_v29 }
 0xdda   :  { %5058 = vmatpush1.bf16.msra.mxu0 %v8752_v3  ;;  %5101 = vmatpush1.bf16.msra.mxu1 %v8758_v63 }
 0xddb   :  { %5059 = vmatprep.subr.bf16.mxu0 %v8764_v2  ;;  %5102 = vmatprep.subr.bf16.mxu1 %v8770_v4 }
 0xdde   :  { %5060 = vmatpush1.bf16.msra.mxu0 %v8776_v54  ;;  %5103 = vmatpush1.bf16.msra.mxu1 %v8782_v5 }
 0xddf   :  { %5061 = vmatprep.subr.bf16.mxu0 %v8788_v24  ;;  %5104 = vmatprep.subr.bf16.mxu1 %v8794_v9 }
 0xde2   :  { %5062 = vmatpush1.bf16.msra.mxu0 %v8800_v36  ;;  %5105 = vmatpush1.bf16.msra.mxu1 %v8806_v37 }
 0xde3   :  { %5198 = vmatprep.subr.bf16.mxu0 %v8607_v27  ;;  %5241 = vmatprep.subr.bf16.mxu1 %v8813_v40 }
 0xe98   :  { %v4930_v26 = vpop.f32.mrb[52].mxu0  ;;  %v4973_v44 = vpop.f32.mrb[52].mxu1 }
 0xe99   :  { %v6077_v32 = vadd.f32 %v4930_v26, %v8438_v35  ;;  %v4932_v52 = vpop.f32.mrb[53].mxu0  ;;  %v4975_v16 = vpop.f32.mrb[53].mxu1  ;;  %v6109_v10 = vadd.f32 %v4973_v44, %v8449_v23 }
 0xe9a   :  { %v6078_v20 = vadd.f32 %v4932_v52, %v8442_v6  ;;  %v4934_v28 = vpop.f32.mrb[54].mxu0  ;;  %v4977_v53 = vpop.f32.mrb[54].mxu1  ;;  %v6110_v34 = vadd.f32 %v4975_v16, %v8454_v18 }
 0xe9b   :  { %v5937_v13 = vmul.f32 -1.442695, %v6077_v32  ;;  %v6079_v49 = vadd.f32 %v4934_v28, %v8438_v35  ;;  %v4936_v55 = vpop.f32.mrb[55].mxu0  ;;  %v4979_v15 = vpop.f32.mrb[55].mxu1  ;;  %v6111_v59 = vadd.f32 %v4977_v53, %v8449_v23  ;;  %v5939_v61 = vmul.f32 -1.442695, %v6109_v10 }
 0xe9c   :  { %v5938_v50 = vmul.f32 -1.442695, %v6078_v20  ;;  %v6080_v27 = vadd.f32 %v4936_v55, %v8442_v6  ;;  %v6112_v8 = vadd.f32 %v4979_v15, %v8454_v18 }
 0xe9d   :  { %6933 = vpow2.f32 %v5937_v13  ;;  %v5940_v40 = vmul.f32 -1.442695, %v6079_v49  ;;  %v5942_v14 = vmul.f32 -1.442695, %v6111_v59 }
 0xe9e   :  { %v5941_v17 = vmul.f32 -1.442695, %v6080_v27  ;;  %6935 = vpow2.f32 %v5938_v50 }
 0xe9f   :  { %6937 = vpow2.f32 %v5940_v40 }
 0xea0   :  { %6939 = vpow2.f32 %v5941_v17 }
 0xea1   :  { %6941 = vtanh.f32 %v6110_v34 }
 0xea2   :  { %6943 = vpow2.f32 %v5939_v61 }
 0xea3   :  { %6945 = vpow2.f32 %v5942_v14 }
 0xea7   :  { %v6934_v0 = vpop.eup %6933 }
 0xea8   :  { %v5008_v45 = vadd.f32 1.0, %v6934_v0  ;;  %v6936_v12 = vpop.eup %6935 }
 0xea9   :  { %v6938_v41 = vpop.eup %6937  ;;  %v5009_v31 = vadd.f32 1.0, %v6936_v12 }
 0xeaa   :  { %6947 = vrcp.f32 %v5008_v45  ;;  %v5011_v26 = vadd.f32 1.0, %v6938_v41  ;;  %v6940_v44 = vpop.eup %6939 }
 0xeab   :  { %6949 = vtanh.f32 %v6112_v8  ;;  %v5012_v32 = vadd.f32 1.0, %v6940_v44  ;;  %v6942_v52 = vpop.eup %6941 }
 0xeac   :  { %6951 = vrcp.f32 %v5009_v31  ;;  %v6944_v16 = vpop.eup %6943 }
 0xead   :  { %6953 = vrcp.f32 %v5011_v26  ;;  %v6946_v20 = vpop.eup %6945  ;;  %v5010_v15 = vadd.f32 1.0, %v6944_v16 }
 0xeae   :  { %6955 = vrcp.f32 %v5012_v32  ;;  %v5013_v10 = vadd.f32 1.0, %v6946_v20 }
 0xeaf   :  { %6957 = vrcp.f32 %v5010_v15 }
 0xeb4   :  { %v6948_v28 = vpop.eup %6947 }
 0xeb5   :  { %v6950_v53 = vpop.eup %6949  ;;  %v5030_v13 = vmul.f32 %v6948_v28, %v6942_v52 }
 0xeb6   :  { %v6952_v49 = vpop.eup %6951 }
 0xeb7   :  { %v6954_v55 = vpop.eup %6953  ;;  %v5028_v50 = vmul.f32 %v6952_v49, %v8825_v30 }
 0xeb8   :  { %v5031_v27 = vmul.f32 %v6954_v55, %v6950_v53  ;;  %v6956_v40 = vpop.eup %6955 }
 0xeb9   :  { %v8875_v17 = vadd.f32 %v5030_v13, %v5028_v50  ;;  %v5029_v59 = vmul.f32 %v6956_v40, %v8829_v43  ;;  %v6958_v61 = vpop.eup %6957 }
 0xebb   :  { %6959 = vtanh.f32 %v8875_v17  ;;  %v8879_v34 = vadd.f32 %v5031_v27, %v5029_v59 }
 0xebc   :  { %6961 = vrcp.f32 %v5013_v10 }
 0xebd   :  { %6963 = vtanh.f32 %v8879_v34 }
 0xec5   :  { %v6960_v14 = vpop.eup %6959 }
 0xec6   :  { %v6962_v0 = vpop.eup %6961  ;;  %v5036_v30 = vmul.f32 %v6960_v14, %v6958_v61  ;;  %v7062_v14 = vmov 0.0  }
 0xec7   :  { %v6964_v8 = vpop.eup %6963 }
 0xec8   :  { %v5037_v45 = vmul.f32 %v6964_v8, %v6962_v0  ;;  %v6510_v0 = vld [vmem:[%s8996_s9 + $0x8] sm:$0xff]   ;;  %v6511_v8 = vld [vmem:[%s8996_s9 + $0x10] sm:$0xff]  }
 0xeca   :  { %v5046_v12 = vpack.c.bf16 %v5037_v45, %v5036_v30  ;;  %v6512_v30 = vld [vmem:[%s8996_s9 + $0x18] sm:$0xff]   ;;  %v6513_v45 = vld [vmem:[%s8996_s9 + $0x20] sm:$0xff]  }
 0xecc   :  { %5080 = vmatmul.mubr.bf16.vlgmr.msra.gmra.mrb[56].mxu0 %v5046_v12  ;;  %5123 = vmatmul.mubr.bf16.vlgmr.msra.gmra.mrb[56].mxu1 %v5046_v12  ;;  %v6514_v12 = vld [vmem:[%s8996_s9 + $0x28] sm:$0xff]  }
 0xecd   :  { %5199 = vmatpush1.bf16.msra.mxu0 %v8630_v51  ;;  %5242 = vmatpush1.bf16.msra.mxu1 %v8636_v33 }
 0xece   :  { %5200 = vmatprep.subr.bf16.mxu0 %v8642_v19  ;;  %5243 = vmatprep.subr.bf16.mxu1 %v8648_v48 }
 0xecf   :  { %5230 = vmatprep.mubr.bf16.mxu0 %v7061_v1  ;;  %5273 = vmatprep.mubr.bf16.mxu1 %v7061_v1 }
 0xed1   :  { %5201 = vmatpush1.bf16.msra.mxu0 %v8656_v7  ;;  %5244 = vmatpush1.bf16.msra.mxu1 %v8662_v25 }
 0xed2   :  { %5202 = vmatprep.subr.bf16.mxu0 %v8668_v56  ;;  %5245 = vmatprep.subr.bf16.mxu1 %v8674_v11 }
 0xed5   :  { %5203 = vmatpush1.bf16.msra.mxu0 %v8680_v22  ;;  %5246 = vmatpush1.bf16.msra.mxu1 %v8686_v42 }
 0xed6   :  { %5204 = vmatprep.subr.bf16.mxu0 %v8692_v38  ;;  %5247 = vmatprep.subr.bf16.mxu1 %v8698_v39 }
 0xed9   :  { %5205 = vmatpush1.bf16.msra.mxu0 %v8704_v46  ;;  %5248 = vmatpush1.bf16.msra.mxu1 %v8710_v21 }
 0xeda   :  { %5206 = vmatprep.subr.bf16.mxu0 %v8716_v47  ;;  %5249 = vmatprep.subr.bf16.mxu1 %v8722_v57 }
 0xedd   :  { %5207 = vmatpush1.bf16.msra.mxu0 %v8728_v58  ;;  %5250 = vmatpush1.bf16.msra.mxu1 %v8734_v60 }
 0xede   :  { %5208 = vmatprep.subr.bf16.mxu0 %v8740_v62  ;;  %5251 = vmatprep.subr.bf16.mxu1 %v8746_v29 }
 0xee1   :  { %5209 = vmatpush1.bf16.msra.mxu0 %v8752_v3  ;;  %5252 = vmatpush1.bf16.msra.mxu1 %v8758_v63 }
 0xee2   :  { %5210 = vmatprep.subr.bf16.mxu0 %v8764_v2  ;;  %5253 = vmatprep.subr.bf16.mxu1 %v8770_v4 }
 0xee5   :  { %5211 = vmatpush1.bf16.msra.mxu0 %v8776_v54  ;;  %5254 = vmatpush1.bf16.msra.mxu1 %v8782_v5 }
 0xee6   :  { %5212 = vmatprep.subr.bf16.mxu0 %v8788_v24  ;;  %5255 = vmatprep.subr.bf16.mxu1 %v8794_v9 }
 0xee9   :  { %5213 = vmatpush1.bf16.msra.mxu0 %v8800_v36  ;;  %5256 = vmatpush1.bf16.msra.mxu1 %v8806_v37 }
 0xeea   :  { %5973 = vmatprep.subr.bf16.mxu0 %v7062_v14 }
 0xf9f   :  { %v5081_v1 = vpop.f32.mrb[56].mxu0  ;;  %v5124_v51 = vpop.f32.mrb[56].mxu1 }
 0xfa0   :  { %v6081_v33 = vadd.f32 %v5081_v1, %v8438_v35  ;;  %v5083_v19 = vpop.f32.mrb[57].mxu0  ;;  %v5126_v48 = vpop.f32.mrb[57].mxu1  ;;  %v6113_v57 = vadd.f32 %v5124_v51, %v8449_v23  ;;  %v6515_v1 = vld [vmem:[%s8996_s9 + $0x30] sm:$0xff]   ;;  %v6516_v51 = vld [vmem:[%s8996_s9 + $0x38] sm:$0xff]  }
 0xfa1   :  { %v6082_v7 = vadd.f32 %v5083_v19, %v8442_v6  ;;  %v5085_v25 = vpop.f32.mrb[58].mxu0  ;;  %v5128_v56 = vpop.f32.mrb[58].mxu1  ;;  %v6114_v60 = vadd.f32 %v5126_v48, %v8454_v18 }
 0xfa2   :  { %v5943_v11 = vmul.f32 -1.442695, %v6081_v33  ;;  %v6083_v22 = vadd.f32 %v5085_v25, %v8438_v35  ;;  %v5087_v42 = vpop.f32.mrb[59].mxu0  ;;  %v5130_v38 = vpop.f32.mrb[59].mxu1  ;;  %v6115_v58 = vadd.f32 %v5128_v56, %v8449_v23  ;;  %v5945_v62 = vmul.f32 -1.442695, %v6113_v57 }
 0xfa3   :  { %v5944_v39 = vmul.f32 -1.442695, %v6082_v7  ;;  %v6084_v46 = vadd.f32 %v5087_v42, %v8442_v6  ;;  %v6116_v63 = vadd.f32 %v5130_v38, %v8454_v18 }
 0xfa4   :  { %6965 = vpow2.f32 %v5943_v11  ;;  %v5946_v21 = vmul.f32 -1.442695, %v6083_v22  ;;  %v5948_v29 = vmul.f32 -1.442695, %v6115_v58 }
 0xfa5   :  { %v5947_v47 = vmul.f32 -1.442695, %v6084_v46  ;;  %6967 = vpow2.f32 %v5944_v39 }
 0xfa6   :  { %6969 = vpow2.f32 %v5946_v21 }
 0xfa7   :  { %6971 = vpow2.f32 %v5947_v47 }
 0xfa8   :  { %6973 = vtanh.f32 %v6114_v60 }
 0xfa9   :  { %6975 = vpow2.f32 %v5945_v62 }
 0xfaa   :  { %6977 = vpow2.f32 %v5948_v29 }
 0xfae   :  { %v6966_v3 = vpop.eup %6965 }
 0xfaf   :  { %v5159_v2 = vadd.f32 1.0, %v6966_v3  ;;  %v6968_v4 = vpop.eup %6967 }
 0xfb0   :  { %v6970_v54 = vpop.eup %6969  ;;  %v5160_v5 = vadd.f32 1.0, %v6968_v4 }
 0xfb1   :  { %6979 = vrcp.f32 %v5159_v2  ;;  %v5162_v24 = vadd.f32 1.0, %v6970_v54  ;;  %v6972_v9 = vpop.eup %6971 }
 0xfb2   :  { %6981 = vtanh.f32 %v6116_v63  ;;  %v5163_v36 = vadd.f32 1.0, %v6972_v9  ;;  %v6974_v37 = vpop.eup %6973 }
 0xfb3   :  { %6983 = vrcp.f32 %v5160_v5  ;;  %v6976_v43 = vpop.eup %6975 }
 0xfb4   :  { %6985 = vrcp.f32 %v5162_v24  ;;  %v6978_v41 = vpop.eup %6977  ;;  %v5161_v16 = vadd.f32 1.0, %v6976_v43 }
 0xfb5   :  { %6987 = vrcp.f32 %v5163_v36  ;;  %v5164_v49 = vadd.f32 1.0, %v6978_v41 }
 0xfb6   :  { %6989 = vrcp.f32 %v5161_v16 }
 0xfbb   :  { %v6980_v31 = vpop.eup %6979 }
 0xfbc   :  { %v6982_v26 = vpop.eup %6981  ;;  %v5181_v44 = vmul.f32 %v6980_v31, %v6974_v37 }
 0xfbd   :  { %v6984_v32 = vpop.eup %6983 }
 0xfbe   :  { %v6986_v52 = vpop.eup %6985  ;;  %v5179_v20 = vmul.f32 %v6984_v32, %v8875_v17 }
 0xfbf   :  { %v5182_v28 = vmul.f32 %v6986_v52, %v6982_v26  ;;  %v6988_v53 = vpop.eup %6987 }
 0xfc0   :  { %v8923_v13 = vadd.f32 %v5181_v44, %v5179_v20  ;;  %v5180_v55 = vmul.f32 %v6988_v53, %v8879_v34  ;;  %v6990_v50 = vpop.eup %6989  ;;  %v6509_v34 = vld [vmem:[%s8996_s9] sm:$0xff]  }
 0xfc2   :  { %6991 = vtanh.f32 %v8923_v13  ;;  %v8927_v15 = vadd.f32 %v5182_v28, %v5180_v55 }
 0xfc3   :  { %6993 = vrcp.f32 %v5164_v49 }
 0xfc4   :  { %6995 = vtanh.f32 %v8927_v15 }
 0xfcc   :  { %v6992_v27 = vpop.eup %6991 }
 0xfcd   :  { %v6994_v40 = vpop.eup %6993  ;;  %v5187_v17 = vmul.f32 %v6992_v27, %v6990_v50 }
 0xfce   :  { %v6996_v10 = vpop.eup %6995 }
 0xfcf   :  { %v5188_v59 = vmul.f32 %v6996_v10, %v6994_v40 }
 0xfd1   :  { %v5197_v61 = vpack.c.bf16 %v5188_v59, %v5187_v17  ;;  %v5955_v59 = vld [vmem:[%s8997_s10] ss:$0 sm:$0xff] }
 0xfd3   :  { %5231 = vmatmul.mubr.bf16.vlgmr.msra.gmra.mrb[60].mxu0 %v5197_v61  ;;  %5274 = vmatmul.mubr.bf16.vlgmr.msra.gmra.mrb[60].mxu1 %v5197_v61 }
 0xfd4   :  { %5974 = vmatpush3.bf16.msra.mxu0 %v6509_v34  ;;  %5989 = vmatprep.mubr.msk.bf16.mxu0 %vm7063_vm0, %v7062_v14 }
 0xfd5   :  { %5975 = vmatprep.subr.bf16.mxu0 %v7062_v14 }
 0xfd8   :  { %5976 = vmatpush3.bf16.msra.mxu0 %v6510_v0 }
 0xfd9   :  { %5977 = vmatprep.subr.bf16.mxu0 %v7062_v14 }
 0xfdc   :  { %5978 = vmatpush3.bf16.msra.mxu0 %v6511_v8 }
 0xfdd   :  { %5979 = vmatprep.subr.bf16.mxu0 %v7062_v14 }
 0xfe0   :  { %5980 = vmatpush3.bf16.msra.mxu0 %v6512_v30 }
 0xfe1   :  { %5981 = vmatprep.subr.bf16.mxu0 %v7062_v14 }
 0xfe4   :  { %5982 = vmatpush3.bf16.msra.mxu0 %v6513_v45 }
 0xfe5   :  { %5983 = vmatprep.subr.bf16.mxu0 %v7062_v14 }
 0xfe8   :  { %5984 = vmatpush3.bf16.msra.mxu0 %v6514_v12 }
 0xfe9   :  { %5985 = vmatprep.subr.bf16.mxu0 %v7062_v14 }
 0xfec   :  { %5986 = vmatpush3.bf16.msra.mxu0 %v6515_v1 }
 0xfed   :  { %5987 = vmatprep.subr.bf16.mxu0 %v7062_v14 }
 0xff0   :  { %5988 = vmatpush3.bf16.msra.mxu0 %v6516_v51 }
0x10a6   :  { %v5232_v33 = vpop.f32.mrb[60].mxu0  ;;  %v5275_v19 = vpop.f32.mrb[60].mxu1 }
0x10a7   :  { %v6085_v48 = vadd.f32 %v5232_v33, %v8438_v35  ;;  %v5234_v7 = vpop.f32.mrb[61].mxu0  ;;  %v5277_v25 = vpop.f32.mrb[61].mxu1  ;;  %v6117_v60 = vadd.f32 %v5275_v19, %v8449_v23 }
0x10a8   :  { %v6086_v56 = vadd.f32 %v5234_v7, %v8442_v6  ;;  %v5236_v11 = vpop.f32.mrb[62].mxu0  ;;  %v5279_v22 = vpop.f32.mrb[62].mxu1  ;;  %v6118_v29 = vadd.f32 %v5277_v25, %v8454_v18 }
0x10a9   :  { %v5949_v42 = vmul.f32 -1.442695, %v6085_v48  ;;  %v6087_v38 = vadd.f32 %v5236_v11, %v8438_v35  ;;  %v5238_v39 = vpop.f32.mrb[63].mxu0  ;;  %v5281_v46 = vpop.f32.mrb[63].mxu1  ;;  %v6119_v62 = vadd.f32 %v5279_v22, %v8449_v23  ;;  %v5951_v3 = vmul.f32 -1.442695, %v6117_v60 }
0x10aa   :  { %v5950_v21 = vmul.f32 -1.442695, %v6086_v56  ;;  %v6088_v47 = vadd.f32 %v5238_v39, %v8442_v6  ;;  %v6120_v2 = vadd.f32 %v5281_v46, %v8454_v18 }
0x10ab   :  { %6997 = vpow2.f32 %v5949_v42  ;;  %v5952_v57 = vmul.f32 -1.442695, %v6087_v38  ;;  %v5954_v63 = vmul.f32 -1.442695, %v6119_v62 }
0x10ac   :  { %v5953_v58 = vmul.f32 -1.442695, %v6088_v47  ;;  %6999 = vpow2.f32 %v5950_v21 }
0x10ad   :  { %7001 = vpow2.f32 %v5952_v57 }
0x10ae   :  { %7003 = vpow2.f32 %v5953_v58 }
0x10af   :  { %7005 = vtanh.f32 %v6118_v29 }
0x10b0   :  { %7007 = vpow2.f32 %v5951_v3 }
0x10b1   :  { %7009 = vpow2.f32 %v5954_v63 }
0x10b5   :  { %v6998_v35 = vpop.eup %6997 }
0x10b6   :  { %v5310_v4 = vadd.f32 1.0, %v6998_v35  ;;  %v7000_v6 = vpop.eup %6999 }
0x10b7   :  { %v7002_v54 = vpop.eup %7001  ;;  %v5311_v5 = vadd.f32 1.0, %v7000_v6 }
0x10b8   :  { %7011 = vrcp.f32 %v5310_v4  ;;  %v5313_v24 = vadd.f32 1.0, %v7002_v54  ;;  %v7004_v9 = vpop.eup %7003 }
0x10b9   :  { %7013 = vtanh.f32 %v6120_v2  ;;  %v5314_v23 = vadd.f32 1.0, %v7004_v9  ;;  %v7006_v36 = vpop.eup %7005 }
0x10ba   :  { %7015 = vrcp.f32 %v5311_v5  ;;  %v7008_v37 = vpop.eup %7007 }
0x10bb   :  { %7017 = vrcp.f32 %v5313_v24  ;;  %v7010_v43 = vpop.eup %7009  ;;  %v5312_v44 = vadd.f32 1.0, %v7008_v37 }
0x10bc   :  { %7019 = vrcp.f32 %v5314_v23  ;;  %v5315_v53 = vadd.f32 1.0, %v7010_v43 }
0x10bd   :  { %7021 = vrcp.f32 %v5312_v44 }
0x10c2   :  { %v7012_v41 = vpop.eup %7011 }
0x10c3   :  { %v7014_v31 = vpop.eup %7013  ;;  %v5332_v18 = vmul.f32 %v7012_v41, %v7006_v36 }
0x10c4   :  { %v7016_v26 = vpop.eup %7015 }
0x10c5   :  { %v7018_v32 = vpop.eup %7017  ;;  %v5330_v52 = vmul.f32 %v7016_v26, %v8923_v13 }
0x10c6   :  { %v5333_v16 = vmul.f32 %v7018_v32, %v7014_v31  ;;  %v7020_v20 = vpop.eup %7019 }
0x10c7   :  { %v5334_v28 = vadd.f32 %v5332_v18, %v5330_v52  ;;  %v5331_v49 = vmul.f32 %v7020_v20, %v8927_v15  ;;  %v7022_v13 = vpop.eup %7021 }
0x10c9   :  { %7023 = vtanh.f32 %v5334_v28  ;;  %5361 = vst [vmem:[%s8993_s13 + $0x10] sm:$0xff] %v5334_v28  ;;  %v5335_v55 = vadd.f32 %v5333_v16, %v5331_v49 }
0x10ca   :  { %7025 = vrcp.f32 %v5315_v53 }
0x10cb   :  { %7027 = vtanh.f32 %v5335_v55  ;;  %5362 = vst [vmem:[%s8993_s13 + $0x18] sm:$0xff] %v5335_v55 }
0x10d3   :  { %v7024_v50 = vpop.eup %7023 }
0x10d4   :  { %v5338_v27 = vmul.f32 %v7024_v50, %v7022_v13  ;;  %v7026_v40 = vpop.eup %7025 }
0x10d5   :  { %v7028_v10 = vpop.eup %7027 }
0x10d6   :  { %5353 = vst [vmem:[%s8994_s12 + $0x10] sm:$0xff] %v5338_v27  ;;  %v5339_v15 = vmul.f32 %v7028_v10, %v7026_v40 }
0x10d8   :  { %5354 = vst [vmem:[%s8994_s12 + $0x18] sm:$0xff] %v5339_v15  ;;  %v5365_v17 = vpack.c.bf16 %v5339_v15, %v5338_v27 }
0x10da   :  { %5990 = vmatmul.mubr.bf16.vlgmr.msra.gmra.mrb[64].mxu0 %v5365_v17 }
0x11ad   :  { %v5471_v61 = vpop.f32.mrb[64].mxu0 }
0x11ae   :  { %v5472_v34 = vadd.f32 %v5955_v59, %v5471_v61  ;;  %v5991_v14 = vpop.f32.mrb[65].mxu0 }
0x11af   :  { %v5474_v0 = vpop.f32.mrb[66].mxu0 }
0x11b0   :  { %5478 = vst [vmem:[%s8998_s11] sm:$0xff] %v5472_v34  ;;  %v5475_v8 = vadd.f32 %v5955_v59, %v5474_v0  ;;  %v5992_v30 = vpop.f32.mrb[67].mxu0 }
0x11b2   :  { %5479 = vst [vmem:[%s8998_s11 + $0x8] sm:$0xff] %v5475_v8 }

</bundles_post_ra>
